<compile_context>
chip_gen: v7x
topology: tpu7x:2x2x1
jax: 0.10.0
libtpu: 0.0.40
codegen_flags: <defaults>
</compile_context>

<pallas_src>
import jax
import jax.numpy as jnp
from jax.experimental import pallas as pl
from jax.experimental.pallas import tpu as pltpu


_L = 112  # padded rows per (image, stride-parity plane): 10x10 real positions + 12 pad rows


def _round_up(x, m):
    return ((x + m - 1) // m) * m


# ----------------------------------------------------------------------------
# Kernel A: conv1 + conv2 + conv3 for a block of BB images.
#   conv1 input: 4 stride-parity planes of im2col patches, each (BB*L, C*64).
#   a1 plane layout (per image, stride L rows): row = 10*h2 + w2, h2,w2 in [0,10).
#   conv2 tap (i,j): plane (i%2, j%2), row shift 10*(i//2) + (j//2)   -> ref slice.
#   conv3 tap (i,j): row shift 10*i + j on the conv2 output map       -> ref slice.
#   Valid conv2 rows: 10*h+w (h,w<9); valid conv3 rows: 10*h'+w' (h',w'<7); the
#   padded / out-of-range rows only ever hold garbage that is never read back.
# ----------------------------------------------------------------------------
def _conv_stack_kernel(planes_ref, w1_ref, b1_ref, w2_ref, b2_ref, w3_ref, b3_ref,
                       out_ref, a1_ref, a2_ref):
    m2 = a2_ref.shape[0]   # BB*L - 16
    m3 = out_ref.shape[0]  # BB*L - 40

    # conv1 (8x8 / stride 4): one (BB*L, C*64)@(C*64, 32) matmul per parity plane.
    # 1/255 input scaling is folded into w1.
    for p in range(4):
        v = jnp.dot(planes_ref[p], w1_ref[...], preferred_element_type=jnp.float32)
        a1_ref[p] = jnp.maximum(v + b1_ref[...], 0.0).astype(jnp.bfloat16)

    # conv2 (4x4 / stride 2): 16 taps = 16 row-offset slices of a1 + real matmuls only.
    acc2 = jnp.zeros((m2, 64), jnp.float32)
    for i in range(4):
        for j in range(4):
            plane = (i % 2) * 2 + (j % 2)
            shift = (i // 2) * 10 + (j // 2)
            lhs = a1_ref[plane, pl.ds(shift, m2), :]
            acc2 = acc2 + jnp.dot(lhs, w2_ref[i * 4 + j],
                                  preferred_element_type=jnp.float32)
    a2_ref[...] = jnp.maximum(acc2 + b2_ref[...], 0.0).astype(jnp.bfloat16)

    # conv3 (3x3 / stride 1): 9 taps.
    acc3 = jnp.zeros((m3, 32), jnp.float32)
    for i in range(3):
        for j in range(3):
            shift = i * 10 + j
            acc3 = acc3 + jnp.dot(a2_ref[pl.ds(shift, m3), :], w3_ref[i * 3 + j],
                                  preferred_element_type=jnp.float32)
    out_ref[...] = jnp.maximum(acc3 + b3_ref[...], 0.0).astype(out_ref.dtype)


def _conv_stack(planes, pp, n_pad, bb):
    l = _L
    k = planes.shape[-1]
    nb = n_pad // bb
    bl = bb * l
    m2 = bl - 16
    m3 = bl - 40
    return pl.pallas_call(
        _conv_stack_kernel,
        out_shape=jax.ShapeDtypeStruct((nb, m3, 32), jnp.bfloat16),
        grid=(nb,),
        in_specs=[
            pl.BlockSpec((4, bl, k), lambda i: (0, i, 0)),       # patch planes (per batch block)
            pl.BlockSpec((k, 32), lambda i: (0, 0)),             # conv1 weight (resident)
            pl.BlockSpec((1, 32), lambda i: (0, 0)),
            pl.BlockSpec((16, 32, 64), lambda i: (0, 0, 0)),     # conv2 weights, (tap, in, out)
            pl.BlockSpec((1, 64), lambda i: (0, 0)),
            pl.BlockSpec((9, 64, 32), lambda i: (0, 0, 0)),      # conv3 weights, (tap, in, out)
            pl.BlockSpec((1, 32), lambda i: (0, 0)),
        ],
        out_specs=pl.BlockSpec((None, m3, 32), lambda i: (i, 0, 0)),
        scratch_shapes=[
            pltpu.VMEM((4, bl, 32), jnp.bfloat16),               # a1 parity planes
            pltpu.VMEM((m2, 64), jnp.bfloat16),                  # a2 map
        ],
        compiler_params=pltpu.CompilerParams(dimension_semantics=("parallel",)),
    )(planes, pp["w1"], pp["b1"], pp["w2"], pp["b2"], pp["w3"], pp["b3"])


# ----------------------------------------------------------------------------
# Kernel B: fc (1568 -> hidden, ReLU) + critic head (hidden -> 1), blocked over rows.
# ----------------------------------------------------------------------------
def _head_kernel(x_ref, wf_ref, bf_ref, wc_ref, bc_ref, h_ref, v_ref):
    h = jnp.dot(x_ref[...], wf_ref[...], preferred_element_type=jnp.float32) + bf_ref[...]
    h = jnp.maximum(h, 0.0)
    h_ref[...] = h
    v_ref[...] = jnp.dot(h.astype(jnp.bfloat16), wc_ref[...],
                         preferred_element_type=jnp.float32) + bc_ref[...]


def _head(feats, pp, rb):
    n2, kf = feats.shape
    hidden = pp["wf"].shape[1]
    return pl.pallas_call(
        _head_kernel,
        out_shape=(jax.ShapeDtypeStruct((n2, hidden), jnp.float32),
                   jax.ShapeDtypeStruct((n2, 1), jnp.float32)),
        grid=(n2 // rb,),
        in_specs=[
            pl.BlockSpec((rb, kf), lambda i: (i, 0)),
            pl.BlockSpec((kf, hidden), lambda i: (0, 0)),
            pl.BlockSpec((1, hidden), lambda i: (0, 0)),
            pl.BlockSpec((hidden, 1), lambda i: (0, 0)),
            pl.BlockSpec((1, 1), lambda i: (0, 0)),
        ],
        out_specs=(pl.BlockSpec((rb, hidden), lambda i: (i, 0)),
                   pl.BlockSpec((rb, 1), lambda i: (i, 0))),
        compiler_params=pltpu.CompilerParams(dimension_semantics=("parallel",)),
    )(feats, pp["wf"], pp["bf"], pp["wc"], pp["bc"])


# ----------------------------------------------------------------------------
# Parameter prep: one-time weight re-ordering / bf16 cast / 1-255 folding.
# ----------------------------------------------------------------------------
def prepare_params(params):
    hidden = params["fc_w"].shape[0]
    f32 = jnp.float32
    # conv1: (32, C, 8, 8) -> (C*64, 32), row order (c, kh, kw); fold 1/255 in.
    w1 = (params["conv1_w"] * (1.0 / 255.0))
    w1 = w1.reshape(w1.shape[0], -1).T.astype(jnp.bfloat16)
    # conv2/conv3: (O, I, kh, kw) -> (kh*kw, I, O)
    w2 = jnp.transpose(params["conv2_w"], (2, 3, 1, 0)).reshape(16, 32, 64).astype(jnp.bfloat16)
    w3 = jnp.transpose(params["conv3_w"], (2, 3, 1, 0)).reshape(9, 64, 32).astype(jnp.bfloat16)
    # fc: torch flatten order is c*49 + p; kernel flatten order is p*32 + c.
    wf = params["fc_w"].reshape(hidden, 32, 49).transpose(2, 1, 0)
    wf = wf.reshape(49 * 32, hidden).astype(jnp.bfloat16)
    wc = params["critic_w"].T.astype(jnp.bfloat16)                 # (hidden, 1)
    return {
        "w1": w1, "b1": params["conv1_b"].reshape(1, -1).astype(f32),
        "w2": w2, "b2": params["conv2_b"].reshape(1, -1).astype(f32),
        "w3": w3, "b3": params["conv3_b"].reshape(1, -1).astype(f32),
        "wf": wf, "bf": params["fc_b"].reshape(1, -1).astype(f32),
        "wc": wc, "bc": params["critic_b"].reshape(1, -1).astype(f32),
    }


def init_params(num_inputs, hidden_size=512, key=jax.random.PRNGKey(42)):
    ks = jax.random.split(key, 5)
    orth = jax.nn.initializers.orthogonal
    gain_relu = 2.0 ** 0.5
    return {
        "conv1_w": orth(gain_relu)(ks[0], (32, num_inputs, 8, 8), jnp.float32),
        "conv1_b": jnp.zeros((32,), jnp.float32),
        "conv2_w": orth(gain_relu)(ks[1], (64, 32, 4, 4), jnp.float32),
        "conv2_b": jnp.zeros((64,), jnp.float32),
        "conv3_w": orth(gain_relu)(ks[2], (32, 64, 3, 3), jnp.float32),
        "conv3_b": jnp.zeros((32,), jnp.float32),
        "fc_w": orth(gain_relu)(ks[3], (hidden_size, 32 * 7 * 7), jnp.float32),
        "fc_b": jnp.zeros((hidden_size,), jnp.float32),
        "critic_w": orth(1.0)(ks[4], (1, hidden_size), jnp.float32),
        "critic_b": jnp.zeros((1,), jnp.float32),
    }


# ----------------------------------------------------------------------------
# Forward pass (CNNBase.forward, recurrent=False).
# ----------------------------------------------------------------------------
@jax.jit
def cnn_base_forward(pp, inputs, rnn_hxs, masks):
    # inputs: (N, num_inputs, 84, 84) float32 in [0, 255]
    n, c = inputs.shape[0], inputs.shape[1]
    k = c * 64
    l = _L

    bb = max(1, min(8, n // 2)) if n >= 2 else 1     # keep >=2 parallel grid steps
    n_pad = _round_up(n, bb)
    nb = n_pad // bb

    # conv1 im2col patches, rearranged into 2x2 stride-parity planes with stride-L rows.
    xh = jnp.transpose(inputs, (0, 2, 3, 1)).astype(jnp.bfloat16)          # NHWC
    patches = jax.lax.conv_general_dilated_patches(
        xh, (8, 8), (4, 4), "VALID",
        dimension_numbers=("NHWC", "HWIO", "NHWC"))                         # (N,20,20,C*64), features (c,kh,kw)
    pat = patches.reshape(n, 10, 2, 10, 2, k).transpose(2, 4, 0, 1, 3, 5)   # (hp,wp,N,h2,w2,K)
    pat = pat.reshape(4, n, 100, k)
    pat = jnp.pad(pat, ((0, 0), (0, n_pad - n), (0, l - 100), (0, 0)))
    planes = pat.reshape(4, n_pad * l, k)

    conv_out = _conv_stack(planes, pp, n_pad, bb)                           # (nb, BB*L-40, 32) bf16

    # Extract valid conv3 rows (free-ish HBM reshapes/slices) -> (N, 1568) flatten (p*32+c).
    bl = bb * l
    m3 = bl - 40
    act = jnp.pad(conv_out, ((0, 0), (0, bl - m3), (0, 0)))
    act = act.reshape(nb, bb, l, 32)[:, :, :70, :]
    act = act.reshape(nb, bb, 7, 10, 32)[:, :, :, :7, :]
    feats_in = act.reshape(n_pad, 49 * 32)[:n]

    # fc + critic head, blocked over rows.
    rb = min(256, _round_up(n, 8))
    n2 = _round_up(n, rb)
    fx = jnp.pad(feats_in, ((0, n2 - n), (0, 0)))
    hidden, critic = _head(fx, pp, rb)

    # not recurrent: rnn_hxs passes through unchanged
    # TODO(synk): GRUCell path (_forward_gru) not implemented; module default is recurrent=False.
    return critic[:n], hidden[:n], rnn_hxs


# ----------------------------------------------------------------------------
# Pure-JAX f32 reference (PyTorch semantics) for the numeric check.
# ----------------------------------------------------------------------------
def reference_forward(params, inputs):
    hi = jax.lax.Precision.HIGHEST
    x = inputs / 255.0

    def conv(x, w, b, s):
        y = jax.lax.conv_general_dilated(
            x, w, (s, s), "VALID",
            dimension_numbers=("NCHW", "OIHW", "NCHW"), precision=hi)
        return jax.nn.relu(y + b[None, :, None, None])

    x = conv(x, params["conv1_w"], params["conv1_b"], 4)
    x = conv(x, params["conv2_w"], params["conv2_b"], 2)
    x = conv(x, params["conv3_w"], params["conv3_b"], 1)
    x = x.reshape(x.shape[0], -1)
    x = jax.nn.relu(jnp.dot(x, params["fc_w"].T, precision=hi) + params["fc_b"])
    critic = jnp.dot(x, params["critic_w"].T, precision=hi) + params["critic_b"]
    return critic, x


if __name__ == "__main__":
    num_inputs = 4
    hidden_size = 512
    batch = 2

    key = jax.random.PRNGKey(0)
    k_in, k_p = jax.random.split(key)
    # 84x84 spatial size is required by the module (Linear expects 32*7*7 features)
    inputs = jax.random.uniform(k_in, (batch, num_inputs, 84, 84),
                                jnp.float32, 0.0, 255.0)
    rnn_hxs = jnp.zeros((batch, 1), jnp.float32)   # recurrent_hidden_state_size == 1
    masks = jnp.ones((batch, 1), jnp.float32)

    params = init_params(num_inputs, hidden_size, key=k_p)
    pp = prepare_params(params)

    critic, feats, hxs_out = cnn_base_forward(pp, inputs, rnn_hxs, masks)
    jax.block_until_ready((critic, feats, hxs_out))

    assert critic.shape == (batch, 1)
    assert feats.shape == (batch, hidden_size)
    assert hxs_out.shape == rnn_hxs.shape

    # Numeric check vs f32 reference (kernel uses bf16 operands, f32 accumulation).
    critic_ref, feats_ref = reference_forward(params, inputs)
    scale = float(jnp.max(jnp.abs(feats_ref))) + 1e-6
    feats_max_err = float(jnp.max(jnp.abs(feats - feats_ref)))
    feats_mean_err = float(jnp.mean(jnp.abs(feats - feats_ref)))
    critic_err = float(jnp.max(jnp.abs(critic - critic_ref)))
    assert feats_max_err < 0.05 * scale, (feats_max_err, scale)
    assert feats_mean_err < 0.01 * scale, (feats_mean_err, scale)
    assert critic_err < 0.10 * scale, (critic_err, scale)

    print("KERNEL_OK")
</pallas_src>

<mosaic_0001>
module attributes {stable_mosaic.version = 11 : i64} {
  func.func @_conv_stack_kernel(%arg0: i32, %arg1: memref<4x112x256xbf16, #tpu.memory_space<vmem>>, %arg2: memref<256x32xbf16, #tpu.memory_space<vmem>>, %arg3: memref<1x32xf32, #tpu.memory_space<vmem>>, %arg4: memref<16x32x64xbf16, #tpu.memory_space<vmem>>, %arg5: memref<1x64xf32, #tpu.memory_space<vmem>>, %arg6: memref<9x64x32xbf16, #tpu.memory_space<vmem>>, %arg7: memref<1x32xf32, #tpu.memory_space<vmem>>, %arg8: memref<1x72x32xbf16, #tpu.memory_space<vmem>>, %arg9: memref<4x112x32xbf16, #tpu.memory_space<vmem>>, %arg10: memref<96x64xbf16, #tpu.memory_space<vmem>>) attributes {dimension_semantics = [#tpu.dimension_semantics<parallel>], iteration_bounds = array<i64: 2>, scalar_prefetch = 0 : i64, scratch_operands = 2 : i64, tpu.core_type = #tpu.core_type<tc>, window_params = [{transform_indices = @transform_0, window_bounds = array<i64: 4, 112, 256>}, {pipeline_mode = #tpu.pipeline_mode<synchronous>, transform_indices = @transform_1, window_bounds = array<i64: 256, 32>}, {pipeline_mode = #tpu.pipeline_mode<synchronous>, transform_indices = @transform_2, window_bounds = array<i64: 1, 32>}, {pipeline_mode = #tpu.pipeline_mode<synchronous>, transform_indices = @transform_3, window_bounds = array<i64: 16, 32, 64>}, {pipeline_mode = #tpu.pipeline_mode<synchronous>, transform_indices = @transform_4, window_bounds = array<i64: 1, 64>}, {pipeline_mode = #tpu.pipeline_mode<synchronous>, transform_indices = @transform_5, window_bounds = array<i64: 9, 64, 32>}, {pipeline_mode = #tpu.pipeline_mode<synchronous>, transform_indices = @transform_6, window_bounds = array<i64: 1, 32>}, {transform_indices = @transform_7, window_bounds = array<i64: 1, 72, 32>}]} {
    %c0 = arith.constant 0 : index
    %c0_0 = arith.constant 0 : index
    %c0_1 = arith.constant 0 : index
    %0 = vector.load %arg1[%c0, %c0_0, %c0_1] : memref<4x112x256xbf16, #tpu.memory_space<vmem>>, vector<1x112x256xbf16>
    %1 = vector.shape_cast %0 : vector<1x112x256xbf16> to vector<112x256xbf16>
    %c0_2 = arith.constant 0 : index
    %c0_3 = arith.constant 0 : index
    %2 = vector.load %arg2[%c0_2, %c0_3] : memref<256x32xbf16, #tpu.memory_space<vmem>>, vector<256x32xbf16>
    %cst = arith.constant dense<0.000000e+00> : vector<112x32xf32>
    %3 = tpu.matmul %1, %2, %cst {dimension_numbers = #tpu.dot_dimension_numbers<[1], [0], [0], [1], [0, 0, 1, 1], [], []>} : vector<112x256xbf16>, vector<256x32xbf16>, vector<112x32xf32> -> vector<112x32xf32>
    %c0_4 = arith.constant 0 : index
    %c0_5 = arith.constant 0 : index
    %4 = vector.load %arg3[%c0_4, %c0_5] : memref<1x32xf32, #tpu.memory_space<vmem>>, vector<1x32xf32>
    %5 = vector.broadcast %4 : vector<1x32xf32> to vector<112x32xf32>
    %6 = arith.addf %3, %5 : vector<112x32xf32>
    %cst_6 = arith.constant 0.000000e+00 : f32
    %7 = vector.broadcast %cst_6 : f32 to vector<112x32xf32>
    %8 = arith.maximumf %6, %7 : vector<112x32xf32>
    %9 = arith.truncf %8 : vector<112x32xf32> to vector<112x32xbf16>
    %c0_7 = arith.constant 0 : index
    %c0_8 = arith.constant 0 : index
    %c0_9 = arith.constant 0 : index
    %10 = vector.load %arg9[%c0_7, %c0_8, %c0_9] : memref<4x112x32xbf16, #tpu.memory_space<vmem>>, vector<1x112x32xbf16>
    %11 = vector.shape_cast %10 : vector<1x112x32xbf16> to vector<112x32xbf16>
    %12 = vector.shape_cast %9 : vector<112x32xbf16> to vector<1x112x32xbf16>
    tpu.vector_store %arg9[%c0_7, %c0_8, %c0_9], %12 {strides = array<i32>} : memref<4x112x32xbf16, #tpu.memory_space<vmem>>, vector<1x112x32xbf16>,
    %c1 = arith.constant 1 : index
    %c0_10 = arith.constant 0 : index
    %c0_11 = arith.constant 0 : index
    %13 = vector.load %arg1[%c1, %c0_10, %c0_11] : memref<4x112x256xbf16, #tpu.memory_space<vmem>>, vector<1x112x256xbf16>
    %14 = vector.shape_cast %13 : vector<1x112x256xbf16> to vector<112x256xbf16>
    %c0_12 = arith.constant 0 : index
    %c0_13 = arith.constant 0 : index
    %15 = vector.load %arg2[%c0_12, %c0_13] : memref<256x32xbf16, #tpu.memory_space<vmem>>, vector<256x32xbf16>
    %cst_14 = arith.constant dense<0.000000e+00> : vector<112x32xf32>
    %16 = tpu.matmul %14, %15, %cst_14 {dimension_numbers = #tpu.dot_dimension_numbers<[1], [0], [0], [1], [0, 0, 1, 1], [], []>} : vector<112x256xbf16>, vector<256x32xbf16>, vector<112x32xf32> -> vector<112x32xf32>
    %c0_15 = arith.constant 0 : index
    %c0_16 = arith.constant 0 : index
    %17 = vector.load %arg3[%c0_15, %c0_16] : memref<1x32xf32, #tpu.memory_space<vmem>>, vector<1x32xf32>
    %18 = vector.broadcast %17 : vector<1x32xf32> to vector<112x32xf32>
    %19 = arith.addf %16, %18 : vector<112x32xf32>
    %cst_17 = arith.constant 0.000000e+00 : f32
    %20 = vector.broadcast %cst_17 : f32 to vector<112x32xf32>
    %21 = arith.maximumf %19, %20 : vector<112x32xf32>
    %22 = arith.truncf %21 : vector<112x32xf32> to vector<112x32xbf16>
    %c1_18 = arith.constant 1 : index
    %c0_19 = arith.constant 0 : index
    %c0_20 = arith.constant 0 : index
    %23 = vector.load %arg9[%c1_18, %c0_19, %c0_20] : memref<4x112x32xbf16, #tpu.memory_space<vmem>>, vector<1x112x32xbf16>
    %24 = vector.shape_cast %23 : vector<1x112x32xbf16> to vector<112x32xbf16>
    %25 = vector.shape_cast %22 : vector<112x32xbf16> to vector<1x112x32xbf16>
    tpu.vector_store %arg9[%c1_18, %c0_19, %c0_20], %25 {strides = array<i32>} : memref<4x112x32xbf16, #tpu.memory_space<vmem>>, vector<1x112x32xbf16>,
    %c2 = arith.constant 2 : index
    %c0_21 = arith.constant 0 : index
    %c0_22 = arith.constant 0 : index
    %26 = vector.load %arg1[%c2, %c0_21, %c0_22] : memref<4x112x256xbf16, #tpu.memory_space<vmem>>, vector<1x112x256xbf16>
    %27 = vector.shape_cast %26 : vector<1x112x256xbf16> to vector<112x256xbf16>
    %c0_23 = arith.constant 0 : index
    %c0_24 = arith.constant 0 : index
    %28 = vector.load %arg2[%c0_23, %c0_24] : memref<256x32xbf16, #tpu.memory_space<vmem>>, vector<256x32xbf16>
    %cst_25 = arith.constant dense<0.000000e+00> : vector<112x32xf32>
    %29 = tpu.matmul %27, %28, %cst_25 {dimension_numbers = #tpu.dot_dimension_numbers<[1], [0], [0], [1], [0, 0, 1, 1], [], []>} : vector<112x256xbf16>, vector<256x32xbf16>, vector<112x32xf32> -> vector<112x32xf32>
    %c0_26 = arith.constant 0 : index
    %c0_27 = arith.constant 0 : index
    %30 = vector.load %arg3[%c0_26, %c0_27] : memref<1x32xf32, #tpu.memory_space<vmem>>, vector<1x32xf32>
    %31 = vector.broadcast %30 : vector<1x32xf32> to vector<112x32xf32>
    %32 = arith.addf %29, %31 : vector<112x32xf32>
    %cst_28 = arith.constant 0.000000e+00 : f32
    %33 = vector.broadcast %cst_28 : f32 to vector<112x32xf32>
    %34 = arith.maximumf %32, %33 : vector<112x32xf32>
    %35 = arith.truncf %34 : vector<112x32xf32> to vector<112x32xbf16>
    %c2_29 = arith.constant 2 : index
    %c0_30 = arith.constant 0 : index
    %c0_31 = arith.constant 0 : index
    %36 = vector.load %arg9[%c2_29, %c0_30, %c0_31] : memref<4x112x32xbf16, #tpu.memory_space<vmem>>, vector<1x112x32xbf16>
    %37 = vector.shape_cast %36 : vector<1x112x32xbf16> to vector<112x32xbf16>
    %38 = vector.shape_cast %35 : vector<112x32xbf16> to vector<1x112x32xbf16>
    tpu.vector_store %arg9[%c2_29, %c0_30, %c0_31], %38 {strides = array<i32>} : memref<4x112x32xbf16, #tpu.memory_space<vmem>>, vector<1x112x32xbf16>,
    %c3 = arith.constant 3 : index
    %c0_32 = arith.constant 0 : index
    %c0_33 = arith.constant 0 : index
    %39 = vector.load %arg1[%c3, %c0_32, %c0_33] : memref<4x112x256xbf16, #tpu.memory_space<vmem>>, vector<1x112x256xbf16>
    %40 = vector.shape_cast %39 : vector<1x112x256xbf16> to vector<112x256xbf16>
    %c0_34 = arith.constant 0 : index
    %c0_35 = arith.constant 0 : index
    %41 = vector.load %arg2[%c0_34, %c0_35] : memref<256x32xbf16, #tpu.memory_space<vmem>>, vector<256x32xbf16>
    %cst_36 = arith.constant dense<0.000000e+00> : vector<112x32xf32>
    %42 = tpu.matmul %40, %41, %cst_36 {dimension_numbers = #tpu.dot_dimension_numbers<[1], [0], [0], [1], [0, 0, 1, 1], [], []>} : vector<112x256xbf16>, vector<256x32xbf16>, vector<112x32xf32> -> vector<112x32xf32>
    %c0_37 = arith.constant 0 : index
    %c0_38 = arith.constant 0 : index
    %43 = vector.load %arg3[%c0_37, %c0_38] : memref<1x32xf32, #tpu.memory_space<vmem>>, vector<1x32xf32>
    %44 = vector.broadcast %43 : vector<1x32xf32> to vector<112x32xf32>
    %45 = arith.addf %42, %44 : vector<112x32xf32>
    %cst_39 = arith.constant 0.000000e+00 : f32
    %46 = vector.broadcast %cst_39 : f32 to vector<112x32xf32>
    %47 = arith.maximumf %45, %46 : vector<112x32xf32>
    %48 = arith.truncf %47 : vector<112x32xf32> to vector<112x32xbf16>
    %c3_40 = arith.constant 3 : index
    %c0_41 = arith.constant 0 : index
    %c0_42 = arith.constant 0 : index
    %49 = vector.load %arg9[%c3_40, %c0_41, %c0_42] : memref<4x112x32xbf16, #tpu.memory_space<vmem>>, vector<1x112x32xbf16>
    %50 = vector.shape_cast %49 : vector<1x112x32xbf16> to vector<112x32xbf16>
    %51 = vector.shape_cast %48 : vector<112x32xbf16> to vector<1x112x32xbf16>
    tpu.vector_store %arg9[%c3_40, %c0_41, %c0_42], %51 {strides = array<i32>} : memref<4x112x32xbf16, #tpu.memory_space<vmem>>, vector<1x112x32xbf16>,
    %cst_43 = arith.constant 0.000000e+00 : f32
    %52 = vector.broadcast %cst_43 : f32 to vector<96x64xf32>
    %c0_44 = arith.constant 0 : index
    %c0_45 = arith.constant 0 : index
    %c0_46 = arith.constant 0 : index
    %53 = vector.load %arg9[%c0_44, %c0_45, %c0_46] : memref<4x112x32xbf16, #tpu.memory_space<vmem>>, vector<1x96x32xbf16>
    %54 = vector.shape_cast %53 : vector<1x96x32xbf16> to vector<96x32xbf16>
    %c0_47 = arith.constant 0 : index
    %c0_48 = arith.constant 0 : index
    %c0_49 = arith.constant 0 : index
    %55 = vector.load %arg4[%c0_47, %c0_48, %c0_49] : memref<16x32x64xbf16, #tpu.memory_space<vmem>>, vector<1x32x64xbf16>
    %56 = vector.shape_cast %55 : vector<1x32x64xbf16> to vector<32x64xbf16>
    %cst_50 = arith.constant dense<0.000000e+00> : vector<96x64xf32>
    %57 = tpu.matmul %54, %56, %cst_50 {dimension_numbers = #tpu.dot_dimension_numbers<[1], [0], [0], [1], [0, 0, 1, 1], [], []>} : vector<96x32xbf16>, vector<32x64xbf16>, vector<96x64xf32> -> vector<96x64xf32>
    %58 = arith.addf %52, %57 : vector<96x64xf32>
    %c1_51 = arith.constant 1 : index
    %c0_52 = arith.constant 0 : index
    %c0_53 = arith.constant 0 : index
    %59 = vector.load %arg9[%c1_51, %c0_52, %c0_53] : memref<4x112x32xbf16, #tpu.memory_space<vmem>>, vector<1x96x32xbf16>
    %60 = vector.shape_cast %59 : vector<1x96x32xbf16> to vector<96x32xbf16>
    %c1_54 = arith.constant 1 : index
    %c0_55 = arith.constant 0 : index
    %c0_56 = arith.constant 0 : index
    %61 = vector.load %arg4[%c1_54, %c0_55, %c0_56] : memref<16x32x64xbf16, #tpu.memory_space<vmem>>, vector<1x32x64xbf16>
    %62 = vector.shape_cast %61 : vector<1x32x64xbf16> to vector<32x64xbf16>
    %cst_57 = arith.constant dense<0.000000e+00> : vector<96x64xf32>
    %63 = tpu.matmul %60, %62, %cst_57 {dimension_numbers = #tpu.dot_dimension_numbers<[1], [0], [0], [1], [0, 0, 1, 1], [], []>} : vector<96x32xbf16>, vector<32x64xbf16>, vector<96x64xf32> -> vector<96x64xf32>
    %64 = arith.addf %58, %63 : vector<96x64xf32>
    %c0_58 = arith.constant 0 : index
    %c1_59 = arith.constant 1 : index
    %c0_60 = arith.constant 0 : index
    %65 = vector.load %arg9[%c0_58, %c1_59, %c0_60] : memref<4x112x32xbf16, #tpu.memory_space<vmem>>, vector<1x96x32xbf16>
    %66 = vector.shape_cast %65 : vector<1x96x32xbf16> to vector<96x32xbf16>
    %c2_61 = arith.constant 2 : index
    %c0_62 = arith.constant 0 : index
    %c0_63 = arith.constant 0 : index
    %67 = vector.load %arg4[%c2_61, %c0_62, %c0_63] : memref<16x32x64xbf16, #tpu.memory_space<vmem>>, vector<1x32x64xbf16>
    %68 = vector.shape_cast %67 : vector<1x32x64xbf16> to vector<32x64xbf16>
    %cst_64 = arith.constant dense<0.000000e+00> : vector<96x64xf32>
    %69 = tpu.matmul %66, %68, %cst_64 {dimension_numbers = #tpu.dot_dimension_numbers<[1], [0], [0], [1], [0, 0, 1, 1], [], []>} : vector<96x32xbf16>, vector<32x64xbf16>, vector<96x64xf32> -> vector<96x64xf32>
    %70 = arith.addf %64, %69 : vector<96x64xf32>
    %c1_65 = arith.constant 1 : index
    %c1_66 = arith.constant 1 : index
    %c0_67 = arith.constant 0 : index
    %71 = vector.load %arg9[%c1_65, %c1_66, %c0_67] : memref<4x112x32xbf16, #tpu.memory_space<vmem>>, vector<1x96x32xbf16>
    %72 = vector.shape_cast %71 : vector<1x96x32xbf16> to vector<96x32xbf16>
    %c3_68 = arith.constant 3 : index
    %c0_69 = arith.constant 0 : index
    %c0_70 = arith.constant 0 : index
    %73 = vector.load %arg4[%c3_68, %c0_69, %c0_70] : memref<16x32x64xbf16, #tpu.memory_space<vmem>>, vector<1x32x64xbf16>
    %74 = vector.shape_cast %73 : vector<1x32x64xbf16> to vector<32x64xbf16>
    %cst_71 = arith.constant dense<0.000000e+00> : vector<96x64xf32>
    %75 = tpu.matmul %72, %74, %cst_71 {dimension_numbers = #tpu.dot_dimension_numbers<[1], [0], [0], [1], [0, 0, 1, 1], [], []>} : vector<96x32xbf16>, vector<32x64xbf16>, vector<96x64xf32> -> vector<96x64xf32>
    %76 = arith.addf %70, %75 : vector<96x64xf32>
    %c2_72 = arith.constant 2 : index
    %c0_73 = arith.constant 0 : index
    %c0_74 = arith.constant 0 : index
    %77 = vector.load %arg9[%c2_72, %c0_73, %c0_74] : memref<4x112x32xbf16, #tpu.memory_space<vmem>>, vector<1x96x32xbf16>
    %78 = vector.shape_cast %77 : vector<1x96x32xbf16> to vector<96x32xbf16>
    %c4 = arith.constant 4 : index
    %c0_75 = arith.constant 0 : index
    %c0_76 = arith.constant 0 : index
    %79 = vector.load %arg4[%c4, %c0_75, %c0_76] : memref<16x32x64xbf16, #tpu.memory_space<vmem>>, vector<1x32x64xbf16>
    %80 = vector.shape_cast %79 : vector<1x32x64xbf16> to vector<32x64xbf16>
    %cst_77 = arith.constant dense<0.000000e+00> : vector<96x64xf32>
    %81 = tpu.matmul %78, %80, %cst_77 {dimension_numbers = #tpu.dot_dimension_numbers<[1], [0], [0], [1], [0, 0, 1, 1], [], []>} : vector<96x32xbf16>, vector<32x64xbf16>, vector<96x64xf32> -> vector<96x64xf32>
    %82 = arith.addf %76, %81 : vector<96x64xf32>
    %c3_78 = arith.constant 3 : index
    %c0_79 = arith.constant 0 : index
    %c0_80 = arith.constant 0 : index
    %83 = vector.load %arg9[%c3_78, %c0_79, %c0_80] : memref<4x112x32xbf16, #tpu.memory_space<vmem>>, vector<1x96x32xbf16>
    %84 = vector.shape_cast %83 : vector<1x96x32xbf16> to vector<96x32xbf16>
    %c5 = arith.constant 5 : index
    %c0_81 = arith.constant 0 : index
    %c0_82 = arith.constant 0 : index
    %85 = vector.load %arg4[%c5, %c0_81, %c0_82] : memref<16x32x64xbf16, #tpu.memory_space<vmem>>, vector<1x32x64xbf16>
    %86 = vector.shape_cast %85 : vector<1x32x64xbf16> to vector<32x64xbf16>
    %cst_83 = arith.constant dense<0.000000e+00> : vector<96x64xf32>
    %87 = tpu.matmul %84, %86, %cst_83 {dimension_numbers = #tpu.dot_dimension_numbers<[1], [0], [0], [1], [0, 0, 1, 1], [], []>} : vector<96x32xbf16>, vector<32x64xbf16>, vector<96x64xf32> -> vector<96x64xf32>
    %88 = arith.addf %82, %87 : vector<96x64xf32>
    %c2_84 = arith.constant 2 : index
    %c1_85 = arith.constant 1 : index
    %c0_86 = arith.constant 0 : index
    %89 = vector.load %arg9[%c2_84, %c1_85, %c0_86] : memref<4x112x32xbf16, #tpu.memory_space<vmem>>, vector<1x96x32xbf16>
    %90 = vector.shape_cast %89 : vector<1x96x32xbf16> to vector<96x32xbf16>
    %c6 = arith.constant 6 : index
    %c0_87 = arith.constant 0 : index
    %c0_88 = arith.constant 0 : index
    %91 = vector.load %arg4[%c6, %c0_87, %c0_88] : memref<16x32x64xbf16, #tpu.memory_space<vmem>>, vector<1x32x64xbf16>
    %92 = vector.shape_cast %91 : vector<1x32x64xbf16> to vector<32x64xbf16>
    %cst_89 = arith.constant dense<0.000000e+00> : vector<96x64xf32>
    %93 = tpu.matmul %90, %92, %cst_89 {dimension_numbers = #tpu.dot_dimension_numbers<[1], [0], [0], [1], [0, 0, 1, 1], [], []>} : vector<96x32xbf16>, vector<32x64xbf16>, vector<96x64xf32> -> vector<96x64xf32>
    %94 = arith.addf %88, %93 : vector<96x64xf32>
    %c3_90 = arith.constant 3 : index
    %c1_91 = arith.constant 1 : index
    %c0_92 = arith.constant 0 : index
    %95 = vector.load %arg9[%c3_90, %c1_91, %c0_92] : memref<4x112x32xbf16, #tpu.memory_space<vmem>>, vector<1x96x32xbf16>
    %96 = vector.shape_cast %95 : vector<1x96x32xbf16> to vector<96x32xbf16>
    %c7 = arith.constant 7 : index
    %c0_93 = arith.constant 0 : index
    %c0_94 = arith.constant 0 : index
    %97 = vector.load %arg4[%c7, %c0_93, %c0_94] : memref<16x32x64xbf16, #tpu.memory_space<vmem>>, vector<1x32x64xbf16>
    %98 = vector.shape_cast %97 : vector<1x32x64xbf16> to vector<32x64xbf16>
    %cst_95 = arith.constant dense<0.000000e+00> : vector<96x64xf32>
    %99 = tpu.matmul %96, %98, %cst_95 {dimension_numbers = #tpu.dot_dimension_numbers<[1], [0], [0], [1], [0, 0, 1, 1], [], []>} : vector<96x32xbf16>, vector<32x64xbf16>, vector<96x64xf32> -> vector<96x64xf32>
    %100 = arith.addf %94, %99 : vector<96x64xf32>
    %c0_96 = arith.constant 0 : index
    %c10 = arith.constant 10 : index
    %c0_97 = arith.constant 0 : index
    %101 = vector.load %arg9[%c0_96, %c10, %c0_97] : memref<4x112x32xbf16, #tpu.memory_space<vmem>>, vector<1x96x32xbf16>
    %102 = vector.shape_cast %101 : vector<1x96x32xbf16> to vector<96x32xbf16>
    %c8 = arith.constant 8 : index
    %c0_98 = arith.constant 0 : index
    %c0_99 = arith.constant 0 : index
    %103 = vector.load %arg4[%c8, %c0_98, %c0_99] : memref<16x32x64xbf16, #tpu.memory_space<vmem>>, vector<1x32x64xbf16>
    %104 = vector.shape_cast %103 : vector<1x32x64xbf16> to vector<32x64xbf16>
    %cst_100 = arith.constant dense<0.000000e+00> : vector<96x64xf32>
    %105 = tpu.matmul %102, %104, %cst_100 {dimension_numbers = #tpu.dot_dimension_numbers<[1], [0], [0], [1], [0, 0, 1, 1], [], []>} : vector<96x32xbf16>, vector<32x64xbf16>, vector<96x64xf32> -> vector<96x64xf32>
    %106 = arith.addf %100, %105 : vector<96x64xf32>
    %c1_101 = arith.constant 1 : index
    %c10_102 = arith.constant 10 : index
    %c0_103 = arith.constant 0 : index
    %107 = vector.load %arg9[%c1_101, %c10_102, %c0_103] : memref<4x112x32xbf16, #tpu.memory_space<vmem>>, vector<1x96x32xbf16>
    %108 = vector.shape_cast %107 : vector<1x96x32xbf16> to vector<96x32xbf16>
    %c9 = arith.constant 9 : index
    %c0_104 = arith.constant 0 : index
    %c0_105 = arith.constant 0 : index
    %109 = vector.load %arg4[%c9, %c0_104, %c0_105] : memref<16x32x64xbf16, #tpu.memory_space<vmem>>, vector<1x32x64xbf16>
    %110 = vector.shape_cast %109 : vector<1x32x64xbf16> to vector<32x64xbf16>
    %cst_106 = arith.constant dense<0.000000e+00> : vector<96x64xf32>
    %111 = tpu.matmul %108, %110, %cst_106 {dimension_numbers = #tpu.dot_dimension_numbers<[1], [0], [0], [1], [0, 0, 1, 1], [], []>} : vector<96x32xbf16>, vector<32x64xbf16>, vector<96x64xf32> -> vector<96x64xf32>
    %112 = arith.addf %106, %111 : vector<96x64xf32>
    %c0_107 = arith.constant 0 : index
    %c11 = arith.constant 11 : index
    %c0_108 = arith.constant 0 : index
    %113 = vector.load %arg9[%c0_107, %c11, %c0_108] : memref<4x112x32xbf16, #tpu.memory_space<vmem>>, vector<1x96x32xbf16>
    %114 = vector.shape_cast %113 : vector<1x96x32xbf16> to vector<96x32xbf16>
    %c10_109 = arith.constant 10 : index
    %c0_110 = arith.constant 0 : index
    %c0_111 = arith.constant 0 : index
    %115 = vector.load %arg4[%c10_109, %c0_110, %c0_111] : memref<16x32x64xbf16, #tpu.memory_space<vmem>>, vector<1x32x64xbf16>
    %116 = vector.shape_cast %115 : vector<1x32x64xbf16> to vector<32x64xbf16>
    %cst_112 = arith.constant dense<0.000000e+00> : vector<96x64xf32>
    %117 = tpu.matmul %114, %116, %cst_112 {dimension_numbers = #tpu.dot_dimension_numbers<[1], [0], [0], [1], [0, 0, 1, 1], [], []>} : vector<96x32xbf16>, vector<32x64xbf16>, vector<96x64xf32> -> vector<96x64xf32>
    %118 = arith.addf %112, %117 : vector<96x64xf32>
    %c1_113 = arith.constant 1 : index
    %c11_114 = arith.constant 11 : index
    %c0_115 = arith.constant 0 : index
    %119 = vector.load %arg9[%c1_113, %c11_114, %c0_115] : memref<4x112x32xbf16, #tpu.memory_space<vmem>>, vector<1x96x32xbf16>
    %120 = vector.shape_cast %119 : vector<1x96x32xbf16> to vector<96x32xbf16>
    %c11_116 = arith.constant 11 : index
    %c0_117 = arith.constant 0 : index
    %c0_118 = arith.constant 0 : index
    %121 = vector.load %arg4[%c11_116, %c0_117, %c0_118] : memref<16x32x64xbf16, #tpu.memory_space<vmem>>, vector<1x32x64xbf16>
    %122 = vector.shape_cast %121 : vector<1x32x64xbf16> to vector<32x64xbf16>
    %cst_119 = arith.constant dense<0.000000e+00> : vector<96x64xf32>
    %123 = tpu.matmul %120, %122, %cst_119 {dimension_numbers = #tpu.dot_dimension_numbers<[1], [0], [0], [1], [0, 0, 1, 1], [], []>} : vector<96x32xbf16>, vector<32x64xbf16>, vector<96x64xf32> -> vector<96x64xf32>
    %124 = arith.addf %118, %123 : vector<96x64xf32>
    %c2_120 = arith.constant 2 : index
    %c10_121 = arith.constant 10 : index
    %c0_122 = arith.constant 0 : index
    %125 = vector.load %arg9[%c2_120, %c10_121, %c0_122] : memref<4x112x32xbf16, #tpu.memory_space<vmem>>, vector<1x96x32xbf16>
    %126 = vector.shape_cast %125 : vector<1x96x32xbf16> to vector<96x32xbf16>
    %c12 = arith.constant 12 : index
    %c0_123 = arith.constant 0 : index
    %c0_124 = arith.constant 0 : index
    %127 = vector.load %arg4[%c12, %c0_123, %c0_124] : memref<16x32x64xbf16, #tpu.memory_space<vmem>>, vector<1x32x64xbf16>
    %128 = vector.shape_cast %127 : vector<1x32x64xbf16> to vector<32x64xbf16>
    %cst_125 = arith.constant dense<0.000000e+00> : vector<96x64xf32>
    %129 = tpu.matmul %126, %128, %cst_125 {dimension_numbers = #tpu.dot_dimension_numbers<[1], [0], [0], [1], [0, 0, 1, 1], [], []>} : vector<96x32xbf16>, vector<32x64xbf16>, vector<96x64xf32> -> vector<96x64xf32>
    %130 = arith.addf %124, %129 : vector<96x64xf32>
    %c3_126 = arith.constant 3 : index
    %c10_127 = arith.constant 10 : index
    %c0_128 = arith.constant 0 : index
    %131 = vector.load %arg9[%c3_126, %c10_127, %c0_128] : memref<4x112x32xbf16, #tpu.memory_space<vmem>>, vector<1x96x32xbf16>
    %132 = vector.shape_cast %131 : vector<1x96x32xbf16> to vector<96x32xbf16>
    %c13 = arith.constant 13 : index
    %c0_129 = arith.constant 0 : index
    %c0_130 = arith.constant 0 : index
    %133 = vector.load %arg4[%c13, %c0_129, %c0_130] : memref<16x32x64xbf16, #tpu.memory_space<vmem>>, vector<1x32x64xbf16>
    %134 = vector.shape_cast %133 : vector<1x32x64xbf16> to vector<32x64xbf16>
    %cst_131 = arith.constant dense<0.000000e+00> : vector<96x64xf32>
    %135 = tpu.matmul %132, %134, %cst_131 {dimension_numbers = #tpu.dot_dimension_numbers<[1], [0], [0], [1], [0, 0, 1, 1], [], []>} : vector<96x32xbf16>, vector<32x64xbf16>, vector<96x64xf32> -> vector<96x64xf32>
    %136 = arith.addf %130, %135 : vector<96x64xf32>
    %c2_132 = arith.constant 2 : index
    %c11_133 = arith.constant 11 : index
    %c0_134 = arith.constant 0 : index
    %137 = vector.load %arg9[%c2_132, %c11_133, %c0_134] : memref<4x112x32xbf16, #tpu.memory_space<vmem>>, vector<1x96x32xbf16>
    %138 = vector.shape_cast %137 : vector<1x96x32xbf16> to vector<96x32xbf16>
    %c14 = arith.constant 14 : index
    %c0_135 = arith.constant 0 : index
    %c0_136 = arith.constant 0 : index
    %139 = vector.load %arg4[%c14, %c0_135, %c0_136] : memref<16x32x64xbf16, #tpu.memory_space<vmem>>, vector<1x32x64xbf16>
    %140 = vector.shape_cast %139 : vector<1x32x64xbf16> to vector<32x64xbf16>
    %cst_137 = arith.constant dense<0.000000e+00> : vector<96x64xf32>
    %141 = tpu.matmul %138, %140, %cst_137 {dimension_numbers = #tpu.dot_dimension_numbers<[1], [0], [0], [1], [0, 0, 1, 1], [], []>} : vector<96x32xbf16>, vector<32x64xbf16>, vector<96x64xf32> -> vector<96x64xf32>
    %142 = arith.addf %136, %141 : vector<96x64xf32>
    %c3_138 = arith.constant 3 : index
    %c11_139 = arith.constant 11 : index
    %c0_140 = arith.constant 0 : index
    %143 = vector.load %arg9[%c3_138, %c11_139, %c0_140] : memref<4x112x32xbf16, #tpu.memory_space<vmem>>, vector<1x96x32xbf16>
    %144 = vector.shape_cast %143 : vector<1x96x32xbf16> to vector<96x32xbf16>
    %c15 = arith.constant 15 : index
    %c0_141 = arith.constant 0 : index
    %c0_142 = arith.constant 0 : index
    %145 = vector.load %arg4[%c15, %c0_141, %c0_142] : memref<16x32x64xbf16, #tpu.memory_space<vmem>>, vector<1x32x64xbf16>
    %146 = vector.shape_cast %145 : vector<1x32x64xbf16> to vector<32x64xbf16>
    %cst_143 = arith.constant dense<0.000000e+00> : vector<96x64xf32>
    %147 = tpu.matmul %144, %146, %cst_143 {dimension_numbers = #tpu.dot_dimension_numbers<[1], [0], [0], [1], [0, 0, 1, 1], [], []>} : vector<96x32xbf16>, vector<32x64xbf16>, vector<96x64xf32> -> vector<96x64xf32>
    %148 = arith.addf %142, %147 : vector<96x64xf32>
    %c0_144 = arith.constant 0 : index
    %c0_145 = arith.constant 0 : index
    %149 = vector.load %arg5[%c0_144, %c0_145] : memref<1x64xf32, #tpu.memory_space<vmem>>, vector<1x64xf32>
    %150 = vector.broadcast %149 : vector<1x64xf32> to vector<96x64xf32>
    %151 = arith.addf %148, %150 : vector<96x64xf32>
    %cst_146 = arith.constant 0.000000e+00 : f32
    %152 = vector.broadcast %cst_146 : f32 to vector<96x64xf32>
    %153 = arith.maximumf %151, %152 : vector<96x64xf32>
    %154 = arith.truncf %153 : vector<96x64xf32> to vector<96x64xbf16>
    %c0_147 = arith.constant 0 : index
    %c0_148 = arith.constant 0 : index
    %155 = vector.load %arg10[%c0_147, %c0_148] : memref<96x64xbf16, #tpu.memory_space<vmem>>, vector<96x64xbf16>
    tpu.vector_store %arg10[%c0_147, %c0_148], %154 {strides = array<i32>} : memref<96x64xbf16, #tpu.memory_space<vmem>>, vector<96x64xbf16>,
    %cst_149 = arith.constant 0.000000e+00 : f32
    %156 = vector.broadcast %cst_149 : f32 to vector<72x32xf32>
    %c0_150 = arith.constant 0 : index
    %c0_151 = arith.constant 0 : index
    %157 = vector.load %arg10[%c0_150, %c0_151] : memref<96x64xbf16, #tpu.memory_space<vmem>>, vector<72x64xbf16>
    %c0_152 = arith.constant 0 : index
    %c0_153 = arith.constant 0 : index
    %c0_154 = arith.constant 0 : index
    %158 = vector.load %arg6[%c0_152, %c0_153, %c0_154] : memref<9x64x32xbf16, #tpu.memory_space<vmem>>, vector<1x64x32xbf16>
    %159 = vector.shape_cast %158 : vector<1x64x32xbf16> to vector<64x32xbf16>
    %cst_155 = arith.constant dense<0.000000e+00> : vector<72x32xf32>
    %160 = tpu.matmul %157, %159, %cst_155 {dimension_numbers = #tpu.dot_dimension_numbers<[1], [0], [0], [1], [0, 0, 1, 1], [], []>} : vector<72x64xbf16>, vector<64x32xbf16>, vector<72x32xf32> -> vector<72x32xf32>
    %161 = arith.addf %156, %160 : vector<72x32xf32>
    %c1_156 = arith.constant 1 : index
    %c0_157 = arith.constant 0 : index
    %162 = vector.load %arg10[%c1_156, %c0_157] : memref<96x64xbf16, #tpu.memory_space<vmem>>, vector<72x64xbf16>
    %c1_158 = arith.constant 1 : index
    %c0_159 = arith.constant 0 : index
    %c0_160 = arith.constant 0 : index
    %163 = vector.load %arg6[%c1_158, %c0_159, %c0_160] : memref<9x64x32xbf16, #tpu.memory_space<vmem>>, vector<1x64x32xbf16>
    %164 = vector.shape_cast %163 : vector<1x64x32xbf16> to vector<64x32xbf16>
    %cst_161 = arith.constant dense<0.000000e+00> : vector<72x32xf32>
    %165 = tpu.matmul %162, %164, %cst_161 {dimension_numbers = #tpu.dot_dimension_numbers<[1], [0], [0], [1], [0, 0, 1, 1], [], []>} : vector<72x64xbf16>, vector<64x32xbf16>, vector<72x32xf32> -> vector<72x32xf32>
    %166 = arith.addf %161, %165 : vector<72x32xf32>
    %c2_162 = arith.constant 2 : index
    %c0_163 = arith.constant 0 : index
    %167 = vector.load %arg10[%c2_162, %c0_163] : memref<96x64xbf16, #tpu.memory_space<vmem>>, vector<72x64xbf16>
    %c2_164 = arith.constant 2 : index
    %c0_165 = arith.constant 0 : index
    %c0_166 = arith.constant 0 : index
    %168 = vector.load %arg6[%c2_164, %c0_165, %c0_166] : memref<9x64x32xbf16, #tpu.memory_space<vmem>>, vector<1x64x32xbf16>
    %169 = vector.shape_cast %168 : vector<1x64x32xbf16> to vector<64x32xbf16>
    %cst_167 = arith.constant dense<0.000000e+00> : vector<72x32xf32>
    %170 = tpu.matmul %167, %169, %cst_167 {dimension_numbers = #tpu.dot_dimension_numbers<[1], [0], [0], [1], [0, 0, 1, 1], [], []>} : vector<72x64xbf16>, vector<64x32xbf16>, vector<72x32xf32> -> vector<72x32xf32>
    %171 = arith.addf %166, %170 : vector<72x32xf32>
    %c10_168 = arith.constant 10 : index
    %c0_169 = arith.constant 0 : index
    %172 = vector.load %arg10[%c10_168, %c0_169] : memref<96x64xbf16, #tpu.memory_space<vmem>>, vector<72x64xbf16>
    %c3_170 = arith.constant 3 : index
    %c0_171 = arith.constant 0 : index
    %c0_172 = arith.constant 0 : index
    %173 = vector.load %arg6[%c3_170, %c0_171, %c0_172] : memref<9x64x32xbf16, #tpu.memory_space<vmem>>, vector<1x64x32xbf16>
    %174 = vector.shape_cast %173 : vector<1x64x32xbf16> to vector<64x32xbf16>
    %cst_173 = arith.constant dense<0.000000e+00> : vector<72x32xf32>
    %175 = tpu.matmul %172, %174, %cst_173 {dimension_numbers = #tpu.dot_dimension_numbers<[1], [0], [0], [1], [0, 0, 1, 1], [], []>} : vector<72x64xbf16>, vector<64x32xbf16>, vector<72x32xf32> -> vector<72x32xf32>
    %176 = arith.addf %171, %175 : vector<72x32xf32>
    %c11_174 = arith.constant 11 : index
    %c0_175 = arith.constant 0 : index
    %177 = vector.load %arg10[%c11_174, %c0_175] : memref<96x64xbf16, #tpu.memory_space<vmem>>, vector<72x64xbf16>
    %c4_176 = arith.constant 4 : index
    %c0_177 = arith.constant 0 : index
    %c0_178 = arith.constant 0 : index
    %178 = vector.load %arg6[%c4_176, %c0_177, %c0_178] : memref<9x64x32xbf16, #tpu.memory_space<vmem>>, vector<1x64x32xbf16>
    %179 = vector.shape_cast %178 : vector<1x64x32xbf16> to vector<64x32xbf16>
    %cst_179 = arith.constant dense<0.000000e+00> : vector<72x32xf32>
    %180 = tpu.matmul %177, %179, %cst_179 {dimension_numbers = #tpu.dot_dimension_numbers<[1], [0], [0], [1], [0, 0, 1, 1], [], []>} : vector<72x64xbf16>, vector<64x32xbf16>, vector<72x32xf32> -> vector<72x32xf32>
    %181 = arith.addf %176, %180 : vector<72x32xf32>
    %c12_180 = arith.constant 12 : index
    %c0_181 = arith.constant 0 : index
    %182 = vector.load %arg10[%c12_180, %c0_181] : memref<96x64xbf16, #tpu.memory_space<vmem>>, vector<72x64xbf16>
    %c5_182 = arith.constant 5 : index
    %c0_183 = arith.constant 0 : index
    %c0_184 = arith.constant 0 : index
    %183 = vector.load %arg6[%c5_182, %c0_183, %c0_184] : memref<9x64x32xbf16, #tpu.memory_space<vmem>>, vector<1x64x32xbf16>
    %184 = vector.shape_cast %183 : vector<1x64x32xbf16> to vector<64x32xbf16>
    %cst_185 = arith.constant dense<0.000000e+00> : vector<72x32xf32>
    %185 = tpu.matmul %182, %184, %cst_185 {dimension_numbers = #tpu.dot_dimension_numbers<[1], [0], [0], [1], [0, 0, 1, 1], [], []>} : vector<72x64xbf16>, vector<64x32xbf16>, vector<72x32xf32> -> vector<72x32xf32>
    %186 = arith.addf %181, %185 : vector<72x32xf32>
    %c20 = arith.constant 20 : index
    %c0_186 = arith.constant 0 : index
    %187 = vector.load %arg10[%c20, %c0_186] : memref<96x64xbf16, #tpu.memory_space<vmem>>, vector<72x64xbf16>
    %c6_187 = arith.constant 6 : index
    %c0_188 = arith.constant 0 : index
    %c0_189 = arith.constant 0 : index
    %188 = vector.load %arg6[%c6_187, %c0_188, %c0_189] : memref<9x64x32xbf16, #tpu.memory_space<vmem>>, vector<1x64x32xbf16>
    %189 = vector.shape_cast %188 : vector<1x64x32xbf16> to vector<64x32xbf16>
    %cst_190 = arith.constant dense<0.000000e+00> : vector<72x32xf32>
    %190 = tpu.matmul %187, %189, %cst_190 {dimension_numbers = #tpu.dot_dimension_numbers<[1], [0], [0], [1], [0, 0, 1, 1], [], []>} : vector<72x64xbf16>, vector<64x32xbf16>, vector<72x32xf32> -> vector<72x32xf32>
    %191 = arith.addf %186, %190 : vector<72x32xf32>
    %c21 = arith.constant 21 : index
    %c0_191 = arith.constant 0 : index
    %192 = vector.load %arg10[%c21, %c0_191] : memref<96x64xbf16, #tpu.memory_space<vmem>>, vector<72x64xbf16>
    %c7_192 = arith.constant 7 : index
    %c0_193 = arith.constant 0 : index
    %c0_194 = arith.constant 0 : index
    %193 = vector.load %arg6[%c7_192, %c0_193, %c0_194] : memref<9x64x32xbf16, #tpu.memory_space<vmem>>, vector<1x64x32xbf16>
    %194 = vector.shape_cast %193 : vector<1x64x32xbf16> to vector<64x32xbf16>
    %cst_195 = arith.constant dense<0.000000e+00> : vector<72x32xf32>
    %195 = tpu.matmul %192, %194, %cst_195 {dimension_numbers = #tpu.dot_dimension_numbers<[1], [0], [0], [1], [0, 0, 1, 1], [], []>} : vector<72x64xbf16>, vector<64x32xbf16>, vector<72x32xf32> -> vector<72x32xf32>
    %196 = arith.addf %191, %195 : vector<72x32xf32>
    %c22 = arith.constant 22 : index
    %c0_196 = arith.constant 0 : index
    %197 = vector.load %arg10[%c22, %c0_196] : memref<96x64xbf16, #tpu.memory_space<vmem>>, vector<72x64xbf16>
    %c8_197 = arith.constant 8 : index
    %c0_198 = arith.constant 0 : index
    %c0_199 = arith.constant 0 : index
    %198 = vector.load %arg6[%c8_197, %c0_198, %c0_199] : memref<9x64x32xbf16, #tpu.memory_space<vmem>>, vector<1x64x32xbf16>
    %199 = vector.shape_cast %198 : vector<1x64x32xbf16> to vector<64x32xbf16>
    %cst_200 = arith.constant dense<0.000000e+00> : vector<72x32xf32>
    %200 = tpu.matmul %197, %199, %cst_200 {dimension_numbers = #tpu.dot_dimension_numbers<[1], [0], [0], [1], [0, 0, 1, 1], [], []>} : vector<72x64xbf16>, vector<64x32xbf16>, vector<72x32xf32> -> vector<72x32xf32>
    %201 = arith.addf %196, %200 : vector<72x32xf32>
    %c0_201 = arith.constant 0 : index
    %c0_202 = arith.constant 0 : index
    %202 = vector.load %arg7[%c0_201, %c0_202] : memref<1x32xf32, #tpu.memory_space<vmem>>, vector<1x32xf32>
    %203 = vector.broadcast %202 : vector<1x32xf32> to vector<72x32xf32>
    %204 = arith.addf %201, %203 : vector<72x32xf32>
    %cst_203 = arith.constant 0.000000e+00 : f32
    %205 = vector.broadcast %cst_203 : f32 to vector<72x32xf32>
    %206 = arith.maximumf %204, %205 : vector<72x32xf32>
    %207 = arith.truncf %206 : vector<72x32xf32> to vector<72x32xbf16>
    %c0_204 = arith.constant 0 : index
    %c0_205 = arith.constant 0 : index
    %c0_206 = arith.constant 0 : index
    %208 = vector.load %arg8[%c0_204, %c0_205, %c0_206] : memref<1x72x32xbf16, #tpu.memory_space<vmem>>, vector<1x72x32xbf16>
    %209 = vector.shape_cast %208 : vector<1x72x32xbf16> to vector<72x32xbf16>
    %210 = vector.shape_cast %207 : vector<72x32xbf16> to vector<1x72x32xbf16>
    tpu.vector_store %arg8[%c0_204, %c0_205, %c0_206], %210 {strides = array<i32>} : memref<1x72x32xbf16, #tpu.memory_space<vmem>>, vector<1x72x32xbf16>,
    return
  }
  func.func @transform_0(%arg0: i32) -> (i32, i32, i32) {
    %c0_i32 = arith.constant 0 : i32
    %c0_i32_0 = arith.constant 0 : i32
    %c0_i32_1 = arith.constant 0 : i32
    return %c0_i32, %arg0, %c0_i32_0 : i32, i32, i32
  }
  func.func @transform_1(%arg0: i32) -> (i32, i32) {
    %c0_i32 = arith.constant 0 : i32
    %c0_i32_0 = arith.constant 0 : i32
    %c0_i32_1 = arith.constant 0 : i32
    return %c0_i32, %c0_i32_0 : i32, i32
  }
  func.func @transform_2(%arg0: i32) -> (i32, i32) {
    %c0_i32 = arith.constant 0 : i32
    %c0_i32_0 = arith.constant 0 : i32
    %c0_i32_1 = arith.constant 0 : i32
    return %c0_i32, %c0_i32_0 : i32, i32
  }
  func.func @transform_3(%arg0: i32) -> (i32, i32, i32) {
    %c0_i32 = arith.constant 0 : i32
    %c0_i32_0 = arith.constant 0 : i32
    %c0_i32_1 = arith.constant 0 : i32
    %c0_i32_2 = arith.constant 0 : i32
    return %c0_i32, %c0_i32_0, %c0_i32_1 : i32, i32, i32
  }
  func.func @transform_4(%arg0: i32) -> (i32, i32) {
    %c0_i32 = arith.constant 0 : i32
    %c0_i32_0 = arith.constant 0 : i32
    %c0_i32_1 = arith.constant 0 : i32
    return %c0_i32, %c0_i32_0 : i32, i32
  }
  func.func @transform_5(%arg0: i32) -> (i32, i32, i32) {
    %c0_i32 = arith.constant 0 : i32
    %c0_i32_0 = arith.constant 0 : i32
    %c0_i32_1 = arith.constant 0 : i32
    %c0_i32_2 = arith.constant 0 : i32
    return %c0_i32, %c0_i32_0, %c0_i32_1 : i32, i32, i32
  }
  func.func @transform_6(%arg0: i32) -> (i32, i32) {
    %c0_i32 = arith.constant 0 : i32
    %c0_i32_0 = arith.constant 0 : i32
    %c0_i32_1 = arith.constant 0 : i32
    return %c0_i32, %c0_i32_0 : i32, i32
  }
  func.func @transform_7(%arg0: i32) -> (i32, i32, i32) {
    %c0_i32 = arith.constant 0 : i32
    %c0_i32_0 = arith.constant 0 : i32
    %c0_i32_1 = arith.constant 0 : i32
    return %arg0, %c0_i32, %c0_i32_0 : i32, i32, i32
  }
}

module attributes {stable_mosaic.version = 11 : i64} {
  func.func @_head_kernel(%arg0: i32, %arg1: memref<8x1568xbf16, #tpu.memory_space<vmem>>, %arg2: memref<1568x512xbf16, #tpu.memory_space<vmem>>, %arg3: memref<1x512xf32, #tpu.memory_space<vmem>>, %arg4: memref<512x1xbf16, #tpu.memory_space<vmem>>, %arg5: memref<1x1xf32, #tpu.memory_space<vmem>>, %arg6: memref<8x512xf32, #tpu.memory_space<vmem>>, %arg7: memref<8x1xf32, #tpu.memory_space<vmem>>) attributes {dimension_semantics = [#tpu.dimension_semantics<parallel>], iteration_bounds = array<i64: 1>, scalar_prefetch = 0 : i64, scratch_operands = 0 : i64, tpu.core_type = #tpu.core_type<tc>, window_params = [{transform_indices = @transform_0, window_bounds = array<i64: 8, 1568>}, {pipeline_mode = #tpu.pipeline_mode<synchronous>, transform_indices = @transform_1, window_bounds = array<i64: 1568, 512>}, {pipeline_mode = #tpu.pipeline_mode<synchronous>, transform_indices = @transform_2, window_bounds = array<i64: 1, 512>}, {pipeline_mode = #tpu.pipeline_mode<synchronous>, transform_indices = @transform_3, window_bounds = array<i64: 512, 1>}, {pipeline_mode = #tpu.pipeline_mode<synchronous>, transform_indices = @transform_4, window_bounds = array<i64: 1, 1>}, {transform_indices = @transform_5, window_bounds = array<i64: 8, 512>}, {transform_indices = @transform_6, window_bounds = array<i64: 8, 1>}]} {
    %c0 = arith.constant 0 : index
    %c0_0 = arith.constant 0 : index
    %0 = vector.load %arg1[%c0, %c0_0] : memref<8x1568xbf16, #tpu.memory_space<vmem>>, vector<8x1568xbf16>
    %c0_1 = arith.constant 0 : index
    %c0_2 = arith.constant 0 : index
    %1 = vector.load %arg2[%c0_1, %c0_2] : memref<1568x512xbf16, #tpu.memory_space<vmem>>, vector<1568x512xbf16>
    %cst = arith.constant dense<0.000000e+00> : vector<8x512xf32>
    %2 = tpu.matmul %0, %1, %cst {dimension_numbers = #tpu.dot_dimension_numbers<[1], [0], [0], [1], [0, 0, 1, 1], [], []>} : vector<8x1568xbf16>, vector<1568x512xbf16>, vector<8x512xf32> -> vector<8x512xf32>
    %c0_3 = arith.constant 0 : index
    %c0_4 = arith.constant 0 : index
    %3 = vector.load %arg3[%c0_3, %c0_4] : memref<1x512xf32, #tpu.memory_space<vmem>>, vector<1x512xf32>
    %4 = vector.broadcast %3 : vector<1x512xf32> to vector<8x512xf32>
    %5 = arith.addf %2, %4 : vector<8x512xf32>
    %cst_5 = arith.constant 0.000000e+00 : f32
    %6 = vector.broadcast %cst_5 : f32 to vector<8x512xf32>
    %7 = arith.maximumf %5, %6 : vector<8x512xf32>
    %c0_6 = arith.constant 0 : index
    %c0_7 = arith.constant 0 : index
    %8 = vector.load %arg6[%c0_6, %c0_7] : memref<8x512xf32, #tpu.memory_space<vmem>>, vector<8x512xf32>
    tpu.vector_store %arg6[%c0_6, %c0_7], %7 {strides = array<i32>} : memref<8x512xf32, #tpu.memory_space<vmem>>, vector<8x512xf32>,
    %9 = arith.truncf %7 : vector<8x512xf32> to vector<8x512xbf16>
    %c0_8 = arith.constant 0 : index
    %c0_9 = arith.constant 0 : index
    %10 = vector.load %arg4[%c0_8, %c0_9] : memref<512x1xbf16, #tpu.memory_space<vmem>>, vector<512x1xbf16>
    %cst_10 = arith.constant dense<0.000000e+00> : vector<8x1xf32>
    %11 = tpu.matmul %9, %10, %cst_10 {dimension_numbers = #tpu.dot_dimension_numbers<[1], [0], [0], [1], [0, 0, 1, 1], [], []>} : vector<8x512xbf16>, vector<512x1xbf16>, vector<8x1xf32> -> vector<8x1xf32>
    %c0_11 = arith.constant 0 : index
    %c0_12 = arith.constant 0 : index
    %12 = vector.load %arg5[%c0_11, %c0_12] : memref<1x1xf32, #tpu.memory_space<vmem>>, vector<1x1xf32>
    %13 = vector.broadcast %12 : vector<1x1xf32> to vector<8x1xf32>
    %14 = arith.addf %11, %13 : vector<8x1xf32>
    %c0_13 = arith.constant 0 : index
    %c0_14 = arith.constant 0 : index
    %15 = vector.load %arg7[%c0_13, %c0_14] : memref<8x1xf32, #tpu.memory_space<vmem>>, vector<8x1xf32>
    tpu.vector_store %arg7[%c0_13, %c0_14], %14 {strides = array<i32>} : memref<8x1xf32, #tpu.memory_space<vmem>>, vector<8x1xf32>,
    return
  }
  func.func @transform_0(%arg0: i32) -> (i32, i32) {
    %c0_i32 = arith.constant 0 : i32
    %c0_i32_0 = arith.constant 0 : i32
    return %arg0, %c0_i32 : i32, i32
  }
  func.func @transform_1(%arg0: i32) -> (i32, i32) {
    %c0_i32 = arith.constant 0 : i32
    %c0_i32_0 = arith.constant 0 : i32
    %c0_i32_1 = arith.constant 0 : i32
    return %c0_i32, %c0_i32_0 : i32, i32
  }
  func.func @transform_2(%arg0: i32) -> (i32, i32) {
    %c0_i32 = arith.constant 0 : i32
    %c0_i32_0 = arith.constant 0 : i32
    %c0_i32_1 = arith.constant 0 : i32
    return %c0_i32, %c0_i32_0 : i32, i32
  }
  func.func @transform_3(%arg0: i32) -> (i32, i32) {
    %c0_i32 = arith.constant 0 : i32
    %c0_i32_0 = arith.constant 0 : i32
    %c0_i32_1 = arith.constant 0 : i32
    return %c0_i32, %c0_i32_0 : i32, i32
  }
  func.func @transform_4(%arg0: i32) -> (i32, i32) {
    %c0_i32 = arith.constant 0 : i32
    %c0_i32_0 = arith.constant 0 : i32
    %c0_i32_1 = arith.constant 0 : i32
    return %c0_i32, %c0_i32_0 : i32, i32
  }
  func.func @transform_5(%arg0: i32) -> (i32, i32) {
    %c0_i32 = arith.constant 0 : i32
    %c0_i32_0 = arith.constant 0 : i32
    return %arg0, %c0_i32 : i32, i32
  }
  func.func @transform_6(%arg0: i32) -> (i32, i32) {
    %c0_i32 = arith.constant 0 : i32
    %c0_i32_0 = arith.constant 0 : i32
    return %arg0, %c0_i32 : i32, i32
  }
}

</mosaic_0001>

<bundles_post_ra>
// kernel: cnn_base_forward.3
= control target key start
LH: loop header
LB: loop body
LE: loop exit
PB: predicated region body
PF: predicated region fallthrough
CT: control target
= control target key end

     0   :  { %vm2451_vm0 = vcmask 261120   ;;  %vm3384_vm1 = vcmask 7168   ;;  %s5944_s1 = inlined_call_operand.vmem [shape: bf16[1568,512], index: 1, kind: input, shape index: {}]   ;;  %s5945_s0 = inlined_call_operand.vmem [shape: bf16[8,1568], index: 0, kind: input, shape index: {}]   ;;  %s5946_s3 = inlined_call_operand.vmem [shape: bf16[512,1], index: 3, kind: input, shape index: {}]   ;;  %s5947_s2 = inlined_call_operand.vmem [shape: f32[1,512], index: 2, kind: input, shape index: {}]   ;;  %s5948_s5 = inlined_call_operand.vmem [shape: f32[8,512], index: 5, kind: output, shape index: {0}]   ;;  %s5949_s4 = inlined_call_operand.<no memory space> [shape: f32[1,1], index: 4, kind: input, shape index: {}]   ;;  %s5950_s6 = inlined_call_operand.vmem [shape: f32[8,1], index: 6, kind: output, shape index: {1}]  }
   0x1   :  { %v3931_v0 = vld [vmem:[%s5944_s1 + $0x4] ss:$16 sps:$4 sm:$0xff]   ;;  %v3933_v1 = vld [vmem:[%s5944_s1 + $0xc] ss:$16 sps:$4 sm:$0xff]   ;;  %v3935_v2 = vld [vmem:[%s5944_s1] ss:$16 sps:$4 sm:$0xff]  }
   0x2   :  { %2455 = vmatprep.subr.bf16.mxu0 %v3931_v0  ;;  %v3936_v3 = vld [vmem:[%s5944_s1 + $0x8] ss:$16 sps:$4 sm:$0xff]   ;;  %2742 = vmatprep.subr.bf16.mxu1 %v3933_v1  ;;  %v3937_v4 = vld [vmem:[%s5944_s1 + $0x24] ss:$16 sps:$4 sm:$0xff]   ;;  %v3939_v5 = vld [vmem:[%s5944_s1 + $0x2c] ss:$16 sps:$4 sm:$0xff]  }
   0x3   :  { %2456 = vmatpush1.bf16.msra.mxu0 %v3935_v2  ;;  %2743 = vmatpush1.bf16.msra.mxu1 %v3936_v3  ;;  %v3941_v6 = vld [vmem:[%s5944_s1 + $0x20] ss:$16 sps:$4 sm:$0xff]   ;;  %v3942_v7 = vld [vmem:[%s5944_s1 + $0x28] ss:$16 sps:$4 sm:$0xff]   ;;  %v3943_v8 = vld [vmem:[%s5944_s1 + $0x44] ss:$16 sps:$4 sm:$0xff]  }
   0x4   :  { %2457 = vmatprep.subr.bf16.mxu0 %v3937_v4  ;;  %2744 = vmatprep.subr.bf16.mxu1 %v3939_v5  ;;  %v3945_v9 = vld [vmem:[%s5944_s1 + $0x4c] ss:$16 sps:$4 sm:$0xff]   ;;  %v3947_v10 = vld [vmem:[%s5944_s1 + $0x40] ss:$16 sps:$4 sm:$0xff]   ;;  %v3948_v11 = vld [vmem:[%s5944_s1 + $0x48] ss:$16 sps:$4 sm:$0xff]  }
   0x5   :  { %v3949_v12 = vld [vmem:[%s5944_s1 + $0x64] ss:$16 sps:$4 sm:$0xff]   ;;  %v3951_v13 = vld [vmem:[%s5944_s1 + $0x6c] ss:$16 sps:$4 sm:$0xff]   ;;  %v3953_v14 = vld [vmem:[%s5944_s1 + $0x60] ss:$16 sps:$4 sm:$0xff]  }
   0x6   :  { %v3954_v15 = vld [vmem:[%s5944_s1 + $0x68] ss:$16 sps:$4 sm:$0xff]   ;;  %v3955_v16 = vld [vmem:[%s5944_s1 + $0x84] ss:$16 sps:$4 sm:$0xff]   ;;  %v3957_v17 = vld [vmem:[%s5944_s1 + $0x8c] ss:$16 sps:$4 sm:$0xff]  }
   0x7   :  { %2458 = vmatpush1.bf16.msra.mxu0 %v3941_v6  ;;  %2745 = vmatpush1.bf16.msra.mxu1 %v3942_v7  ;;  %v3959_v18 = vld [vmem:[%s5944_s1 + $0x80] ss:$16 sps:$4 sm:$0xff]   ;;  %v3960_v19 = vld [vmem:[%s5944_s1 + $0x88] ss:$16 sps:$4 sm:$0xff]   ;;  %v3961_v20 = vld [vmem:[%s5944_s1 + $0xa4] ss:$16 sps:$4 sm:$0xff]  }
   0x8   :  { %2459 = vmatprep.subr.bf16.mxu0 %v3943_v8  ;;  %2746 = vmatprep.subr.bf16.mxu1 %v3945_v9  ;;  %v3963_v21 = vld [vmem:[%s5944_s1 + $0xac] ss:$16 sps:$4 sm:$0xff]   ;;  %v3965_v22 = vld [vmem:[%s5944_s1 + $0xa0] ss:$16 sps:$4 sm:$0xff]   ;;  %v3966_v23 = vld [vmem:[%s5944_s1 + $0xa8] ss:$16 sps:$4 sm:$0xff]  }
   0x9   :  { %v3967_v24 = vld [vmem:[%s5944_s1 + $0xc4] ss:$16 sps:$4 sm:$0xff]   ;;  %v3969_v25 = vld [vmem:[%s5944_s1 + $0xcc] ss:$16 sps:$4 sm:$0xff]   ;;  %v3971_v26 = vld [vmem:[%s5944_s1 + $0xc0] ss:$16 sps:$4 sm:$0xff]  }
   0xa   :  { %v3972_v27 = vld [vmem:[%s5944_s1 + $0xc8] ss:$16 sps:$4 sm:$0xff]   ;;  %v3973_v28 = vld [vmem:[%s5944_s1 + $0xe4] ss:$16 sps:$4 sm:$0xff]   ;;  %v3975_v29 = vld [vmem:[%s5944_s1 + $0xec] ss:$16 sps:$4 sm:$0xff]  }
   0xb   :  { %2460 = vmatpush1.bf16.msra.mxu0 %v3947_v10  ;;  %2747 = vmatpush1.bf16.msra.mxu1 %v3948_v11  ;;  %v3977_v30 = vld [vmem:[%s5944_s1 + $0xe0] ss:$16 sps:$4 sm:$0xff]   ;;  %v3978_v31 = vld [vmem:[%s5944_s1 + $0xe8] ss:$16 sps:$4 sm:$0xff]   ;;  %v3979_v32 = vld [vmem:[%s5944_s1 + $0x104] ss:$16 sps:$4 sm:$0xff]  }
   0xc   :  { %2461 = vmatprep.subr.bf16.mxu0 %v3949_v12  ;;  %2748 = vmatprep.subr.bf16.mxu1 %v3951_v13  ;;  %v3981_v33 = vld [vmem:[%s5944_s1 + $0x10c] ss:$16 sps:$4 sm:$0xff]   ;;  %v3983_v34 = vld [vmem:[%s5944_s1 + $0x100] ss:$16 sps:$4 sm:$0xff]   ;;  %v3984_v35 = vld [vmem:[%s5944_s1 + $0x108] ss:$16 sps:$4 sm:$0xff]  }
   0xd   :  { %v3985_v36 = vld [vmem:[%s5944_s1 + $0x124] ss:$16 sps:$4 sm:$0xff]   ;;  %v3987_v37 = vld [vmem:[%s5944_s1 + $0x12c] ss:$16 sps:$4 sm:$0xff]   ;;  %v3989_v38 = vld [vmem:[%s5944_s1 + $0x120] ss:$16 sps:$4 sm:$0xff]  }
   0xe   :  { %v3990_v39 = vld [vmem:[%s5944_s1 + $0x128] ss:$16 sps:$4 sm:$0xff]   ;;  %v3991_v40 = vld [vmem:[%s5944_s1 + $0x144] ss:$16 sps:$4 sm:$0xff]   ;;  %v3993_v41 = vld [vmem:[%s5944_s1 + $0x14c] ss:$16 sps:$4 sm:$0xff]  }
   0xf   :  { %2462 = vmatpush1.bf16.msra.mxu0 %v3953_v14  ;;  %2749 = vmatpush1.bf16.msra.mxu1 %v3954_v15  ;;  %v3995_v42 = vld [vmem:[%s5944_s1 + $0x140] ss:$16 sps:$4 sm:$0xff]   ;;  %v3996_v43 = vld [vmem:[%s5944_s1 + $0x148] ss:$16 sps:$4 sm:$0xff]   ;;  %v3997_v44 = vld [vmem:[%s5944_s1 + $0x164] ss:$16 sps:$4 sm:$0xff]  }
  0x10   :  { %2463 = vmatprep.subr.bf16.mxu0 %v3955_v16  ;;  %2750 = vmatprep.subr.bf16.mxu1 %v3957_v17  ;;  %v3999_v45 = vld [vmem:[%s5944_s1 + $0x16c] ss:$16 sps:$4 sm:$0xff]   ;;  %v25_v46 = vld [vmem:[%s5945_s0] sm:$0xff]  ;;  %v4002_v49 = vld [vmem:[%s5944_s1 + $0x168] ss:$16 sps:$4 sm:$0xff]  }
  0x11   :  { %v4001_v47 = vld [vmem:[%s5944_s1 + $0x160] ss:$16 sps:$4 sm:$0xff]   ;;  %v3395_v48 = vcombine.high %v25_v46, %v25_v46  ;;  %v4003_v50 = vld [vmem:[%s5944_s1 + $0x184] ss:$16 sps:$4 sm:$0xff]   ;;  %v4005_v51 = vld [vmem:[%s5944_s1 + $0x18c] ss:$16 sps:$4 sm:$0xff]   ;;  %v3394_v4 = vcombine.low %v25_v46, %v25_v46 }
  0x12   :  { %v4007_v52 = vld [vmem:[%s5944_s1 + $0x180] ss:$16 sps:$4 sm:$0xff]   ;;  %v4008_v53 = vld [vmem:[%s5944_s1 + $0x188] ss:$16 sps:$4 sm:$0xff]   ;;  %v4009_v54 = vld [vmem:[%s5944_s1 + $0x1a4] ss:$16 sps:$4 sm:$0xff]  }
  0x13   :  { %2464 = vmatpush1.bf16.msra.mxu0 %v3959_v18  ;;  %2751 = vmatpush1.bf16.msra.mxu1 %v3960_v19  ;;  %v4011_v55 = vld [vmem:[%s5944_s1 + $0x1ac] ss:$16 sps:$4 sm:$0xff]   ;;  %v4013_v56 = vld [vmem:[%s5944_s1 + $0x1a0] ss:$16 sps:$4 sm:$0xff]   ;;  %v4014_v57 = vld [vmem:[%s5944_s1 + $0x1a8] ss:$16 sps:$4 sm:$0xff]  }
  0x14   :  { %2465 = vmatprep.subr.bf16.mxu0 %v3961_v20  ;;  %2752 = vmatprep.subr.bf16.mxu1 %v3963_v21  ;;  %v4015_v58 = vld [vmem:[%s5944_s1 + $0x1c4] ss:$16 sps:$4 sm:$0xff]   ;;  %v4017_v59 = vld [vmem:[%s5944_s1 + $0x1cc] ss:$16 sps:$4 sm:$0xff]   ;;  %v4019_v60 = vld [vmem:[%s5944_s1 + $0x1c0] ss:$16 sps:$4 sm:$0xff]  }
  0x15   :  { %2487 = vmatprep.mubr.bf16.mxu0 %v3395_v48  ;;  %2774 = vmatprep.mubr.bf16.mxu1 %v3395_v48  ;;  %v4020_v61 = vld [vmem:[%s5944_s1 + $0x1c8] ss:$16 sps:$4 sm:$0xff]   ;;  %v4021_v62 = vld [vmem:[%s5944_s1 + $0x1e4] ss:$16 sps:$4 sm:$0xff]   ;;  %v4023_v63 = vld [vmem:[%s5944_s1 + $0x1ec] ss:$16 sps:$4 sm:$0xff]  }
  0x16   :  { %v4025_v0 = vld [vmem:[%s5944_s1 + $0x1e0] ss:$16 sps:$4 sm:$0xff]   ;;  %v4026_v1 = vld [vmem:[%s5944_s1 + $0x1e8] ss:$16 sps:$4 sm:$0xff]   ;;  %v4031_v2 = vld [vmem:[%s5944_s1 + $0x204] ss:$16 sps:$4 sm:$0xff]  }
  0x17   :  { %2466 = vmatpush1.bf16.msra.mxu0 %v3965_v22  ;;  %2753 = vmatpush1.bf16.msra.mxu1 %v3966_v23  ;;  %v4034_v3 = vld [vmem:[%s5944_s1 + $0x20c] ss:$16 sps:$4 sm:$0xff]   ;;  %v4029_v5 = vld [vmem:[%s5944_s1 + $0x200] ss:$16 sps:$4 sm:$0xff]   ;;  %v4032_v6 = vld [vmem:[%s5944_s1 + $0x208] ss:$16 sps:$4 sm:$0xff]  }
  0x18   :  { %2467 = vmatprep.subr.bf16.mxu0 %v3967_v24  ;;  %2754 = vmatprep.subr.bf16.mxu1 %v3969_v25  ;;  %v4037_v7 = vld [vmem:[%s5944_s1 + $0x224] ss:$16 sps:$4 sm:$0xff]   ;;  %v4040_v8 = vld [vmem:[%s5944_s1 + $0x22c] ss:$16 sps:$4 sm:$0xff]   ;;  %v4035_v9 = vld [vmem:[%s5944_s1 + $0x220] ss:$16 sps:$4 sm:$0xff]  }
  0x19   :  { %v4038_v10 = vld [vmem:[%s5944_s1 + $0x228] ss:$16 sps:$4 sm:$0xff]   ;;  %v4043_v11 = vld [vmem:[%s5944_s1 + $0x244] ss:$16 sps:$4 sm:$0xff]   ;;  %v4046_v12 = vld [vmem:[%s5944_s1 + $0x24c] ss:$16 sps:$4 sm:$0xff]  }
  0x1a   :  { %v4041_v13 = vld [vmem:[%s5944_s1 + $0x240] ss:$16 sps:$4 sm:$0xff]   ;;  %v4044_v14 = vld [vmem:[%s5944_s1 + $0x248] ss:$16 sps:$4 sm:$0xff]   ;;  %v4049_v15 = vld [vmem:[%s5944_s1 + $0x264] ss:$16 sps:$4 sm:$0xff]  }
  0x1b   :  { %2468 = vmatpush1.bf16.msra.mxu0 %v3971_v26  ;;  %2755 = vmatpush1.bf16.msra.mxu1 %v3972_v27  ;;  %v4052_v16 = vld [vmem:[%s5944_s1 + $0x26c] ss:$16 sps:$4 sm:$0xff]   ;;  %v4047_v17 = vld [vmem:[%s5944_s1 + $0x260] ss:$16 sps:$4 sm:$0xff]   ;;  %v4050_v18 = vld [vmem:[%s5944_s1 + $0x268] ss:$16 sps:$4 sm:$0xff]  }
  0x1c   :  { %2469 = vmatprep.subr.bf16.mxu0 %v3973_v28  ;;  %2756 = vmatprep.subr.bf16.mxu1 %v3975_v29  ;;  %v4055_v19 = vld [vmem:[%s5944_s1 + $0x284] ss:$16 sps:$4 sm:$0xff]   ;;  %v4058_v20 = vld [vmem:[%s5944_s1 + $0x28c] ss:$16 sps:$4 sm:$0xff]   ;;  %v4053_v21 = vld [vmem:[%s5944_s1 + $0x280] ss:$16 sps:$4 sm:$0xff]  }
  0x1d   :  { %v4056_v22 = vld [vmem:[%s5944_s1 + $0x288] ss:$16 sps:$4 sm:$0xff]   ;;  %v4061_v23 = vld [vmem:[%s5944_s1 + $0x2a4] ss:$16 sps:$4 sm:$0xff]   ;;  %v4064_v24 = vld [vmem:[%s5944_s1 + $0x2ac] ss:$16 sps:$4 sm:$0xff]  }
  0x1e   :  { %v4059_v25 = vld [vmem:[%s5944_s1 + $0x2a0] ss:$16 sps:$4 sm:$0xff]   ;;  %v4062_v26 = vld [vmem:[%s5944_s1 + $0x2a8] ss:$16 sps:$4 sm:$0xff]   ;;  %v4067_v27 = vld [vmem:[%s5944_s1 + $0x2c4] ss:$16 sps:$4 sm:$0xff]  }
  0x1f   :  { %2470 = vmatpush1.bf16.msra.mxu0 %v3977_v30  ;;  %2757 = vmatpush1.bf16.msra.mxu1 %v3978_v31  ;;  %v4070_v28 = vld [vmem:[%s5944_s1 + $0x2cc] ss:$16 sps:$4 sm:$0xff]   ;;  %v4065_v31 = vld [vmem:[%s5944_s1 + $0x2c0] ss:$16 sps:$4 sm:$0xff]   ;;  %v4092_v48 = vld [vmem:[%s5944_s1 + $0x348] ss:$16 sps:$4 sm:$0xff]  }
  0x20   :  { %2471 = vmatprep.subr.bf16.mxu0 %v3979_v32  ;;  %2758 = vmatprep.subr.bf16.mxu1 %v3981_v33  ;;  %v4876_v29 = vld [vmem:[%s5945_s0 + $0x8] sm:$0xff]  ;;  %v4073_v33 = vld [vmem:[%s5944_s1 + $0x2e4] ss:$16 sps:$4 sm:$0xff]  }
  0x21   :  { %v3397_v30 = vcombine.high %v4876_v29, %v4876_v29  ;;  %v4068_v32 = vld [vmem:[%s5944_s1 + $0x2c8] ss:$16 sps:$4 sm:$0xff]   ;;  %v4094_v46 = vld [vmem:[%s5944_s1 + $0x34c] ss:$16 sps:$4 sm:$0xff]  }
  0x23   :  { %2472 = vmatpush1.bf16.msra.mxu0 %v3983_v34  ;;  %2759 = vmatpush1.bf16.msra.mxu1 %v3984_v35  ;;  %v4076_v34 = vld [vmem:[%s5944_s1 + $0x2ec] ss:$16 sps:$4 sm:$0xff]   ;;  %v4071_v35 = vld [vmem:[%s5944_s1 + $0x2e0] ss:$16 sps:$4 sm:$0xff]  }
  0x24   :  { %2473 = vmatprep.subr.bf16.mxu0 %v3985_v36  ;;  %2760 = vmatprep.subr.bf16.mxu1 %v3987_v37  ;;  %v4074_v36 = vld [vmem:[%s5944_s1 + $0x2e8] ss:$16 sps:$4 sm:$0xff]   ;;  %v4079_v37 = vld [vmem:[%s5944_s1 + $0x304] ss:$16 sps:$4 sm:$0xff]  }
  0x27   :  { %2474 = vmatpush1.bf16.msra.mxu0 %v3989_v38  ;;  %2761 = vmatpush1.bf16.msra.mxu1 %v3990_v39  ;;  %v4082_v38 = vld [vmem:[%s5944_s1 + $0x30c] ss:$16 sps:$4 sm:$0xff]   ;;  %v4077_v39 = vld [vmem:[%s5944_s1 + $0x300] ss:$16 sps:$4 sm:$0xff]  }
  0x28   :  { %2475 = vmatprep.subr.bf16.mxu0 %v3991_v40  ;;  %2762 = vmatprep.subr.bf16.mxu1 %v3993_v41  ;;  %v4080_v40 = vld [vmem:[%s5944_s1 + $0x308] ss:$16 sps:$4 sm:$0xff]   ;;  %v4085_v41 = vld [vmem:[%s5944_s1 + $0x324] ss:$16 sps:$4 sm:$0xff]  }
  0x2b   :  { %2476 = vmatpush1.bf16.msra.mxu0 %v3995_v42  ;;  %2763 = vmatpush1.bf16.msra.mxu1 %v3996_v43  ;;  %v4088_v42 = vld [vmem:[%s5944_s1 + $0x32c] ss:$16 sps:$4 sm:$0xff]   ;;  %v4083_v43 = vld [vmem:[%s5944_s1 + $0x320] ss:$16 sps:$4 sm:$0xff]  }
  0x2c   :  { %2477 = vmatprep.subr.bf16.mxu0 %v3997_v44  ;;  %2764 = vmatprep.subr.bf16.mxu1 %v3999_v45  ;;  %v4086_v44 = vld [vmem:[%s5944_s1 + $0x328] ss:$16 sps:$4 sm:$0xff]   ;;  %v4091_v45 = vld [vmem:[%s5944_s1 + $0x344] ss:$16 sps:$4 sm:$0xff]  }
  0x2f   :  { %2478 = vmatpush1.bf16.msra.mxu0 %v4001_v47  ;;  %2765 = vmatpush1.bf16.msra.mxu1 %v4002_v49  ;;  %v4089_v47 = vld [vmem:[%s5944_s1 + $0x340] ss:$16 sps:$4 sm:$0xff]   ;;  %v4097_v49 = vld [vmem:[%s5944_s1 + $0x364] ss:$16 sps:$4 sm:$0xff]  }
  0x30   :  { %2479 = vmatprep.subr.bf16.mxu0 %v4003_v50  ;;  %2766 = vmatprep.subr.bf16.mxu1 %v4005_v51  ;;  %v4100_v50 = vld [vmem:[%s5944_s1 + $0x36c] ss:$16 sps:$4 sm:$0xff]   ;;  %v4095_v51 = vld [vmem:[%s5944_s1 + $0x360] ss:$16 sps:$4 sm:$0xff]  }
  0x33   :  { %2480 = vmatpush1.bf16.msra.mxu0 %v4007_v52  ;;  %2767 = vmatpush1.bf16.msra.mxu1 %v4008_v53  ;;  %v4098_v52 = vld [vmem:[%s5944_s1 + $0x368] ss:$16 sps:$4 sm:$0xff]   ;;  %v4103_v53 = vld [vmem:[%s5944_s1 + $0x384] ss:$16 sps:$4 sm:$0xff]  }
  0x34   :  { %2481 = vmatprep.subr.bf16.mxu0 %v4009_v54  ;;  %2768 = vmatprep.subr.bf16.mxu1 %v4011_v55  ;;  %v4106_v54 = vld [vmem:[%s5944_s1 + $0x38c] ss:$16 sps:$4 sm:$0xff]   ;;  %v4101_v55 = vld [vmem:[%s5944_s1 + $0x380] ss:$16 sps:$4 sm:$0xff]  }
  0x37   :  { %2482 = vmatpush1.bf16.msra.mxu0 %v4013_v56  ;;  %2769 = vmatpush1.bf16.msra.mxu1 %v4014_v57  ;;  %v4104_v56 = vld [vmem:[%s5944_s1 + $0x388] ss:$16 sps:$4 sm:$0xff]   ;;  %v4109_v57 = vld [vmem:[%s5944_s1 + $0x3a4] ss:$16 sps:$4 sm:$0xff]  }
  0x38   :  { %2483 = vmatprep.subr.bf16.mxu0 %v4015_v58  ;;  %2770 = vmatprep.subr.bf16.mxu1 %v4017_v59  ;;  %v4112_v58 = vld [vmem:[%s5944_s1 + $0x3ac] ss:$16 sps:$4 sm:$0xff]   ;;  %v4107_v59 = vld [vmem:[%s5944_s1 + $0x3a0] ss:$16 sps:$4 sm:$0xff]  }
  0x3b   :  { %2484 = vmatpush1.bf16.msra.mxu0 %v4019_v60  ;;  %2771 = vmatpush1.bf16.msra.mxu1 %v4020_v61  ;;  %v4110_v60 = vld [vmem:[%s5944_s1 + $0x3a8] ss:$16 sps:$4 sm:$0xff]   ;;  %v4115_v61 = vld [vmem:[%s5944_s1 + $0x3c4] ss:$16 sps:$4 sm:$0xff]  }
  0x3c   :  { %2485 = vmatprep.subr.bf16.mxu0 %v4021_v62  ;;  %2772 = vmatprep.subr.bf16.mxu1 %v4023_v63  ;;  %v4118_v62 = vld [vmem:[%s5944_s1 + $0x3cc] ss:$16 sps:$4 sm:$0xff]   ;;  %v4113_v63 = vld [vmem:[%s5944_s1 + $0x3c0] ss:$16 sps:$4 sm:$0xff]  }
  0x3f   :  { %2486 = vmatpush1.bf16.msra.mxu0 %v4025_v0  ;;  %2773 = vmatpush1.bf16.msra.mxu1 %v4026_v1  ;;  %v4116_v0 = vld [vmem:[%s5944_s1 + $0x3c8] ss:$16 sps:$4 sm:$0xff]   ;;  %v4121_v1 = vld [vmem:[%s5944_s1 + $0x3e4] ss:$16 sps:$4 sm:$0xff]  }
  0x40   :  { %2496 = vmatprep.subr.bf16.mxu0 %v4031_v2  ;;  %2783 = vmatprep.subr.bf16.mxu1 %v4034_v3  ;;  %v4124_v2 = vld [vmem:[%s5944_s1 + $0x3ec] ss:$16 sps:$4 sm:$0xff]   ;;  %v4119_v3 = vld [vmem:[%s5944_s1 + $0x3e0] ss:$16 sps:$4 sm:$0xff]  }
  0x42   :  { %2488 = vmatmul.mubr.bf16.vlgmr.msra.gmra.mrb[0].mxu0 %v3394_v4  ;;  %2775 = vmatmul.mubr.bf16.vlgmr.msra.gmra.mrb[0].mxu1 %v3394_v4  ;;  %v4122_v4 = vld [vmem:[%s5944_s1 + $0x3e8] ss:$16 sps:$4 sm:$0xff]  }
  0x43   :  { %2497 = vmatpush1.bf16.msra.mxu0 %v4029_v5  ;;  %2784 = vmatpush1.bf16.msra.mxu1 %v4032_v6  ;;  %v4129_v5 = vld [vmem:[%s5944_s1 + $0x404] ss:$16 sps:$4 sm:$0xff]   ;;  %v4132_v6 = vld [vmem:[%s5944_s1 + $0x40c] ss:$16 sps:$4 sm:$0xff]  }
  0x44   :  { %2498 = vmatprep.subr.bf16.mxu0 %v4037_v7  ;;  %2785 = vmatprep.subr.bf16.mxu1 %v4040_v8  ;;  %v3396_v7 = vcombine.low %v4876_v29, %v4876_v29  ;;  %v4127_v8 = vld [vmem:[%s5944_s1 + $0x400] ss:$16 sps:$4 sm:$0xff]   ;;  %v4162_v29 = vld [vmem:[%s5944_s1 + $0x4ac] ss:$16 sps:$4 sm:$0xff]  }
  0x45   :  { %2528 = vmatprep.mubr.bf16.mxu0 %v3397_v30  ;;  %2815 = vmatprep.mubr.bf16.mxu1 %v3397_v30  ;;  %v4157_v30 = vld [vmem:[%s5944_s1 + $0x4a0] ss:$16 sps:$4 sm:$0xff]  }
  0x47   :  { %2499 = vmatpush1.bf16.msra.mxu0 %v4035_v9  ;;  %2786 = vmatpush1.bf16.msra.mxu1 %v4038_v10  ;;  %v4130_v9 = vld [vmem:[%s5944_s1 + $0x408] ss:$16 sps:$4 sm:$0xff]   ;;  %v4135_v10 = vld [vmem:[%s5944_s1 + $0x424] ss:$16 sps:$4 sm:$0xff]  }
  0x48   :  { %2500 = vmatprep.subr.bf16.mxu0 %v4043_v11  ;;  %2787 = vmatprep.subr.bf16.mxu1 %v4046_v12  ;;  %v5014_v11 = vld [vmem:[%s5945_s0 + $0x10] sm:$0xff]  ;;  %v4138_v12 = vld [vmem:[%s5944_s1 + $0x42c] ss:$16 sps:$4 sm:$0xff]  }
  0x4b   :  { %2501 = vmatpush1.bf16.msra.mxu0 %v4041_v13  ;;  %2788 = vmatpush1.bf16.msra.mxu1 %v4044_v14  ;;  %v3399_v13 = vcombine.high %v5014_v11, %v5014_v11  ;;  %v4133_v14 = vld [vmem:[%s5944_s1 + $0x420] ss:$16 sps:$4 sm:$0xff]  }
  0x4c   :  { %2502 = vmatprep.subr.bf16.mxu0 %v4049_v15  ;;  %2789 = vmatprep.subr.bf16.mxu1 %v4052_v16  ;;  %v4136_v15 = vld [vmem:[%s5944_s1 + $0x428] ss:$16 sps:$4 sm:$0xff]   ;;  %v4141_v16 = vld [vmem:[%s5944_s1 + $0x444] ss:$16 sps:$4 sm:$0xff]  }
  0x4f   :  { %2503 = vmatpush1.bf16.msra.mxu0 %v4047_v17  ;;  %2790 = vmatpush1.bf16.msra.mxu1 %v4050_v18  ;;  %v4144_v17 = vld [vmem:[%s5944_s1 + $0x44c] ss:$16 sps:$4 sm:$0xff]   ;;  %v4139_v18 = vld [vmem:[%s5944_s1 + $0x440] ss:$16 sps:$4 sm:$0xff]  }
  0x50   :  { %2504 = vmatprep.subr.bf16.mxu0 %v4055_v19  ;;  %2791 = vmatprep.subr.bf16.mxu1 %v4058_v20  ;;  %v4142_v19 = vld [vmem:[%s5944_s1 + $0x448] ss:$16 sps:$4 sm:$0xff]   ;;  %v4147_v20 = vld [vmem:[%s5944_s1 + $0x464] ss:$16 sps:$4 sm:$0xff]  }
  0x53   :  { %2505 = vmatpush1.bf16.msra.mxu0 %v4053_v21  ;;  %2792 = vmatpush1.bf16.msra.mxu1 %v4056_v22  ;;  %v4150_v21 = vld [vmem:[%s5944_s1 + $0x46c] ss:$16 sps:$4 sm:$0xff]   ;;  %v4145_v22 = vld [vmem:[%s5944_s1 + $0x460] ss:$16 sps:$4 sm:$0xff]  }
  0x54   :  { %2506 = vmatprep.subr.bf16.mxu0 %v4061_v23  ;;  %2793 = vmatprep.subr.bf16.mxu1 %v4064_v24  ;;  %v4148_v23 = vld [vmem:[%s5944_s1 + $0x468] ss:$16 sps:$4 sm:$0xff]   ;;  %v4153_v24 = vld [vmem:[%s5944_s1 + $0x484] ss:$16 sps:$4 sm:$0xff]  }
  0x57   :  { %2507 = vmatpush1.bf16.msra.mxu0 %v4059_v25  ;;  %2794 = vmatpush1.bf16.msra.mxu1 %v4062_v26  ;;  %v4156_v25 = vld [vmem:[%s5944_s1 + $0x48c] ss:$16 sps:$4 sm:$0xff]   ;;  %v4151_v26 = vld [vmem:[%s5944_s1 + $0x480] ss:$16 sps:$4 sm:$0xff]  }
  0x58   :  { %2508 = vmatprep.subr.bf16.mxu0 %v4067_v27  ;;  %2795 = vmatprep.subr.bf16.mxu1 %v4070_v28  ;;  %v4154_v27 = vld [vmem:[%s5944_s1 + $0x488] ss:$16 sps:$4 sm:$0xff]   ;;  %v4159_v28 = vld [vmem:[%s5944_s1 + $0x4a4] ss:$16 sps:$4 sm:$0xff]  }
  0x5b   :  { %2509 = vmatpush1.bf16.msra.mxu0 %v4065_v31  ;;  %2796 = vmatpush1.bf16.msra.mxu1 %v4068_v32  ;;  %v4160_v31 = vld [vmem:[%s5944_s1 + $0x4a8] ss:$16 sps:$4 sm:$0xff]   ;;  %v4165_v32 = vld [vmem:[%s5944_s1 + $0x4c4] ss:$16 sps:$4 sm:$0xff]  }
  0x5c   :  { %2510 = vmatprep.subr.bf16.mxu0 %v4073_v33  ;;  %2797 = vmatprep.subr.bf16.mxu1 %v4076_v34  ;;  %v4168_v33 = vld [vmem:[%s5944_s1 + $0x4cc] ss:$16 sps:$4 sm:$0xff]   ;;  %v4163_v34 = vld [vmem:[%s5944_s1 + $0x4c0] ss:$16 sps:$4 sm:$0xff]  }
  0x5f   :  { %2511 = vmatpush1.bf16.msra.mxu0 %v4071_v35  ;;  %2798 = vmatpush1.bf16.msra.mxu1 %v4074_v36  ;;  %v4166_v35 = vld [vmem:[%s5944_s1 + $0x4c8] ss:$16 sps:$4 sm:$0xff]   ;;  %v4171_v36 = vld [vmem:[%s5944_s1 + $0x4e4] ss:$16 sps:$4 sm:$0xff]  }
  0x60   :  { %2512 = vmatprep.subr.bf16.mxu0 %v4079_v37  ;;  %2799 = vmatprep.subr.bf16.mxu1 %v4082_v38  ;;  %v4174_v37 = vld [vmem:[%s5944_s1 + $0x4ec] ss:$16 sps:$4 sm:$0xff]   ;;  %v4169_v38 = vld [vmem:[%s5944_s1 + $0x4e0] ss:$16 sps:$4 sm:$0xff]  }
  0x63   :  { %2513 = vmatpush1.bf16.msra.mxu0 %v4077_v39  ;;  %2800 = vmatpush1.bf16.msra.mxu1 %v4080_v40  ;;  %v4172_v39 = vld [vmem:[%s5944_s1 + $0x4e8] ss:$16 sps:$4 sm:$0xff]   ;;  %v4177_v40 = vld [vmem:[%s5944_s1 + $0x504] ss:$16 sps:$4 sm:$0xff]  }
  0x64   :  { %2514 = vmatprep.subr.bf16.mxu0 %v4085_v41  ;;  %2801 = vmatprep.subr.bf16.mxu1 %v4088_v42  ;;  %v4180_v41 = vld [vmem:[%s5944_s1 + $0x50c] ss:$16 sps:$4 sm:$0xff]   ;;  %v4175_v42 = vld [vmem:[%s5944_s1 + $0x500] ss:$16 sps:$4 sm:$0xff]  }
  0x67   :  { %2515 = vmatpush1.bf16.msra.mxu0 %v4083_v43  ;;  %2802 = vmatpush1.bf16.msra.mxu1 %v4086_v44  ;;  %v4178_v43 = vld [vmem:[%s5944_s1 + $0x508] ss:$16 sps:$4 sm:$0xff]   ;;  %v4183_v44 = vld [vmem:[%s5944_s1 + $0x524] ss:$16 sps:$4 sm:$0xff]  }
  0x68   :  { %2516 = vmatprep.subr.bf16.mxu0 %v4091_v45  ;;  %2803 = vmatprep.subr.bf16.mxu1 %v4094_v46  ;;  %v4186_v45 = vld [vmem:[%s5944_s1 + $0x52c] ss:$16 sps:$4 sm:$0xff]   ;;  %v4181_v46 = vld [vmem:[%s5944_s1 + $0x520] ss:$16 sps:$4 sm:$0xff]  }
  0x6b   :  { %2517 = vmatpush1.bf16.msra.mxu0 %v4089_v47  ;;  %2804 = vmatpush1.bf16.msra.mxu1 %v4092_v48  ;;  %v4184_v47 = vld [vmem:[%s5944_s1 + $0x528] ss:$16 sps:$4 sm:$0xff]   ;;  %v4189_v48 = vld [vmem:[%s5944_s1 + $0x544] ss:$16 sps:$4 sm:$0xff]  }
  0x6c   :  { %2518 = vmatprep.subr.bf16.mxu0 %v4097_v49  ;;  %2805 = vmatprep.subr.bf16.mxu1 %v4100_v50  ;;  %v4192_v49 = vld [vmem:[%s5944_s1 + $0x54c] ss:$16 sps:$4 sm:$0xff]   ;;  %v4187_v50 = vld [vmem:[%s5944_s1 + $0x540] ss:$16 sps:$4 sm:$0xff]  }
  0x6f   :  { %2519 = vmatpush1.bf16.msra.mxu0 %v4095_v51  ;;  %2806 = vmatpush1.bf16.msra.mxu1 %v4098_v52  ;;  %v4190_v51 = vld [vmem:[%s5944_s1 + $0x548] ss:$16 sps:$4 sm:$0xff]   ;;  %v4195_v52 = vld [vmem:[%s5944_s1 + $0x564] ss:$16 sps:$4 sm:$0xff]  }
  0x70   :  { %2520 = vmatprep.subr.bf16.mxu0 %v4103_v53  ;;  %2807 = vmatprep.subr.bf16.mxu1 %v4106_v54  ;;  %v4198_v53 = vld [vmem:[%s5944_s1 + $0x56c] ss:$16 sps:$4 sm:$0xff]   ;;  %v4193_v54 = vld [vmem:[%s5944_s1 + $0x560] ss:$16 sps:$4 sm:$0xff]  }
  0x73   :  { %2521 = vmatpush1.bf16.msra.mxu0 %v4101_v55  ;;  %2808 = vmatpush1.bf16.msra.mxu1 %v4104_v56  ;;  %v4196_v55 = vld [vmem:[%s5944_s1 + $0x568] ss:$16 sps:$4 sm:$0xff]   ;;  %v4201_v56 = vld [vmem:[%s5944_s1 + $0x584] ss:$16 sps:$4 sm:$0xff]  }
  0x74   :  { %2522 = vmatprep.subr.bf16.mxu0 %v4109_v57  ;;  %2809 = vmatprep.subr.bf16.mxu1 %v4112_v58  ;;  %v4204_v57 = vld [vmem:[%s5944_s1 + $0x58c] ss:$16 sps:$4 sm:$0xff]   ;;  %v4199_v58 = vld [vmem:[%s5944_s1 + $0x580] ss:$16 sps:$4 sm:$0xff]  }
  0x77   :  { %2523 = vmatpush1.bf16.msra.mxu0 %v4107_v59  ;;  %2810 = vmatpush1.bf16.msra.mxu1 %v4110_v60  ;;  %v4202_v59 = vld [vmem:[%s5944_s1 + $0x588] ss:$16 sps:$4 sm:$0xff]   ;;  %v4207_v60 = vld [vmem:[%s5944_s1 + $0x5a4] ss:$16 sps:$4 sm:$0xff]  }
  0x78   :  { %2524 = vmatprep.subr.bf16.mxu0 %v4115_v61  ;;  %2811 = vmatprep.subr.bf16.mxu1 %v4118_v62  ;;  %v4210_v61 = vld [vmem:[%s5944_s1 + $0x5ac] ss:$16 sps:$4 sm:$0xff]   ;;  %v4205_v62 = vld [vmem:[%s5944_s1 + $0x5a0] ss:$16 sps:$4 sm:$0xff]  }
  0x7b   :  { %2525 = vmatpush1.bf16.msra.mxu0 %v4113_v63  ;;  %2812 = vmatpush1.bf16.msra.mxu1 %v4116_v0  ;;  %v4208_v63 = vld [vmem:[%s5944_s1 + $0x5a8] ss:$16 sps:$4 sm:$0xff]   ;;  %v4213_v0 = vld [vmem:[%s5944_s1 + $0x5c4] ss:$16 sps:$4 sm:$0xff]  }
  0x7c   :  { %2526 = vmatprep.subr.bf16.mxu0 %v4121_v1  ;;  %2813 = vmatprep.subr.bf16.mxu1 %v4124_v2  ;;  %v4216_v1 = vld [vmem:[%s5944_s1 + $0x5cc] ss:$16 sps:$4 sm:$0xff]   ;;  %v4211_v2 = vld [vmem:[%s5944_s1 + $0x5c0] ss:$16 sps:$4 sm:$0xff]  }
  0x7f   :  { %2527 = vmatpush1.bf16.msra.mxu0 %v4119_v3  ;;  %2814 = vmatpush1.bf16.msra.mxu1 %v4122_v4  ;;  %v4214_v3 = vld [vmem:[%s5944_s1 + $0x5c8] ss:$16 sps:$4 sm:$0xff]   ;;  %v4219_v4 = vld [vmem:[%s5944_s1 + $0x5e4] ss:$16 sps:$4 sm:$0xff]  }
  0x80   :  { %2537 = vmatprep.subr.bf16.mxu0 %v4129_v5  ;;  %2824 = vmatprep.subr.bf16.mxu1 %v4132_v6  ;;  %v4222_v5 = vld [vmem:[%s5944_s1 + $0x5ec] ss:$16 sps:$4 sm:$0xff]   ;;  %v4217_v6 = vld [vmem:[%s5944_s1 + $0x5e0] ss:$16 sps:$4 sm:$0xff]  }
  0x82   :  { %2529 = vmatmul.mubr.bf16.vlgmr.msra.gmra.mrb[0].mxu0 %v3396_v7  ;;  %2816 = vmatmul.mubr.bf16.vlgmr.msra.gmra.mrb[0].mxu1 %v3396_v7  ;;  %v4220_v7 = vld [vmem:[%s5944_s1 + $0x5e8] ss:$16 sps:$4 sm:$0xff]  }
  0x83   :  { %2538 = vmatpush1.bf16.msra.mxu0 %v4127_v8  ;;  %2825 = vmatpush1.bf16.msra.mxu1 %v4130_v9  ;;  %v4227_v8 = vld [vmem:[%s5944_s1 + $0x604] ss:$16 sps:$4 sm:$0xff]   ;;  %v4230_v9 = vld [vmem:[%s5944_s1 + $0x60c] ss:$16 sps:$4 sm:$0xff]  }
  0x84   :  { %2539 = vmatprep.subr.bf16.mxu0 %v4135_v10  ;;  %2826 = vmatprep.subr.bf16.mxu1 %v4138_v12  ;;  %v4225_v10 = vld [vmem:[%s5944_s1 + $0x600] ss:$16 sps:$4 sm:$0xff]   ;;  %v3398_v12 = vcombine.low %v5014_v11, %v5014_v11  ;;  %v4236_v11 = vld [vmem:[%s5944_s1 + $0x62c] ss:$16 sps:$4 sm:$0xff]  }
  0x85   :  { %2569 = vmatprep.mubr.bf16.mxu0 %v3399_v13  ;;  %2856 = vmatprep.mubr.bf16.mxu1 %v3399_v13  ;;  %v4228_v13 = vld [vmem:[%s5944_s1 + $0x608] ss:$16 sps:$4 sm:$0xff]  }
  0x87   :  { %2540 = vmatpush1.bf16.msra.mxu0 %v4133_v14  ;;  %2827 = vmatpush1.bf16.msra.mxu1 %v4136_v15  ;;  %v5212_v14 = vld [vmem:[%s5945_s0 + $0x18] sm:$0xff]  ;;  %v4233_v15 = vld [vmem:[%s5944_s1 + $0x624] ss:$16 sps:$4 sm:$0xff]  }
  0x88   :  { %2541 = vmatprep.subr.bf16.mxu0 %v4141_v16  ;;  %2828 = vmatprep.subr.bf16.mxu1 %v4144_v17  ;;  %v3401_v16 = vcombine.high %v5212_v14, %v5212_v14  ;;  %v4231_v17 = vld [vmem:[%s5944_s1 + $0x620] ss:$16 sps:$4 sm:$0xff]  }
  0x8b   :  { %2542 = vmatpush1.bf16.msra.mxu0 %v4139_v18  ;;  %2829 = vmatpush1.bf16.msra.mxu1 %v4142_v19  ;;  %v4234_v18 = vld [vmem:[%s5944_s1 + $0x628] ss:$16 sps:$4 sm:$0xff]   ;;  %v4239_v19 = vld [vmem:[%s5944_s1 + $0x644] ss:$16 sps:$4 sm:$0xff]  }
  0x8c   :  { %2543 = vmatprep.subr.bf16.mxu0 %v4147_v20  ;;  %2830 = vmatprep.subr.bf16.mxu1 %v4150_v21  ;;  %v4242_v20 = vld [vmem:[%s5944_s1 + $0x64c] ss:$16 sps:$4 sm:$0xff]   ;;  %v4237_v21 = vld [vmem:[%s5944_s1 + $0x640] ss:$16 sps:$4 sm:$0xff]  }
  0x8f   :  { %2544 = vmatpush1.bf16.msra.mxu0 %v4145_v22  ;;  %2831 = vmatpush1.bf16.msra.mxu1 %v4148_v23  ;;  %v4240_v22 = vld [vmem:[%s5944_s1 + $0x648] ss:$16 sps:$4 sm:$0xff]   ;;  %v4245_v23 = vld [vmem:[%s5944_s1 + $0x664] ss:$16 sps:$4 sm:$0xff]  }
  0x90   :  { %2545 = vmatprep.subr.bf16.mxu0 %v4153_v24  ;;  %2832 = vmatprep.subr.bf16.mxu1 %v4156_v25  ;;  %v4248_v24 = vld [vmem:[%s5944_s1 + $0x66c] ss:$16 sps:$4 sm:$0xff]   ;;  %v4243_v25 = vld [vmem:[%s5944_s1 + $0x660] ss:$16 sps:$4 sm:$0xff]  }
  0x93   :  { %2546 = vmatpush1.bf16.msra.mxu0 %v4151_v26  ;;  %2833 = vmatpush1.bf16.msra.mxu1 %v4154_v27  ;;  %v4246_v26 = vld [vmem:[%s5944_s1 + $0x668] ss:$16 sps:$4 sm:$0xff]   ;;  %v4251_v27 = vld [vmem:[%s5944_s1 + $0x684] ss:$16 sps:$4 sm:$0xff]  }
  0x94   :  { %2547 = vmatprep.subr.bf16.mxu0 %v4159_v28  ;;  %2834 = vmatprep.subr.bf16.mxu1 %v4162_v29  ;;  %v4254_v28 = vld [vmem:[%s5944_s1 + $0x68c] ss:$16 sps:$4 sm:$0xff]   ;;  %v4249_v29 = vld [vmem:[%s5944_s1 + $0x680] ss:$16 sps:$4 sm:$0xff]  }
  0x97   :  { %2548 = vmatpush1.bf16.msra.mxu0 %v4157_v30  ;;  %2835 = vmatpush1.bf16.msra.mxu1 %v4160_v31  ;;  %v4252_v30 = vld [vmem:[%s5944_s1 + $0x688] ss:$16 sps:$4 sm:$0xff]   ;;  %v4257_v31 = vld [vmem:[%s5944_s1 + $0x6a4] ss:$16 sps:$4 sm:$0xff]  }
  0x98   :  { %2549 = vmatprep.subr.bf16.mxu0 %v4165_v32  ;;  %2836 = vmatprep.subr.bf16.mxu1 %v4168_v33  ;;  %v4260_v32 = vld [vmem:[%s5944_s1 + $0x6ac] ss:$16 sps:$4 sm:$0xff]   ;;  %v4255_v33 = vld [vmem:[%s5944_s1 + $0x6a0] ss:$16 sps:$4 sm:$0xff]  }
  0x9b   :  { %2550 = vmatpush1.bf16.msra.mxu0 %v4163_v34  ;;  %2837 = vmatpush1.bf16.msra.mxu1 %v4166_v35  ;;  %v4258_v34 = vld [vmem:[%s5944_s1 + $0x6a8] ss:$16 sps:$4 sm:$0xff]   ;;  %v4263_v35 = vld [vmem:[%s5944_s1 + $0x6c4] ss:$16 sps:$4 sm:$0xff]  }
  0x9c   :  { %2551 = vmatprep.subr.bf16.mxu0 %v4171_v36  ;;  %2838 = vmatprep.subr.bf16.mxu1 %v4174_v37  ;;  %v4266_v36 = vld [vmem:[%s5944_s1 + $0x6cc] ss:$16 sps:$4 sm:$0xff]   ;;  %v4261_v37 = vld [vmem:[%s5944_s1 + $0x6c0] ss:$16 sps:$4 sm:$0xff]  }
  0x9f   :  { %2552 = vmatpush1.bf16.msra.mxu0 %v4169_v38  ;;  %2839 = vmatpush1.bf16.msra.mxu1 %v4172_v39  ;;  %v4264_v38 = vld [vmem:[%s5944_s1 + $0x6c8] ss:$16 sps:$4 sm:$0xff]   ;;  %v4269_v39 = vld [vmem:[%s5944_s1 + $0x6e4] ss:$16 sps:$4 sm:$0xff]  }
  0xa0   :  { %2553 = vmatprep.subr.bf16.mxu0 %v4177_v40  ;;  %2840 = vmatprep.subr.bf16.mxu1 %v4180_v41  ;;  %v4272_v40 = vld [vmem:[%s5944_s1 + $0x6ec] ss:$16 sps:$4 sm:$0xff]   ;;  %v4267_v41 = vld [vmem:[%s5944_s1 + $0x6e0] ss:$16 sps:$4 sm:$0xff]  }
  0xa3   :  { %2554 = vmatpush1.bf16.msra.mxu0 %v4175_v42  ;;  %2841 = vmatpush1.bf16.msra.mxu1 %v4178_v43  ;;  %v4270_v42 = vld [vmem:[%s5944_s1 + $0x6e8] ss:$16 sps:$4 sm:$0xff]   ;;  %v4275_v43 = vld [vmem:[%s5944_s1 + $0x704] ss:$16 sps:$4 sm:$0xff]  }
  0xa4   :  { %2555 = vmatprep.subr.bf16.mxu0 %v4183_v44  ;;  %2842 = vmatprep.subr.bf16.mxu1 %v4186_v45  ;;  %v4278_v44 = vld [vmem:[%s5944_s1 + $0x70c] ss:$16 sps:$4 sm:$0xff]   ;;  %v4273_v45 = vld [vmem:[%s5944_s1 + $0x700] ss:$16 sps:$4 sm:$0xff]  }
  0xa7   :  { %2556 = vmatpush1.bf16.msra.mxu0 %v4181_v46  ;;  %2843 = vmatpush1.bf16.msra.mxu1 %v4184_v47  ;;  %v4276_v46 = vld [vmem:[%s5944_s1 + $0x708] ss:$16 sps:$4 sm:$0xff]   ;;  %v4281_v47 = vld [vmem:[%s5944_s1 + $0x724] ss:$16 sps:$4 sm:$0xff]  }
  0xa8   :  { %2557 = vmatprep.subr.bf16.mxu0 %v4189_v48  ;;  %2844 = vmatprep.subr.bf16.mxu1 %v4192_v49  ;;  %v4284_v48 = vld [vmem:[%s5944_s1 + $0x72c] ss:$16 sps:$4 sm:$0xff]   ;;  %v4279_v49 = vld [vmem:[%s5944_s1 + $0x720] ss:$16 sps:$4 sm:$0xff]  }
  0xab   :  { %2558 = vmatpush1.bf16.msra.mxu0 %v4187_v50  ;;  %2845 = vmatpush1.bf16.msra.mxu1 %v4190_v51  ;;  %v4282_v50 = vld [vmem:[%s5944_s1 + $0x728] ss:$16 sps:$4 sm:$0xff]   ;;  %v4287_v51 = vld [vmem:[%s5944_s1 + $0x744] ss:$16 sps:$4 sm:$0xff]  }
  0xac   :  { %2559 = vmatprep.subr.bf16.mxu0 %v4195_v52  ;;  %2846 = vmatprep.subr.bf16.mxu1 %v4198_v53  ;;  %v4290_v52 = vld [vmem:[%s5944_s1 + $0x74c] ss:$16 sps:$4 sm:$0xff]   ;;  %v4285_v53 = vld [vmem:[%s5944_s1 + $0x740] ss:$16 sps:$4 sm:$0xff]  }
  0xaf   :  { %2560 = vmatpush1.bf16.msra.mxu0 %v4193_v54  ;;  %2847 = vmatpush1.bf16.msra.mxu1 %v4196_v55  ;;  %v4288_v54 = vld [vmem:[%s5944_s1 + $0x748] ss:$16 sps:$4 sm:$0xff]   ;;  %v4293_v55 = vld [vmem:[%s5944_s1 + $0x764] ss:$16 sps:$4 sm:$0xff]  }
  0xb0   :  { %2561 = vmatprep.subr.bf16.mxu0 %v4201_v56  ;;  %2848 = vmatprep.subr.bf16.mxu1 %v4204_v57  ;;  %v4296_v56 = vld [vmem:[%s5944_s1 + $0x76c] ss:$16 sps:$4 sm:$0xff]   ;;  %v4291_v57 = vld [vmem:[%s5944_s1 + $0x760] ss:$16 sps:$4 sm:$0xff]  }
  0xb3   :  { %2562 = vmatpush1.bf16.msra.mxu0 %v4199_v58  ;;  %2849 = vmatpush1.bf16.msra.mxu1 %v4202_v59  ;;  %v4294_v58 = vld [vmem:[%s5944_s1 + $0x768] ss:$16 sps:$4 sm:$0xff]   ;;  %v4299_v59 = vld [vmem:[%s5944_s1 + $0x784] ss:$16 sps:$4 sm:$0xff]  }
  0xb4   :  { %2563 = vmatprep.subr.bf16.mxu0 %v4207_v60  ;;  %2850 = vmatprep.subr.bf16.mxu1 %v4210_v61  ;;  %v4302_v60 = vld [vmem:[%s5944_s1 + $0x78c] ss:$16 sps:$4 sm:$0xff]   ;;  %v4297_v61 = vld [vmem:[%s5944_s1 + $0x780] ss:$16 sps:$4 sm:$0xff]  }
  0xb7   :  { %2564 = vmatpush1.bf16.msra.mxu0 %v4205_v62  ;;  %2851 = vmatpush1.bf16.msra.mxu1 %v4208_v63  ;;  %v4300_v62 = vld [vmem:[%s5944_s1 + $0x788] ss:$16 sps:$4 sm:$0xff]   ;;  %v4305_v63 = vld [vmem:[%s5944_s1 + $0x7a4] ss:$16 sps:$4 sm:$0xff]  }
  0xb8   :  { %2565 = vmatprep.subr.bf16.mxu0 %v4213_v0  ;;  %2852 = vmatprep.subr.bf16.mxu1 %v4216_v1  ;;  %v4308_v0 = vld [vmem:[%s5944_s1 + $0x7ac] ss:$16 sps:$4 sm:$0xff]   ;;  %v4303_v1 = vld [vmem:[%s5944_s1 + $0x7a0] ss:$16 sps:$4 sm:$0xff]  }
  0xbb   :  { %2566 = vmatpush1.bf16.msra.mxu0 %v4211_v2  ;;  %2853 = vmatpush1.bf16.msra.mxu1 %v4214_v3  ;;  %v4306_v2 = vld [vmem:[%s5944_s1 + $0x7a8] ss:$16 sps:$4 sm:$0xff]   ;;  %v4311_v3 = vld [vmem:[%s5944_s1 + $0x7c4] ss:$16 sps:$4 sm:$0xff]  }
  0xbc   :  { %2567 = vmatprep.subr.bf16.mxu0 %v4219_v4  ;;  %2854 = vmatprep.subr.bf16.mxu1 %v4222_v5  ;;  %v4314_v4 = vld [vmem:[%s5944_s1 + $0x7cc] ss:$16 sps:$4 sm:$0xff]   ;;  %v4309_v5 = vld [vmem:[%s5944_s1 + $0x7c0] ss:$16 sps:$4 sm:$0xff]  }
  0xbf   :  { %2568 = vmatpush1.bf16.msra.mxu0 %v4217_v6  ;;  %2855 = vmatpush1.bf16.msra.mxu1 %v4220_v7  ;;  %v4312_v6 = vld [vmem:[%s5944_s1 + $0x7c8] ss:$16 sps:$4 sm:$0xff]   ;;  %v4317_v7 = vld [vmem:[%s5944_s1 + $0x7e4] ss:$16 sps:$4 sm:$0xff]  }
  0xc0   :  { %2578 = vmatprep.subr.bf16.mxu0 %v4227_v8  ;;  %2865 = vmatprep.subr.bf16.mxu1 %v4230_v9  ;;  %v4320_v8 = vld [vmem:[%s5944_s1 + $0x7ec] ss:$16 sps:$4 sm:$0xff]   ;;  %v4315_v9 = vld [vmem:[%s5944_s1 + $0x7e0] ss:$16 sps:$4 sm:$0xff]  }
  0xc2   :  { %2570 = vmatmul.mubr.bf16.vlgmr.msra.gmra.mrb[0].mxu0 %v3398_v12  ;;  %2857 = vmatmul.mubr.bf16.vlgmr.msra.gmra.mrb[0].mxu1 %v3398_v12  ;;  %v4325_v12 = vld [vmem:[%s5944_s1 + $0x804] ss:$16 sps:$4 sm:$0xff]  }
  0xc3   :  { %2579 = vmatpush1.bf16.msra.mxu0 %v4225_v10  ;;  %2866 = vmatpush1.bf16.msra.mxu1 %v4228_v13  ;;  %v4318_v10 = vld [vmem:[%s5944_s1 + $0x7e8] ss:$16 sps:$4 sm:$0xff]   ;;  %v4328_v13 = vld [vmem:[%s5944_s1 + $0x80c] ss:$16 sps:$4 sm:$0xff]  }
  0xc4   :  { %2580 = vmatprep.subr.bf16.mxu0 %v4233_v15  ;;  %2867 = vmatprep.subr.bf16.mxu1 %v4236_v11  ;;  %v4323_v15 = vld [vmem:[%s5944_s1 + $0x800] ss:$16 sps:$4 sm:$0xff]   ;;  %v3400_v11 = vcombine.low %v5212_v14, %v5212_v14  ;;  %v4334_v14 = vld [vmem:[%s5944_s1 + $0x82c] ss:$16 sps:$4 sm:$0xff]  }
  0xc5   :  { %2610 = vmatprep.mubr.bf16.mxu0 %v3401_v16  ;;  %2897 = vmatprep.mubr.bf16.mxu1 %v3401_v16  ;;  %v5410_v16 = vld [vmem:[%s5945_s0 + $0x20] sm:$0xff] }
  0xc7   :  { %2581 = vmatpush1.bf16.msra.mxu0 %v4231_v17  ;;  %2868 = vmatpush1.bf16.msra.mxu1 %v4234_v18  ;;  %v4326_v17 = vld [vmem:[%s5944_s1 + $0x808] ss:$16 sps:$4 sm:$0xff]   ;;  %v4331_v18 = vld [vmem:[%s5944_s1 + $0x824] ss:$16 sps:$4 sm:$0xff]  }
  0xc8   :  { %2582 = vmatprep.subr.bf16.mxu0 %v4239_v19  ;;  %2869 = vmatprep.subr.bf16.mxu1 %v4242_v20  ;;  %v3403_v19 = vcombine.high %v5410_v16, %v5410_v16  ;;  %v4329_v20 = vld [vmem:[%s5944_s1 + $0x820] ss:$16 sps:$4 sm:$0xff]  }
  0xcb   :  { %2583 = vmatpush1.bf16.msra.mxu0 %v4237_v21  ;;  %2870 = vmatpush1.bf16.msra.mxu1 %v4240_v22  ;;  %v4332_v21 = vld [vmem:[%s5944_s1 + $0x828] ss:$16 sps:$4 sm:$0xff]   ;;  %v4337_v22 = vld [vmem:[%s5944_s1 + $0x844] ss:$16 sps:$4 sm:$0xff]  }
  0xcc   :  { %2584 = vmatprep.subr.bf16.mxu0 %v4245_v23  ;;  %2871 = vmatprep.subr.bf16.mxu1 %v4248_v24  ;;  %v4340_v23 = vld [vmem:[%s5944_s1 + $0x84c] ss:$16 sps:$4 sm:$0xff]   ;;  %v4335_v24 = vld [vmem:[%s5944_s1 + $0x840] ss:$16 sps:$4 sm:$0xff]  }
  0xcf   :  { %2585 = vmatpush1.bf16.msra.mxu0 %v4243_v25  ;;  %2872 = vmatpush1.bf16.msra.mxu1 %v4246_v26  ;;  %v4338_v25 = vld [vmem:[%s5944_s1 + $0x848] ss:$16 sps:$4 sm:$0xff]   ;;  %v4343_v26 = vld [vmem:[%s5944_s1 + $0x864] ss:$16 sps:$4 sm:$0xff]  }
  0xd0   :  { %2586 = vmatprep.subr.bf16.mxu0 %v4251_v27  ;;  %2873 = vmatprep.subr.bf16.mxu1 %v4254_v28  ;;  %v4346_v27 = vld [vmem:[%s5944_s1 + $0x86c] ss:$16 sps:$4 sm:$0xff]   ;;  %v4341_v28 = vld [vmem:[%s5944_s1 + $0x860] ss:$16 sps:$4 sm:$0xff]  }
  0xd3   :  { %2587 = vmatpush1.bf16.msra.mxu0 %v4249_v29  ;;  %2874 = vmatpush1.bf16.msra.mxu1 %v4252_v30  ;;  %v4344_v29 = vld [vmem:[%s5944_s1 + $0x868] ss:$16 sps:$4 sm:$0xff]   ;;  %v4349_v30 = vld [vmem:[%s5944_s1 + $0x884] ss:$16 sps:$4 sm:$0xff]  }
  0xd4   :  { %2588 = vmatprep.subr.bf16.mxu0 %v4257_v31  ;;  %2875 = vmatprep.subr.bf16.mxu1 %v4260_v32  ;;  %v4352_v31 = vld [vmem:[%s5944_s1 + $0x88c] ss:$16 sps:$4 sm:$0xff]   ;;  %v4347_v32 = vld [vmem:[%s5944_s1 + $0x880] ss:$16 sps:$4 sm:$0xff]  }
  0xd7   :  { %2589 = vmatpush1.bf16.msra.mxu0 %v4255_v33  ;;  %2876 = vmatpush1.bf16.msra.mxu1 %v4258_v34  ;;  %v4350_v33 = vld [vmem:[%s5944_s1 + $0x888] ss:$16 sps:$4 sm:$0xff]   ;;  %v4355_v34 = vld [vmem:[%s5944_s1 + $0x8a4] ss:$16 sps:$4 sm:$0xff]  }
  0xd8   :  { %2590 = vmatprep.subr.bf16.mxu0 %v4263_v35  ;;  %2877 = vmatprep.subr.bf16.mxu1 %v4266_v36  ;;  %v4358_v35 = vld [vmem:[%s5944_s1 + $0x8ac] ss:$16 sps:$4 sm:$0xff]   ;;  %v4353_v36 = vld [vmem:[%s5944_s1 + $0x8a0] ss:$16 sps:$4 sm:$0xff]  }
  0xdb   :  { %2591 = vmatpush1.bf16.msra.mxu0 %v4261_v37  ;;  %2878 = vmatpush1.bf16.msra.mxu1 %v4264_v38  ;;  %v4356_v37 = vld [vmem:[%s5944_s1 + $0x8a8] ss:$16 sps:$4 sm:$0xff]   ;;  %v4361_v38 = vld [vmem:[%s5944_s1 + $0x8c4] ss:$16 sps:$4 sm:$0xff]  }
  0xdc   :  { %2592 = vmatprep.subr.bf16.mxu0 %v4269_v39  ;;  %2879 = vmatprep.subr.bf16.mxu1 %v4272_v40  ;;  %v4364_v39 = vld [vmem:[%s5944_s1 + $0x8cc] ss:$16 sps:$4 sm:$0xff]   ;;  %v4359_v40 = vld [vmem:[%s5944_s1 + $0x8c0] ss:$16 sps:$4 sm:$0xff]  }
  0xdf   :  { %2593 = vmatpush1.bf16.msra.mxu0 %v4267_v41  ;;  %2880 = vmatpush1.bf16.msra.mxu1 %v4270_v42  ;;  %v4362_v41 = vld [vmem:[%s5944_s1 + $0x8c8] ss:$16 sps:$4 sm:$0xff]   ;;  %v4367_v42 = vld [vmem:[%s5944_s1 + $0x8e4] ss:$16 sps:$4 sm:$0xff]  }
  0xe0   :  { %2594 = vmatprep.subr.bf16.mxu0 %v4275_v43  ;;  %2881 = vmatprep.subr.bf16.mxu1 %v4278_v44  ;;  %v4370_v43 = vld [vmem:[%s5944_s1 + $0x8ec] ss:$16 sps:$4 sm:$0xff]   ;;  %v4365_v44 = vld [vmem:[%s5944_s1 + $0x8e0] ss:$16 sps:$4 sm:$0xff]  }
  0xe3   :  { %2595 = vmatpush1.bf16.msra.mxu0 %v4273_v45  ;;  %2882 = vmatpush1.bf16.msra.mxu1 %v4276_v46  ;;  %v4368_v45 = vld [vmem:[%s5944_s1 + $0x8e8] ss:$16 sps:$4 sm:$0xff]   ;;  %v4373_v46 = vld [vmem:[%s5944_s1 + $0x904] ss:$16 sps:$4 sm:$0xff]  }
  0xe4   :  { %2596 = vmatprep.subr.bf16.mxu0 %v4281_v47  ;;  %2883 = vmatprep.subr.bf16.mxu1 %v4284_v48  ;;  %v4376_v47 = vld [vmem:[%s5944_s1 + $0x90c] ss:$16 sps:$4 sm:$0xff]   ;;  %v4371_v48 = vld [vmem:[%s5944_s1 + $0x900] ss:$16 sps:$4 sm:$0xff]  }
  0xe7   :  { %2597 = vmatpush1.bf16.msra.mxu0 %v4279_v49  ;;  %2884 = vmatpush1.bf16.msra.mxu1 %v4282_v50  ;;  %v4374_v49 = vld [vmem:[%s5944_s1 + $0x908] ss:$16 sps:$4 sm:$0xff]   ;;  %v4379_v50 = vld [vmem:[%s5944_s1 + $0x924] ss:$16 sps:$4 sm:$0xff]  }
  0xe8   :  { %2598 = vmatprep.subr.bf16.mxu0 %v4287_v51  ;;  %2885 = vmatprep.subr.bf16.mxu1 %v4290_v52  ;;  %v4382_v51 = vld [vmem:[%s5944_s1 + $0x92c] ss:$16 sps:$4 sm:$0xff]   ;;  %v4377_v52 = vld [vmem:[%s5944_s1 + $0x920] ss:$16 sps:$4 sm:$0xff]  }
  0xeb   :  { %2599 = vmatpush1.bf16.msra.mxu0 %v4285_v53  ;;  %2886 = vmatpush1.bf16.msra.mxu1 %v4288_v54  ;;  %v4380_v53 = vld [vmem:[%s5944_s1 + $0x928] ss:$16 sps:$4 sm:$0xff]   ;;  %v4385_v54 = vld [vmem:[%s5944_s1 + $0x944] ss:$16 sps:$4 sm:$0xff]  }
  0xec   :  { %2600 = vmatprep.subr.bf16.mxu0 %v4293_v55  ;;  %2887 = vmatprep.subr.bf16.mxu1 %v4296_v56  ;;  %v4388_v55 = vld [vmem:[%s5944_s1 + $0x94c] ss:$16 sps:$4 sm:$0xff]   ;;  %v4383_v56 = vld [vmem:[%s5944_s1 + $0x940] ss:$16 sps:$4 sm:$0xff]  }
  0xef   :  { %2601 = vmatpush1.bf16.msra.mxu0 %v4291_v57  ;;  %2888 = vmatpush1.bf16.msra.mxu1 %v4294_v58  ;;  %v4386_v57 = vld [vmem:[%s5944_s1 + $0x948] ss:$16 sps:$4 sm:$0xff]   ;;  %v4391_v58 = vld [vmem:[%s5944_s1 + $0x964] ss:$16 sps:$4 sm:$0xff]  }
  0xf0   :  { %2602 = vmatprep.subr.bf16.mxu0 %v4299_v59  ;;  %2889 = vmatprep.subr.bf16.mxu1 %v4302_v60  ;;  %v4394_v59 = vld [vmem:[%s5944_s1 + $0x96c] ss:$16 sps:$4 sm:$0xff]   ;;  %v4389_v60 = vld [vmem:[%s5944_s1 + $0x960] ss:$16 sps:$4 sm:$0xff]  }
  0xf3   :  { %2603 = vmatpush1.bf16.msra.mxu0 %v4297_v61  ;;  %2890 = vmatpush1.bf16.msra.mxu1 %v4300_v62  ;;  %v4392_v61 = vld [vmem:[%s5944_s1 + $0x968] ss:$16 sps:$4 sm:$0xff]   ;;  %v4397_v62 = vld [vmem:[%s5944_s1 + $0x984] ss:$16 sps:$4 sm:$0xff]  }
  0xf4   :  { %2604 = vmatprep.subr.bf16.mxu0 %v4305_v63  ;;  %2891 = vmatprep.subr.bf16.mxu1 %v4308_v0  ;;  %v4400_v63 = vld [vmem:[%s5944_s1 + $0x98c] ss:$16 sps:$4 sm:$0xff]   ;;  %v4395_v0 = vld [vmem:[%s5944_s1 + $0x980] ss:$16 sps:$4 sm:$0xff]  }
  0xf7   :  { %2605 = vmatpush1.bf16.msra.mxu0 %v4303_v1  ;;  %2892 = vmatpush1.bf16.msra.mxu1 %v4306_v2  ;;  %v4398_v1 = vld [vmem:[%s5944_s1 + $0x988] ss:$16 sps:$4 sm:$0xff]   ;;  %v4403_v2 = vld [vmem:[%s5944_s1 + $0x9a4] ss:$16 sps:$4 sm:$0xff]  }
  0xf8   :  { %2606 = vmatprep.subr.bf16.mxu0 %v4311_v3  ;;  %2893 = vmatprep.subr.bf16.mxu1 %v4314_v4  ;;  %v4406_v3 = vld [vmem:[%s5944_s1 + $0x9ac] ss:$16 sps:$4 sm:$0xff]   ;;  %v4401_v4 = vld [vmem:[%s5944_s1 + $0x9a0] ss:$16 sps:$4 sm:$0xff]  }
  0xfb   :  { %2607 = vmatpush1.bf16.msra.mxu0 %v4309_v5  ;;  %2894 = vmatpush1.bf16.msra.mxu1 %v4312_v6  ;;  %v4404_v5 = vld [vmem:[%s5944_s1 + $0x9a8] ss:$16 sps:$4 sm:$0xff]   ;;  %v4409_v6 = vld [vmem:[%s5944_s1 + $0x9c4] ss:$16 sps:$4 sm:$0xff]  }
  0xfc   :  { %2608 = vmatprep.subr.bf16.mxu0 %v4317_v7  ;;  %2895 = vmatprep.subr.bf16.mxu1 %v4320_v8  ;;  %v4412_v7 = vld [vmem:[%s5944_s1 + $0x9cc] ss:$16 sps:$4 sm:$0xff]   ;;  %v4407_v8 = vld [vmem:[%s5944_s1 + $0x9c0] ss:$16 sps:$4 sm:$0xff]  }
  0xff   :  { %2609 = vmatpush1.bf16.msra.mxu0 %v4315_v9  ;;  %2896 = vmatpush1.bf16.msra.mxu1 %v4318_v10  ;;  %v4410_v9 = vld [vmem:[%s5944_s1 + $0x9c8] ss:$16 sps:$4 sm:$0xff]   ;;  %v4415_v10 = vld [vmem:[%s5944_s1 + $0x9e4] ss:$16 sps:$4 sm:$0xff]  }
 0x100   :  { %2619 = vmatprep.subr.bf16.mxu0 %v4325_v12  ;;  %2906 = vmatprep.subr.bf16.mxu1 %v4328_v13  ;;  %v4418_v12 = vld [vmem:[%s5944_s1 + $0x9ec] ss:$16 sps:$4 sm:$0xff]   ;;  %v4413_v13 = vld [vmem:[%s5944_s1 + $0x9e0] ss:$16 sps:$4 sm:$0xff]  }
 0x102   :  { %2611 = vmatmul.mubr.bf16.vlgmr.msra.gmra.mrb[0].mxu0 %v3400_v11  ;;  %2898 = vmatmul.mubr.bf16.vlgmr.msra.gmra.mrb[0].mxu1 %v3400_v11  ;;  %v4423_v11 = vld [vmem:[%s5944_s1 + $0xa04] ss:$16 sps:$4 sm:$0xff]  }
 0x103   :  { %2620 = vmatpush1.bf16.msra.mxu0 %v4323_v15  ;;  %2907 = vmatpush1.bf16.msra.mxu1 %v4326_v17  ;;  %v4416_v15 = vld [vmem:[%s5944_s1 + $0x9e8] ss:$16 sps:$4 sm:$0xff]   ;;  %v4426_v17 = vld [vmem:[%s5944_s1 + $0xa0c] ss:$16 sps:$4 sm:$0xff]  }
 0x104   :  { %2621 = vmatprep.subr.bf16.mxu0 %v4331_v18  ;;  %2908 = vmatprep.subr.bf16.mxu1 %v4334_v14  ;;  %v3402_v18 = vcombine.low %v5410_v16, %v5410_v16  ;;  %v5608_v14 = vld [vmem:[%s5945_s0 + $0x28] sm:$0xff]  ;;  %v4429_v16 = vld [vmem:[%s5944_s1 + $0xa24] ss:$16 sps:$4 sm:$0xff]  }
 0x105   :  { %2651 = vmatprep.mubr.bf16.mxu0 %v3403_v19  ;;  %2938 = vmatprep.mubr.bf16.mxu1 %v3403_v19  ;;  %v4421_v19 = vld [vmem:[%s5944_s1 + $0xa00] ss:$16 sps:$4 sm:$0xff]  }
 0x107   :  { %2622 = vmatpush1.bf16.msra.mxu0 %v4329_v20  ;;  %2909 = vmatpush1.bf16.msra.mxu1 %v4332_v21  ;;  %v4424_v20 = vld [vmem:[%s5944_s1 + $0xa08] ss:$16 sps:$4 sm:$0xff]   ;;  %v4432_v21 = vld [vmem:[%s5944_s1 + $0xa2c] ss:$16 sps:$4 sm:$0xff]  }
 0x108   :  { %2623 = vmatprep.subr.bf16.mxu0 %v4337_v22  ;;  %2910 = vmatprep.subr.bf16.mxu1 %v4340_v23  ;;  %v3405_v22 = vcombine.high %v5608_v14, %v5608_v14  ;;  %v4427_v23 = vld [vmem:[%s5944_s1 + $0xa20] ss:$16 sps:$4 sm:$0xff]  }
 0x10b   :  { %2624 = vmatpush1.bf16.msra.mxu0 %v4335_v24  ;;  %2911 = vmatpush1.bf16.msra.mxu1 %v4338_v25  ;;  %v4430_v24 = vld [vmem:[%s5944_s1 + $0xa28] ss:$16 sps:$4 sm:$0xff]   ;;  %v4435_v25 = vld [vmem:[%s5944_s1 + $0xa44] ss:$16 sps:$4 sm:$0xff]  }
 0x10c   :  { %2625 = vmatprep.subr.bf16.mxu0 %v4343_v26  ;;  %2912 = vmatprep.subr.bf16.mxu1 %v4346_v27  ;;  %v4438_v26 = vld [vmem:[%s5944_s1 + $0xa4c] ss:$16 sps:$4 sm:$0xff]   ;;  %v4433_v27 = vld [vmem:[%s5944_s1 + $0xa40] ss:$16 sps:$4 sm:$0xff]  }
 0x10f   :  { %2626 = vmatpush1.bf16.msra.mxu0 %v4341_v28  ;;  %2913 = vmatpush1.bf16.msra.mxu1 %v4344_v29  ;;  %v4436_v28 = vld [vmem:[%s5944_s1 + $0xa48] ss:$16 sps:$4 sm:$0xff]   ;;  %v4441_v29 = vld [vmem:[%s5944_s1 + $0xa64] ss:$16 sps:$4 sm:$0xff]  }
 0x110   :  { %2627 = vmatprep.subr.bf16.mxu0 %v4349_v30  ;;  %2914 = vmatprep.subr.bf16.mxu1 %v4352_v31  ;;  %v4444_v30 = vld [vmem:[%s5944_s1 + $0xa6c] ss:$16 sps:$4 sm:$0xff]   ;;  %v4439_v31 = vld [vmem:[%s5944_s1 + $0xa60] ss:$16 sps:$4 sm:$0xff]  }
 0x113   :  { %2628 = vmatpush1.bf16.msra.mxu0 %v4347_v32  ;;  %2915 = vmatpush1.bf16.msra.mxu1 %v4350_v33  ;;  %v4442_v32 = vld [vmem:[%s5944_s1 + $0xa68] ss:$16 sps:$4 sm:$0xff]   ;;  %v4447_v33 = vld [vmem:[%s5944_s1 + $0xa84] ss:$16 sps:$4 sm:$0xff]  }
 0x114   :  { %2629 = vmatprep.subr.bf16.mxu0 %v4355_v34  ;;  %2916 = vmatprep.subr.bf16.mxu1 %v4358_v35  ;;  %v4450_v34 = vld [vmem:[%s5944_s1 + $0xa8c] ss:$16 sps:$4 sm:$0xff]   ;;  %v4445_v35 = vld [vmem:[%s5944_s1 + $0xa80] ss:$16 sps:$4 sm:$0xff]  }
 0x117   :  { %2630 = vmatpush1.bf16.msra.mxu0 %v4353_v36  ;;  %2917 = vmatpush1.bf16.msra.mxu1 %v4356_v37  ;;  %v4448_v36 = vld [vmem:[%s5944_s1 + $0xa88] ss:$16 sps:$4 sm:$0xff]   ;;  %v4453_v37 = vld [vmem:[%s5944_s1 + $0xaa4] ss:$16 sps:$4 sm:$0xff]  }
 0x118   :  { %2631 = vmatprep.subr.bf16.mxu0 %v4361_v38  ;;  %2918 = vmatprep.subr.bf16.mxu1 %v4364_v39  ;;  %v4456_v38 = vld [vmem:[%s5944_s1 + $0xaac] ss:$16 sps:$4 sm:$0xff]   ;;  %v4451_v39 = vld [vmem:[%s5944_s1 + $0xaa0] ss:$16 sps:$4 sm:$0xff]  }
 0x11b   :  { %2632 = vmatpush1.bf16.msra.mxu0 %v4359_v40  ;;  %2919 = vmatpush1.bf16.msra.mxu1 %v4362_v41  ;;  %v4454_v40 = vld [vmem:[%s5944_s1 + $0xaa8] ss:$16 sps:$4 sm:$0xff]   ;;  %v4459_v41 = vld [vmem:[%s5944_s1 + $0xac4] ss:$16 sps:$4 sm:$0xff]  }
 0x11c   :  { %2633 = vmatprep.subr.bf16.mxu0 %v4367_v42  ;;  %2920 = vmatprep.subr.bf16.mxu1 %v4370_v43  ;;  %v4462_v42 = vld [vmem:[%s5944_s1 + $0xacc] ss:$16 sps:$4 sm:$0xff]   ;;  %v4457_v43 = vld [vmem:[%s5944_s1 + $0xac0] ss:$16 sps:$4 sm:$0xff]  }
 0x11f   :  { %2634 = vmatpush1.bf16.msra.mxu0 %v4365_v44  ;;  %2921 = vmatpush1.bf16.msra.mxu1 %v4368_v45  ;;  %v4460_v44 = vld [vmem:[%s5944_s1 + $0xac8] ss:$16 sps:$4 sm:$0xff]   ;;  %v4465_v45 = vld [vmem:[%s5944_s1 + $0xae4] ss:$16 sps:$4 sm:$0xff]  }
 0x120   :  { %2635 = vmatprep.subr.bf16.mxu0 %v4373_v46  ;;  %2922 = vmatprep.subr.bf16.mxu1 %v4376_v47  ;;  %v4468_v46 = vld [vmem:[%s5944_s1 + $0xaec] ss:$16 sps:$4 sm:$0xff]   ;;  %v4463_v47 = vld [vmem:[%s5944_s1 + $0xae0] ss:$16 sps:$4 sm:$0xff]  }
 0x123   :  { %2636 = vmatpush1.bf16.msra.mxu0 %v4371_v48  ;;  %2923 = vmatpush1.bf16.msra.mxu1 %v4374_v49  ;;  %v4466_v48 = vld [vmem:[%s5944_s1 + $0xae8] ss:$16 sps:$4 sm:$0xff]   ;;  %v4471_v49 = vld [vmem:[%s5944_s1 + $0xb04] ss:$16 sps:$4 sm:$0xff]  }
 0x124   :  { %2637 = vmatprep.subr.bf16.mxu0 %v4379_v50  ;;  %2924 = vmatprep.subr.bf16.mxu1 %v4382_v51  ;;  %v4474_v50 = vld [vmem:[%s5944_s1 + $0xb0c] ss:$16 sps:$4 sm:$0xff]   ;;  %v4469_v51 = vld [vmem:[%s5944_s1 + $0xb00] ss:$16 sps:$4 sm:$0xff]  }
 0x127   :  { %2638 = vmatpush1.bf16.msra.mxu0 %v4377_v52  ;;  %2925 = vmatpush1.bf16.msra.mxu1 %v4380_v53  ;;  %v4472_v52 = vld [vmem:[%s5944_s1 + $0xb08] ss:$16 sps:$4 sm:$0xff]   ;;  %v4477_v53 = vld [vmem:[%s5944_s1 + $0xb24] ss:$16 sps:$4 sm:$0xff]  }
 0x128   :  { %2639 = vmatprep.subr.bf16.mxu0 %v4385_v54  ;;  %2926 = vmatprep.subr.bf16.mxu1 %v4388_v55  ;;  %v4480_v54 = vld [vmem:[%s5944_s1 + $0xb2c] ss:$16 sps:$4 sm:$0xff]   ;;  %v4475_v55 = vld [vmem:[%s5944_s1 + $0xb20] ss:$16 sps:$4 sm:$0xff]  }
 0x12b   :  { %2640 = vmatpush1.bf16.msra.mxu0 %v4383_v56  ;;  %2927 = vmatpush1.bf16.msra.mxu1 %v4386_v57  ;;  %v4478_v56 = vld [vmem:[%s5944_s1 + $0xb28] ss:$16 sps:$4 sm:$0xff]   ;;  %v4483_v57 = vld [vmem:[%s5944_s1 + $0xb44] ss:$16 sps:$4 sm:$0xff]  }
 0x12c   :  { %2641 = vmatprep.subr.bf16.mxu0 %v4391_v58  ;;  %2928 = vmatprep.subr.bf16.mxu1 %v4394_v59  ;;  %v4486_v58 = vld [vmem:[%s5944_s1 + $0xb4c] ss:$16 sps:$4 sm:$0xff]   ;;  %v4481_v59 = vld [vmem:[%s5944_s1 + $0xb40] ss:$16 sps:$4 sm:$0xff]  }
 0x12f   :  { %2642 = vmatpush1.bf16.msra.mxu0 %v4389_v60  ;;  %2929 = vmatpush1.bf16.msra.mxu1 %v4392_v61  ;;  %v4484_v60 = vld [vmem:[%s5944_s1 + $0xb48] ss:$16 sps:$4 sm:$0xff]   ;;  %v4489_v61 = vld [vmem:[%s5944_s1 + $0xb64] ss:$16 sps:$4 sm:$0xff]  }
 0x130   :  { %2643 = vmatprep.subr.bf16.mxu0 %v4397_v62  ;;  %2930 = vmatprep.subr.bf16.mxu1 %v4400_v63  ;;  %v4492_v62 = vld [vmem:[%s5944_s1 + $0xb6c] ss:$16 sps:$4 sm:$0xff]   ;;  %v4487_v63 = vld [vmem:[%s5944_s1 + $0xb60] ss:$16 sps:$4 sm:$0xff]  }
 0x133   :  { %2644 = vmatpush1.bf16.msra.mxu0 %v4395_v0  ;;  %2931 = vmatpush1.bf16.msra.mxu1 %v4398_v1  ;;  %v4490_v0 = vld [vmem:[%s5944_s1 + $0xb68] ss:$16 sps:$4 sm:$0xff]   ;;  %v4495_v1 = vld [vmem:[%s5944_s1 + $0xb84] ss:$16 sps:$4 sm:$0xff]  }
 0x134   :  { %2645 = vmatprep.subr.bf16.mxu0 %v4403_v2  ;;  %2932 = vmatprep.subr.bf16.mxu1 %v4406_v3  ;;  %v4498_v2 = vld [vmem:[%s5944_s1 + $0xb8c] ss:$16 sps:$4 sm:$0xff]   ;;  %v4493_v3 = vld [vmem:[%s5944_s1 + $0xb80] ss:$16 sps:$4 sm:$0xff]  }
 0x137   :  { %2646 = vmatpush1.bf16.msra.mxu0 %v4401_v4  ;;  %2933 = vmatpush1.bf16.msra.mxu1 %v4404_v5  ;;  %v4496_v4 = vld [vmem:[%s5944_s1 + $0xb88] ss:$16 sps:$4 sm:$0xff]   ;;  %v4501_v5 = vld [vmem:[%s5944_s1 + $0xba4] ss:$16 sps:$4 sm:$0xff]  }
 0x138   :  { %2647 = vmatprep.subr.bf16.mxu0 %v4409_v6  ;;  %2934 = vmatprep.subr.bf16.mxu1 %v4412_v7  ;;  %v4504_v6 = vld [vmem:[%s5944_s1 + $0xbac] ss:$16 sps:$4 sm:$0xff]   ;;  %v4499_v7 = vld [vmem:[%s5944_s1 + $0xba0] ss:$16 sps:$4 sm:$0xff]  }
 0x13b   :  { %2648 = vmatpush1.bf16.msra.mxu0 %v4407_v8  ;;  %2935 = vmatpush1.bf16.msra.mxu1 %v4410_v9  ;;  %v4502_v8 = vld [vmem:[%s5944_s1 + $0xba8] ss:$16 sps:$4 sm:$0xff]   ;;  %v4507_v9 = vld [vmem:[%s5944_s1 + $0xbc4] ss:$16 sps:$4 sm:$0xff]  }
 0x13c   :  { %2649 = vmatprep.subr.bf16.mxu0 %v4415_v10  ;;  %2936 = vmatprep.subr.bf16.mxu1 %v4418_v12  ;;  %v4510_v10 = vld [vmem:[%s5944_s1 + $0xbcc] ss:$16 sps:$4 sm:$0xff]   ;;  %v4505_v12 = vld [vmem:[%s5944_s1 + $0xbc0] ss:$16 sps:$4 sm:$0xff]  }
 0x13f   :  { %2650 = vmatpush1.bf16.msra.mxu0 %v4413_v13  ;;  %2937 = vmatpush1.bf16.msra.mxu1 %v4416_v15  ;;  %v4508_v13 = vld [vmem:[%s5944_s1 + $0xbc8] ss:$16 sps:$4 sm:$0xff]   ;;  %v4513_v15 = vld [vmem:[%s5944_s1 + $0xbe4] ss:$16 sps:$4 sm:$0xff]  }
 0x140   :  { %2660 = vmatprep.subr.bf16.mxu0 %v4423_v11  ;;  %2947 = vmatprep.subr.bf16.mxu1 %v4426_v17  ;;  %v4516_v11 = vld [vmem:[%s5944_s1 + $0xbec] ss:$16 sps:$4 sm:$0xff]   ;;  %v4511_v17 = vld [vmem:[%s5944_s1 + $0xbe0] ss:$16 sps:$4 sm:$0xff]  }
 0x142   :  { %2652 = vmatmul.mubr.bf16.vlgmr.msra.gmra.mrb[0].mxu0 %v3402_v18  ;;  %2939 = vmatmul.mubr.bf16.vlgmr.msra.gmra.mrb[0].mxu1 %v3402_v18  ;;  %v4514_v18 = vld [vmem:[%s5944_s1 + $0xbe8] ss:$16 sps:$4 sm:$0xff]  }
 0x143   :  { %2661 = vmatpush1.bf16.msra.mxu0 %v4421_v19  ;;  %2948 = vmatpush1.bf16.msra.mxu1 %v4424_v20  ;;  %v4521_v19 = vld [vmem:[%s5944_s1 + $0xc04] ss:$16 sps:$4 sm:$0xff]   ;;  %v4524_v20 = vld [vmem:[%s5944_s1 + $0xc0c] ss:$16 sps:$4 sm:$0xff]  }
 0x144   :  { %2662 = vmatprep.subr.bf16.mxu0 %v4429_v16  ;;  %2949 = vmatprep.subr.bf16.mxu1 %v4432_v21  ;;  %v3404_v16 = vcombine.low %v5608_v14, %v5608_v14  ;;  %v4519_v21 = vld [vmem:[%s5944_s1 + $0xc00] ss:$16 sps:$4 sm:$0xff]   ;;  %v4530_v14 = vld [vmem:[%s5944_s1 + $0xc2c] ss:$16 sps:$4 sm:$0xff]  }
 0x145   :  { %2692 = vmatprep.mubr.bf16.mxu0 %v3405_v22  ;;  %2979 = vmatprep.mubr.bf16.mxu1 %v3405_v22  ;;  %v4522_v22 = vld [vmem:[%s5944_s1 + $0xc08] ss:$16 sps:$4 sm:$0xff]  }
 0x147   :  { %2663 = vmatpush1.bf16.msra.mxu0 %v4427_v23  ;;  %2950 = vmatpush1.bf16.msra.mxu1 %v4430_v24  ;;  %v4527_v23 = vld [vmem:[%s5944_s1 + $0xc24] ss:$16 sps:$4 sm:$0xff]   ;;  %v4525_v24 = vld [vmem:[%s5944_s1 + $0xc20] ss:$16 sps:$4 sm:$0xff]  }
 0x148   :  { %2664 = vmatprep.subr.bf16.mxu0 %v4435_v25  ;;  %2951 = vmatprep.subr.bf16.mxu1 %v4438_v26  ;;  %v4528_v25 = vld [vmem:[%s5944_s1 + $0xc28] ss:$16 sps:$4 sm:$0xff]   ;;  %v4532_v26 = vld [vmem:[%s5946_s3 + $0x40] sm:$0xff]  }
 0x14b   :  { %2665 = vmatpush1.bf16.msra.mxu0 %v4433_v27  ;;  %2952 = vmatpush1.bf16.msra.mxu1 %v4436_v28  ;;  %v4533_v27 = vld [vmem:[%s5946_s3 + $0xc0] sm:$0xff]   ;;  %v4564_v28 = vmov 0  }
 0x14c   :  { %2666 = vmatprep.subr.bf16.mxu0 %v4441_v29  ;;  %2953 = vmatprep.subr.bf16.mxu1 %v4444_v30  ;;  %v4531_v29 = vld [vmem:[%s5945_s0 + $0x30] ss:$0 sps:$4 sm:$0xff]   ;;  %v4534_v30 = vld [vmem:[%s5946_s3] sm:$0xff]  }
 0x14f   :  { %2667 = vmatpush1.bf16.msra.mxu0 %v4439_v31  ;;  %2954 = vmatpush1.bf16.msra.mxu1 %v4442_v32  ;;  %v4535_v31 = vld [vmem:[%s5946_s3 + $0x80] sm:$0xff]   ;;  %v4536_v32 = vld [vmem:[%s5946_s3 + $0x48] sm:$0xff]  }
 0x150   :  { %2668 = vmatprep.subr.bf16.mxu0 %v4447_v33  ;;  %2955 = vmatprep.subr.bf16.mxu1 %v4450_v34  ;;  %v4537_v33 = vld [vmem:[%s5946_s3 + $0xc8] sm:$0xff]  }
 0x151   :  { %v4538_v34 = vld [vmem:[%s5946_s3 + $0x8] sm:$0xff]  }
 0x153   :  { %2669 = vmatpush1.bf16.msra.mxu0 %v4445_v35  ;;  %2956 = vmatpush1.bf16.msra.mxu1 %v4448_v36  ;;  %v4539_v35 = vld [vmem:[%s5946_s3 + $0x88] sm:$0xff]   ;;  %v4540_v36 = vld [vmem:[%s5946_s3 + $0x50] sm:$0xff]  }
 0x154   :  { %2670 = vmatprep.subr.bf16.mxu0 %v4453_v37  ;;  %2957 = vmatprep.subr.bf16.mxu1 %v4456_v38  ;;  %v4541_v37 = vld [vmem:[%s5946_s3 + $0xd0] sm:$0xff]  }
 0x155   :  { %v4542_v38 = vld [vmem:[%s5946_s3 + $0x10] sm:$0xff]  }
 0x157   :  { %2671 = vmatpush1.bf16.msra.mxu0 %v4451_v39  ;;  %2958 = vmatpush1.bf16.msra.mxu1 %v4454_v40  ;;  %v4543_v39 = vld [vmem:[%s5946_s3 + $0x90] sm:$0xff]   ;;  %v4544_v40 = vld [vmem:[%s5946_s3 + $0x58] sm:$0xff]  }
 0x158   :  { %2672 = vmatprep.subr.bf16.mxu0 %v4459_v41  ;;  %2959 = vmatprep.subr.bf16.mxu1 %v4462_v42  ;;  %v4545_v41 = vld [vmem:[%s5946_s3 + $0xd8] sm:$0xff]  }
 0x159   :  { %v4546_v42 = vld [vmem:[%s5946_s3 + $0x18] sm:$0xff]  }
 0x15b   :  { %2673 = vmatpush1.bf16.msra.mxu0 %v4457_v43  ;;  %2960 = vmatpush1.bf16.msra.mxu1 %v4460_v44  ;;  %v4547_v43 = vld [vmem:[%s5946_s3 + $0x98] sm:$0xff]   ;;  %v4548_v44 = vld [vmem:[%s5946_s3 + $0x60] sm:$0xff]  }
 0x15c   :  { %2674 = vmatprep.subr.bf16.mxu0 %v4465_v45  ;;  %2961 = vmatprep.subr.bf16.mxu1 %v4468_v46  ;;  %v4549_v45 = vld [vmem:[%s5946_s3 + $0xe0] sm:$0xff]  }
 0x15d   :  { %v4550_v46 = vld [vmem:[%s5946_s3 + $0x20] sm:$0xff]  }
 0x15f   :  { %2675 = vmatpush1.bf16.msra.mxu0 %v4463_v47  ;;  %2962 = vmatpush1.bf16.msra.mxu1 %v4466_v48  ;;  %v4551_v47 = vld [vmem:[%s5946_s3 + $0xa0] sm:$0xff]   ;;  %v4552_v48 = vld [vmem:[%s5946_s3 + $0x68] sm:$0xff]  }
 0x160   :  { %2676 = vmatprep.subr.bf16.mxu0 %v4471_v49  ;;  %2963 = vmatprep.subr.bf16.mxu1 %v4474_v50  ;;  %v4553_v49 = vld [vmem:[%s5946_s3 + $0xe8] sm:$0xff]  }
 0x161   :  { %v4554_v50 = vld [vmem:[%s5946_s3 + $0x28] sm:$0xff]  }
 0x163   :  { %2677 = vmatpush1.bf16.msra.mxu0 %v4469_v51  ;;  %2964 = vmatpush1.bf16.msra.mxu1 %v4472_v52  ;;  %v4555_v51 = vld [vmem:[%s5946_s3 + $0xa8] sm:$0xff]   ;;  %v4556_v52 = vld [vmem:[%s5946_s3 + $0x70] sm:$0xff]  }
 0x164   :  { %2678 = vmatprep.subr.bf16.mxu0 %v4477_v53  ;;  %2965 = vmatprep.subr.bf16.mxu1 %v4480_v54  ;;  %v4557_v53 = vld [vmem:[%s5946_s3 + $0xf0] sm:$0xff]  }
 0x165   :  { %v4558_v54 = vld [vmem:[%s5946_s3 + $0x30] sm:$0xff]  }
 0x167   :  { %2679 = vmatpush1.bf16.msra.mxu0 %v4475_v55  ;;  %2966 = vmatpush1.bf16.msra.mxu1 %v4478_v56  ;;  %v4559_v55 = vld [vmem:[%s5946_s3 + $0xb0] sm:$0xff]   ;;  %v4560_v56 = vld [vmem:[%s5946_s3 + $0x78] sm:$0xff]  }
 0x168   :  { %2680 = vmatprep.subr.bf16.mxu0 %v4483_v57  ;;  %2967 = vmatprep.subr.bf16.mxu1 %v4486_v58  ;;  %v4561_v57 = vld [vmem:[%s5946_s3 + $0xf8] sm:$0xff]  }
 0x169   :  { %v4562_v58 = vld [vmem:[%s5946_s3 + $0x38] sm:$0xff]  }
 0x16b   :  { %2681 = vmatpush1.bf16.msra.mxu0 %v4481_v59  ;;  %2968 = vmatpush1.bf16.msra.mxu1 %v4484_v60  ;;  %v4563_v59 = vld [vmem:[%s5946_s3 + $0xb8] sm:$0xff]   ;;  %v426_v60 = vlaneseq }
 0x16c   :  { %2682 = vmatprep.subr.bf16.mxu0 %v4489_v61  ;;  %2969 = vmatprep.subr.bf16.mxu1 %v4492_v62 }
 0x16d   :  { %v427_v61 = vshrl.u32 %v426_v60, 7 }
 0x16f   :  { %2683 = vmatpush1.bf16.msra.mxu0 %v4487_v63  ;;  %2970 = vmatpush1.bf16.msra.mxu1 %v4490_v0  ;;  %v428_v62 = vsub.s32 0, %v427_v61  ;;  %v436_v63 = vsub.s32 2, %v427_v61  ;;  %v424_v0 = vld [vmem:[%s5947_s2] sm:$0xf] }
 0x170   :  { %2684 = vmatprep.subr.bf16.mxu0 %v4495_v1  ;;  %2971 = vmatprep.subr.bf16.mxu1 %v4498_v2  ;;  %v432_v1 = vsub.s32 1, %v427_v61  ;;  %v440_v2 = vsub.s32 3, %v427_v61 }
 0x173   :  { %2685 = vmatpush1.bf16.msra.mxu0 %v4493_v3  ;;  %2972 = vmatpush1.bf16.msra.mxu1 %v4496_v4  ;;  %v429_v3 = vrot.slane %v424_v0, %v428_v62  ;;  %v437_v4 = vrot.slane %v424_v0, %v436_v63 }
 0x174   :  { %2686 = vmatprep.subr.bf16.mxu0 %v4501_v5  ;;  %2973 = vmatprep.subr.bf16.mxu1 %v4504_v6  ;;  %v433_v5 = vrot.slane %v424_v0, %v432_v1  ;;  %v441_v6 = vrot.slane %v424_v0, %v440_v2 }
 0x177   :  { %2687 = vmatpush1.bf16.msra.mxu0 %v4499_v7  ;;  %2974 = vmatpush1.bf16.msra.mxu1 %v4502_v8 }
 0x178   :  { %2688 = vmatprep.subr.bf16.mxu0 %v4507_v9  ;;  %2975 = vmatprep.subr.bf16.mxu1 %v4510_v10 }
 0x17b   :  { %2689 = vmatpush1.bf16.msra.mxu0 %v4505_v12  ;;  %2976 = vmatpush1.bf16.msra.mxu1 %v4508_v13 }
 0x17c   :  { %2690 = vmatprep.subr.bf16.mxu0 %v4513_v15  ;;  %2977 = vmatprep.subr.bf16.mxu1 %v4516_v11 }
 0x17f   :  { %2691 = vmatpush1.bf16.msra.mxu0 %v4511_v17  ;;  %2978 = vmatpush1.bf16.msra.mxu1 %v4514_v18 }
 0x180   :  { %2701 = vmatprep.subr.bf16.mxu0 %v4521_v19  ;;  %2988 = vmatprep.subr.bf16.mxu1 %v4524_v20 }
 0x182   :  { %2693 = vmatmul.mubr.bf16.vlgmr.msra.gmra.mrb[0].mxu0 %v3404_v16  ;;  %2980 = vmatmul.mubr.bf16.vlgmr.msra.gmra.mrb[0].mxu1 %v3404_v16 }
 0x183   :  { %2702 = vmatpush1.bf16.msra.mxu0 %v4519_v21  ;;  %2989 = vmatpush1.bf16.msra.mxu1 %v4522_v22 }
 0x184   :  { %2703 = vmatprep.subr.bf16.mxu0 %v4527_v23  ;;  %2990 = vmatprep.subr.bf16.mxu1 %v4530_v14 }
 0x185   :  { %2733 = vmatprep.mubr.bf16.mxu0 %v4564_v28  ;;  %3020 = vmatprep.mubr.bf16.mxu1 %v4564_v28 }
 0x187   :  { %2704 = vmatpush1.bf16.msra.mxu0 %v4525_v24  ;;  %2991 = vmatpush1.bf16.msra.mxu1 %v4528_v25 }
 0x188   :  { %3834 = vmatprep.subr.bf16.mxu0 %v4532_v26  ;;  %3856 = vmatprep.subr.bf16.mxu1 %v4533_v27  ;;  %v12_v27 = vstv %s5949_s4 }
 0x189   :  { %13 = vst [vmem:[#allocation2] sm:$0x1] %v12_v27 }
 0x18e   :  { %3799 = vmatmul.mubr.msk.bf16.vlgmr.msra.gmra.mrb[0].mxu0 %vm2451_vm0, %v4531_v29  ;;  %3800 = vmatmul.mubr.msk.bf16.vlgmr.msra.gmra.mrb[0].mxu1 %vm2451_vm0, %v4531_v29 }
 0x18f   :  { %3835 = vmatpush3.bf16.msra.mxu0 %v4534_v30  ;;  %3857 = vmatpush3.bf16.msra.mxu1 %v4535_v31 }
 0x190   :  { %3836 = vmatprep.subr.bf16.mxu0 %v4536_v32  ;;  %3858 = vmatprep.subr.bf16.mxu1 %v4537_v33  ;;  %v3801_v30 = vld [vmem:[#allocation2] ss:$0 sm:$0xff] }
 0x193   :  { %3837 = vmatpush3.bf16.msra.mxu0 %v4538_v34  ;;  %3859 = vmatpush3.bf16.msra.mxu1 %v4539_v35 }
 0x194   :  { %3838 = vmatprep.subr.bf16.mxu0 %v4540_v36  ;;  %3860 = vmatprep.subr.bf16.mxu1 %v4541_v37 }
 0x197   :  { %3839 = vmatpush3.bf16.msra.mxu0 %v4542_v38  ;;  %3861 = vmatpush3.bf16.msra.mxu1 %v4543_v39 }
 0x198   :  { %3840 = vmatprep.subr.bf16.mxu0 %v4544_v40  ;;  %3862 = vmatprep.subr.bf16.mxu1 %v4545_v41 }
 0x19b   :  { %3841 = vmatpush3.bf16.msra.mxu0 %v4546_v42  ;;  %3863 = vmatpush3.bf16.msra.mxu1 %v4547_v43 }
 0x19c   :  { %3842 = vmatprep.subr.bf16.mxu0 %v4548_v44  ;;  %3864 = vmatprep.subr.bf16.mxu1 %v4549_v45 }
 0x19f   :  { %3843 = vmatpush3.bf16.msra.mxu0 %v4550_v46  ;;  %3865 = vmatpush3.bf16.msra.mxu1 %v4551_v47 }
 0x1a0   :  { %3844 = vmatprep.subr.bf16.mxu0 %v4552_v48  ;;  %3866 = vmatprep.subr.bf16.mxu1 %v4553_v49 }
 0x1a3   :  { %3845 = vmatpush3.bf16.msra.mxu0 %v4554_v50  ;;  %3867 = vmatpush3.bf16.msra.mxu1 %v4555_v51 }
 0x1a4   :  { %3846 = vmatprep.subr.bf16.mxu0 %v4556_v52  ;;  %3868 = vmatprep.subr.bf16.mxu1 %v4557_v53 }
 0x1a7   :  { %3847 = vmatpush3.bf16.msra.mxu0 %v4558_v54  ;;  %3869 = vmatpush3.bf16.msra.mxu1 %v4559_v55 }
 0x1a8   :  { %3848 = vmatprep.subr.bf16.mxu0 %v4560_v56  ;;  %3870 = vmatprep.subr.bf16.mxu1 %v4561_v57 }
 0x1ab   :  { %3849 = vmatpush3.bf16.msra.mxu0 %v4562_v58  ;;  %3871 = vmatpush3.bf16.msra.mxu1 %v4563_v59 }
 0x261   :  { %v2735_v7 = vpop.f32.mrb[0].mxu0  ;;  %v3022_v8 = vpop.f32.mrb[0].mxu1 }
 0x262   :  { %v3878_v9 = vadd.f32 %v2735_v7, %v429_v3  ;;  %v3880_v10 = vadd.f32 %v3022_v8, %v437_v4  ;;  %v2737_v12 = vpop.f32.mrb[1].mxu0  ;;  %v3024_v13 = vpop.f32.mrb[1].mxu1 }
 0x263   :  { %v3879_v15 = vadd.f32 %v2737_v12, %v433_v5  ;;  %v3881_v11 = vadd.f32 %v3024_v13, %v441_v6  ;;  %v2739_v17 = vpop.f32.mrb[2].mxu0  ;;  %v3026_v18 = vpop.f32.mrb[2].mxu1 }
 0x264   :  { %v3029_v19 = vmax.f32 %v3878_v9, 0.0  ;;  %v3031_v20 = vmax.f32 %v3880_v10, 0.0  ;;  %v2740_v16 = vpop.f32.mrb[3].mxu0  ;;  %v3027_v21 = vpop.f32.mrb[3].mxu1 }
 0x265   :  { %v3030_v22 = vmax.f32 %v3879_v15, 0.0  ;;  %v3032_v23 = vmax.f32 %v3881_v11, 0.0 }
 0x266   :  { %3033 = vst [vmem:[%s5948_s5] sm:$0xff] %v3029_v19  ;;  %3035 = vst [vmem:[%s5948_s5 + $0x10] sm:$0xff] %v3031_v20  ;;  %v3037_v25 = vpack.c.bf16 %v3029_v19, %v3029_v19  ;;  %v3039_v26 = vpack.c.bf16 %v3031_v20, %v3031_v20 }
 0x267   :  { %3034 = vst [vmem:[%s5948_s5 + $0x8] sm:$0xff] %v3030_v22  ;;  %v3038_v14 = vpack.c.bf16 %v3030_v22, %v3030_v22  ;;  %3036 = vst [vmem:[%s5948_s5 + $0x18] sm:$0xff] %v3032_v23  ;;  %v3040_v24 = vpack.c.bf16 %v3032_v23, %v3032_v23 }
 0x269   :  { %3336 = vmatprep.mubr.bf16.mxu0 %v3038_v14  ;;  %3376 = vmatprep.mubr.bf16.mxu1 %v3040_v24 }
 0x26a   :  { %3337 = vmatmul.mubr.bf16.vlgmr.msra.gmra.mrb[4].mxu0 %v3037_v25  ;;  %3377 = vmatmul.mubr.bf16.vlgmr.msra.gmra.mrb[4].mxu1 %v3039_v26 }
 0x33d   :  { %v3850_v28 = vpop.f32.mrb[4].mxu0  ;;  %v3872_v29 = vpop.f32.mrb[4].mxu1 }
 0x33e   :  { %v3851_v31 = vpop.f32.mrb[5].mxu0  ;;  %v3873_v32 = vpop.f32.mrb[5].mxu1 }
 0x33f   :  { %v3852_v33 = vadd.f32 %v3851_v31, %v3850_v28  ;;  %v3874_v34 = vadd.f32 %v3873_v32, %v3872_v29  ;;  %v3853_v35 = vpop.f32.mrb[6].mxu0  ;;  %v3875_v36 = vpop.f32.mrb[6].mxu1 }
 0x340   :  { %v3854_v37 = vpop.f32.mrb[7].mxu0  ;;  %v3876_v38 = vpop.f32.mrb[7].mxu1 }
 0x341   :  { %v3339_v39 = vadd.f32 %v3852_v33, %v3801_v30 }
 0x343   :  { %v3379_v40 = vadd.f32 %v3874_v34, %v3339_v39 }
 0x345   :  { %3385 = vst.msk [vmem:[%s5950_s6] sm:$0xff] %vm3384_vm1, %v3379_v40 }

// kernel: cnn_base_forward.2
= control target key start
LH: loop header
LB: loop body
LE: loop exit
PB: predicated region body
PF: predicated region fallthrough
CT: control target
= control target key end

     0   :  { %s7917_s24 = smov 0   ;;  %s7919_s25 = smov 0   ;;  %s9736_s0 = inlined_call_operand.vmem [shape: bf16[4,224,256], index: 0, kind: input, shape index: {}]   ;;  %s9737_s1 = inlined_call_operand.vmem [shape: bf16[256,32], index: 1, kind: input, shape index: {}]   ;;  %s9738_s2 = inlined_call_operand.vmem [shape: f32[1,32], index: 2, kind: input, shape index: {}]   ;;  %s9739_s3 = inlined_call_operand.vmem [shape: bf16[16,32,64], index: 3, kind: input, shape index: {}]   ;;  %s9740_s4 = inlined_call_operand.vmem [shape: f32[1,64], index: 4, kind: input, shape index: {}]   ;;  %s9741_s5 = inlined_call_operand.vmem [shape: bf16[9,64,32], index: 5, kind: input, shape index: {}]   ;;  %s9742_s6 = inlined_call_operand.vmem [shape: f32[1,32], index: 6, kind: input, shape index: {}]   ;;  %s9743_s7 = inlined_call_operand.vmem [shape: bf16[2,72,32], index: 7, kind: output, shape index: {}]  }
   0x1   :  { %s7921_s26 = smov 0  }
   0x2 LB: > { %s5940_s27 = sadd.s32 4294967295, %s7873_s26   ;;  %s7934_s28 = sadd.s32 1, %s7873_s26   ;;  %s7873_s26 = sphi %s7921_s26, %s9816_s26   ;;  %s7869_s25 = sphi %s7919_s25, %s9815_s25   ;;  %s7865_s24 = sphi %s7917_s24, %s9814_s24  }
   0x3   : > { %s21_s29 = ssub.s32 %s7873_s26, %s7934_s28  ;;  %s24_s30 = sadd.s32 1, %s7869_s25 }
   0x4   : > { %p22_p0 = scmp.eq.s32.totalorder %s21_s29, 0  ;;  %p31_p1 = scmp.ne.s32.totalorder %s7869_s25, %s7865_s24 }
   0x5   : > { %p32_p2 = scmp.eq.s32.totalorder %s7873_s26, 0  ;;  %p5943_p4 = scmp.ge.s32.totalorder %s7873_s26, 2 }
   0x6   : > { %s7943_s8 = scalar_select %p22_p0, %s7869_s25, %s24_s30  }
   0x7   : > { %p33_p3 = por %p32_p2, %p31_p1  ;;  %227 = sbr.rel (%p5943_p4) target bundleno = 47 (0x2f), region = 40 }
   0xe   : > { %230 = sbr.rel (!%p33_p3) target bundleno = 47 (0x2f), region = 44  ;;  %s232_s9 = sand.u32 (%p33_p3), 1, %s7869_s25  }
   0xf   : > { %s6471_s10 = smul.u32 (%p33_p3), 112, %s7873_s26 }
  0x10   : > { %s7605_s11 = smul.u32 (%p33_p3), 448, %s232_s9 }
  0x11   : > { %s7951_s14 = scalar_lea.vmem (%p33_p3), %s9736_s0, %s6471_s10 }
  0x12   : > { %v376_v0 = vld [vmem:[%s7951_s14] sm:$0xff] (%p33_p3)  ;;  %v378_v1 = vld [vmem:[%s7951_s14 + $0x8] sm:$0xff] (%p33_p3)  ;;  %v380_v2 = vld [vmem:[%s7951_s14 + $0x10] sm:$0xff] (%p33_p3)  ;;  %s7956_s15 = scalar_lea.vmem (%p33_p3), [#allocation4], %s7605_s11 }
  0x13   : > { %377 = vst [vmem:[%s7956_s15] sm:$0xff] (%p33_p3), %v376_v0  ;;  %379 = vst [vmem:[%s7956_s15 + $0x8] sm:$0xff] (%p33_p3), %v378_v1  ;;  %v382_v3 = vld [vmem:[%s7951_s14 + $0x18] sm:$0xff] (%p33_p3)  ;;  %v384_v4 = vld [vmem:[%s7951_s14 + $0x20] sm:$0xff] (%p33_p3) }
  0x14   : > { %381 = vst [vmem:[%s7956_s15 + $0x10] sm:$0xff] (%p33_p3), %v380_v2  ;;  %v386_v5 = vld [vmem:[%s7951_s14 + $0x28] sm:$0xff] (%p33_p3)  ;;  %383 = vst [vmem:[%s7956_s15 + $0x18] sm:$0xff] (%p33_p3), %v382_v3  ;;  %v388_v6 = vld [vmem:[%s7951_s14 + $0x30] sm:$0xff] (%p33_p3) }
  0x15   : > { %385 = vst [vmem:[%s7956_s15 + $0x20] sm:$0xff] %v384_v4  ;;  %387 = vst [vmem:[%s7956_s15 + $0x28] sm:$0xff] %v386_v5  ;;  %v390_v7 = vld [vmem:[%s7951_s14 + $0x38] sm:$0xff]  ;;  %v392_v8 = vld [vmem:[%s7951_s14 + $0x40] sm:$0xff] }
  0x16   : > { %389 = vst [vmem:[%s7956_s15 + $0x30] sm:$0xff] %v388_v6  ;;  %391 = vst [vmem:[%s7956_s15 + $0x38] sm:$0xff] %v390_v7  ;;  %v394_v9 = vld [vmem:[%s7951_s14 + $0x48] sm:$0xff]  ;;  %v396_v10 = vld [vmem:[%s7951_s14 + $0x50] sm:$0xff] }
  0x17   : > { %393 = vst [vmem:[%s7956_s15 + $0x40] sm:$0xff] %v392_v8  ;;  %v398_v11 = vld [vmem:[%s7951_s14 + $0x58] sm:$0xff]  ;;  %395 = vst [vmem:[%s7956_s15 + $0x48] sm:$0xff] %v394_v9  ;;  %v400_v12 = vld [vmem:[%s7951_s14 + $0x60] sm:$0xff] }
  0x18   : > { %397 = vst [vmem:[%s7956_s15 + $0x50] sm:$0xff] %v396_v10  ;;  %399 = vst [vmem:[%s7956_s15 + $0x58] sm:$0xff] %v398_v11  ;;  %v402_v13 = vld [vmem:[%s7951_s14 + $0x68] sm:$0xff]  ;;  %v404_v14 = vld [vmem:[%s7951_s14 + $0xe0] sm:$0xff] }
  0x19   : > { %401 = vst [vmem:[%s7956_s15 + $0x60] sm:$0xff] %v400_v12  ;;  %403 = vst [vmem:[%s7956_s15 + $0x68] sm:$0xff] %v402_v13  ;;  %v406_v15 = vld [vmem:[%s7951_s14 + $0xe8] sm:$0xff]  ;;  %v408_v16 = vld [vmem:[%s7951_s14 + $0xf0] sm:$0xff] }
  0x1a   : > { %405 = vst [vmem:[%s7956_s15 + $0x70] sm:$0xff] %v404_v14  ;;  %v410_v17 = vld [vmem:[%s7951_s14 + $0xf8] sm:$0xff]  ;;  %407 = vst [vmem:[%s7956_s15 + $0x78] sm:$0xff] %v406_v15  ;;  %v412_v18 = vld [vmem:[%s7951_s14 + $0x100] sm:$0xff] }
  0x1b   : > { %409 = vst [vmem:[%s7956_s15 + $0x80] sm:$0xff] %v408_v16  ;;  %411 = vst [vmem:[%s7956_s15 + $0x88] sm:$0xff] %v410_v17  ;;  %v414_v19 = vld [vmem:[%s7951_s14 + $0x108] sm:$0xff]  ;;  %v416_v20 = vld [vmem:[%s7951_s14 + $0x110] sm:$0xff] }
  0x1c   : > { %413 = vst [vmem:[%s7956_s15 + $0x90] sm:$0xff] %v412_v18  ;;  %415 = vst [vmem:[%s7956_s15 + $0x98] sm:$0xff] %v414_v19  ;;  %v418_v21 = vld [vmem:[%s7951_s14 + $0x118] sm:$0xff]  ;;  %v420_v22 = vld [vmem:[%s7951_s14 + $0x120] sm:$0xff] }
  0x1d   : > { %417 = vst [vmem:[%s7956_s15 + $0xa0] sm:$0xff] %v416_v20  ;;  %v422_v23 = vld [vmem:[%s7951_s14 + $0x128] sm:$0xff]  ;;  %419 = vst [vmem:[%s7956_s15 + $0xa8] sm:$0xff] %v418_v21  ;;  %v424_v24 = vld [vmem:[%s7951_s14 + $0x130] sm:$0xff] }
  0x1e   : > { %421 = vst [vmem:[%s7956_s15 + $0xb0] sm:$0xff] %v420_v22  ;;  %423 = vst [vmem:[%s7956_s15 + $0xb8] sm:$0xff] %v422_v23  ;;  %v426_v25 = vld [vmem:[%s7951_s14 + $0x138] sm:$0xff]  ;;  %v428_v26 = vld [vmem:[%s7951_s14 + $0x140] sm:$0xff] }
  0x1f   : > { %425 = vst [vmem:[%s7956_s15 + $0xc0] sm:$0xff] %v424_v24  ;;  %427 = vst [vmem:[%s7956_s15 + $0xc8] sm:$0xff] %v426_v25  ;;  %v430_v27 = vld [vmem:[%s7951_s14 + $0x148] sm:$0xff]  ;;  %v432_v28 = vld [vmem:[%s7951_s14 + $0x1c0] sm:$0xff] }
  0x20   : > { %429 = vst [vmem:[%s7956_s15 + $0xd0] sm:$0xff] %v428_v26  ;;  %v434_v29 = vld [vmem:[%s7951_s14 + $0x1c8] sm:$0xff]  ;;  %431 = vst [vmem:[%s7956_s15 + $0xd8] sm:$0xff] %v430_v27  ;;  %v436_v30 = vld [vmem:[%s7951_s14 + $0x1d0] sm:$0xff] }
  0x21   : > { %433 = vst [vmem:[%s7956_s15 + $0xe0] sm:$0xff] %v432_v28  ;;  %435 = vst [vmem:[%s7956_s15 + $0xe8] sm:$0xff] %v434_v29  ;;  %v438_v31 = vld [vmem:[%s7951_s14 + $0x1d8] sm:$0xff]  ;;  %v440_v32 = vld [vmem:[%s7951_s14 + $0x1e0] sm:$0xff] }
  0x22   : > { %437 = vst [vmem:[%s7956_s15 + $0xf0] sm:$0xff] %v436_v30  ;;  %439 = vst [vmem:[%s7956_s15 + $0xf8] sm:$0xff] %v438_v31  ;;  %v442_v33 = vld [vmem:[%s7951_s14 + $0x1e8] sm:$0xff]  ;;  %v444_v34 = vld [vmem:[%s7951_s14 + $0x1f0] sm:$0xff] }
  0x23   : > { %441 = vst [vmem:[%s7956_s15 + $0x100] sm:$0xff] %v440_v32  ;;  %v446_v35 = vld [vmem:[%s7951_s14 + $0x1f8] sm:$0xff]  ;;  %443 = vst [vmem:[%s7956_s15 + $0x108] sm:$0xff] %v442_v33  ;;  %v448_v36 = vld [vmem:[%s7951_s14 + $0x200] sm:$0xff] }
  0x24   : > { %445 = vst [vmem:[%s7956_s15 + $0x110] sm:$0xff] %v444_v34  ;;  %447 = vst [vmem:[%s7956_s15 + $0x118] sm:$0xff] %v446_v35  ;;  %v450_v37 = vld [vmem:[%s7951_s14 + $0x208] sm:$0xff]  ;;  %v452_v38 = vld [vmem:[%s7951_s14 + $0x210] sm:$0xff] }
  0x25   : > { %449 = vst [vmem:[%s7956_s15 + $0x120] sm:$0xff] %v448_v36  ;;  %451 = vst [vmem:[%s7956_s15 + $0x128] sm:$0xff] %v450_v37  ;;  %v454_v39 = vld [vmem:[%s7951_s14 + $0x218] sm:$0xff]  ;;  %v456_v40 = vld [vmem:[%s7951_s14 + $0x220] sm:$0xff] }
  0x26   : > { %453 = vst [vmem:[%s7956_s15 + $0x130] sm:$0xff] %v452_v38  ;;  %v458_v41 = vld [vmem:[%s7951_s14 + $0x228] sm:$0xff]  ;;  %455 = vst [vmem:[%s7956_s15 + $0x138] sm:$0xff] %v454_v39  ;;  %v460_v42 = vld [vmem:[%s7951_s14 + $0x2a0] sm:$0xff] }
  0x27   : > { %457 = vst [vmem:[%s7956_s15 + $0x140] sm:$0xff] %v456_v40  ;;  %459 = vst [vmem:[%s7956_s15 + $0x148] sm:$0xff] %v458_v41  ;;  %v462_v43 = vld [vmem:[%s7951_s14 + $0x2a8] sm:$0xff]  ;;  %v464_v44 = vld [vmem:[%s7951_s14 + $0x2b0] sm:$0xff] }
  0x28   : > { %461 = vst [vmem:[%s7956_s15 + $0x150] sm:$0xff] %v460_v42  ;;  %463 = vst [vmem:[%s7956_s15 + $0x158] sm:$0xff] %v462_v43  ;;  %v466_v45 = vld [vmem:[%s7951_s14 + $0x2b8] sm:$0xff]  ;;  %v468_v46 = vld [vmem:[%s7951_s14 + $0x2c0] sm:$0xff] }
  0x29   : > { %465 = vst [vmem:[%s7956_s15 + $0x160] sm:$0xff] %v464_v44  ;;  %v470_v47 = vld [vmem:[%s7951_s14 + $0x2c8] sm:$0xff]  ;;  %467 = vst [vmem:[%s7956_s15 + $0x168] sm:$0xff] %v466_v45  ;;  %v472_v48 = vld [vmem:[%s7951_s14 + $0x2d0] sm:$0xff] }
  0x2a   : > { %469 = vst [vmem:[%s7956_s15 + $0x170] sm:$0xff] %v468_v46  ;;  %471 = vst [vmem:[%s7956_s15 + $0x178] sm:$0xff] %v470_v47  ;;  %v474_v49 = vld [vmem:[%s7951_s14 + $0x2d8] sm:$0xff]  ;;  %v476_v50 = vld [vmem:[%s7951_s14 + $0x2e0] sm:$0xff] }
  0x2b   : > { %473 = vst [vmem:[%s7956_s15 + $0x180] sm:$0xff] %v472_v48  ;;  %475 = vst [vmem:[%s7956_s15 + $0x188] sm:$0xff] %v474_v49  ;;  %v478_v51 = vld [vmem:[%s7951_s14 + $0x2e8] sm:$0xff]  ;;  %v480_v52 = vld [vmem:[%s7951_s14 + $0x2f0] sm:$0xff] }
  0x2c   : > { %477 = vst [vmem:[%s7956_s15 + $0x190] sm:$0xff] %v476_v50  ;;  %v482_v53 = vld [vmem:[%s7951_s14 + $0x2f8] sm:$0xff]  ;;  %479 = vst [vmem:[%s7956_s15 + $0x198] sm:$0xff] %v478_v51  ;;  %v484_v54 = vld [vmem:[%s7951_s14 + $0x300] sm:$0xff] }
  0x2d   : > { %481 = vst [vmem:[%s7956_s15 + $0x1a0] sm:$0xff] %v480_v52  ;;  %483 = vst [vmem:[%s7956_s15 + $0x1a8] sm:$0xff] %v482_v53  ;;  %v486_v55 = vld [vmem:[%s7951_s14 + $0x308] sm:$0xff] }
  0x2e   : > { %485 = vst [vmem:[%s7956_s15 + $0x1b0] sm:$0xff] %v484_v54  ;;  %487 = vst [vmem:[%s7956_s15 + $0x1b8] sm:$0xff] %v486_v55 }
  0x2f PF: > { %p5946_p5 = scmp.ge.s32.totalorder %s7873_s26, 1  ;;  %p492_p6 = scmp.lt.s32.totalorder %s7873_s26, 3 }
  0x31   : > { %p493_p7 = pnand %p5946_p5, %p492_p6 }
  0x33   : > { %496 = sbr.rel (%p493_p7) target bundleno = 1492 (0x5d4), region = 82 }
  0x3a   : > { %v7634_v56 = vld [vmem:[%s9737_s1 + $0x40] sm:$0xff]   ;;  %v7638_v60 = vld [vmem:[%s9737_s1 + $0x48] sm:$0xff]   ;;  %v7642_v0 = vld [vmem:[%s9737_s1 + $0x50] sm:$0xff]   ;;  %s499_s11 = sand.u32 1, %s7865_s24   ;;  %vm866_vm0 = vcmask 261120   ;;  %vm3162_vm1 = vcmask 1042432  }
  0x3b   : > { %v7635_v57 = vld [vmem:[%s9737_s1 + $0x40] sm:$0xff]   ;;  %6472 = vmatprep.subr.bf16.mxu0 %v7634_v56  ;;  %v7639_v61 = vld [vmem:[%s9737_s1 + $0x48] sm:$0xff]   ;;  %v7643_v1 = vld [vmem:[%s9737_s1 + $0x50] sm:$0xff]   ;;  %s7606_s18 = smul.u32 448, %s499_s11  ;;  %vm3455_vm2 = vsmask.f32 2304 }
  0x3c   : > { %v7636_v58 = vld [vmem:[%s9737_s1] sm:$0xff]   ;;  %6530 = vmatprep.subr.bf16.mxu1 %v7635_v57  ;;  %v7640_v62 = vld [vmem:[%s9737_s1 + $0x8] sm:$0xff]   ;;  %v7644_v2 = vld [vmem:[%s9737_s1 + $0x10] sm:$0xff]   ;;  %vm2143_vm3 = vsmask.f32 7424  ;;  %vm7876_vm4 = vmmov 0  }
  0x3d   : > { %v7637_v59 = vld [vmem:[%s9737_s1] sm:$0xff]   ;;  %6473 = vmatpush3.bf16.msra.mxu0 %v7636_v58  ;;  %v7641_v63 = vld [vmem:[%s9737_s1 + $0x8] sm:$0xff]   ;;  %v7645_v3 = vld [vmem:[%s9737_s1 + $0x10] sm:$0xff]   ;;  %s8166_s13 = scalar_lea.vmem [#allocation4], %s7606_s18  ;;  %vm4451_vm5 = vcmask 523264   ;;  %vm4753_vm6 = vcmask 1046528  }
  0x3e   : > { %6531 = vmatpush3.bf16.msra.mxu1 %v7637_v59  ;;  %6474 = vmatprep.subr.bf16.mxu0 %v7638_v60  ;;  %v7646_v4 = vld [vmem:[%s9737_s1 + $0x58] sm:$0xff]   ;;  %v7650_v8 = vld [vmem:[%s9737_s1 + $0x60] sm:$0xff]   ;;  %v7654_v12 = vld [vmem:[%s9737_s1 + $0x68] sm:$0xff]   ;;  %vm5230_vm7 = vcmask 1041408   ;;  %vm5375_vm8 = vcmask 1045504   ;;  %vm5677_vm10 = vcmask 1044480  }
  0x3f   : > { %6532 = vmatprep.subr.bf16.mxu1 %v7639_v61  ;;  %v7647_v5 = vld [vmem:[%s9737_s1 + $0x58] sm:$0xff]   ;;  %v7651_v9 = vld [vmem:[%s9737_s1 + $0x60] sm:$0xff]   ;;  %v7655_v13 = vld [vmem:[%s9737_s1 + $0x68] sm:$0xff]   ;;  %vm5515_vm9 = vsmask.f32 5376  ;;  %p531_p8 = scmp.lt.s32.totalorder %s5940_s27, 1 }
  0x40   : > { %v7648_v6 = vld [vmem:[%s9737_s1 + $0x18] sm:$0xff]   ;;  %v7652_v10 = vld [vmem:[%s9737_s1 + $0x20] sm:$0xff]   ;;  %v7656_v14 = vld [vmem:[%s9737_s1 + $0x28] sm:$0xff]   ;;  %vm5869_vm11 = vcmask 257024  }
  0x41   : > { %6475 = vmatpush3.bf16.msra.mxu0 %v7640_v62  ;;  %v7649_v7 = vld [vmem:[%s9737_s1 + $0x18] sm:$0xff]   ;;  %v7653_v11 = vld [vmem:[%s9737_s1 + $0x20] sm:$0xff]   ;;  %v7657_v15 = vld [vmem:[%s9737_s1 + $0x28] sm:$0xff]   ;;  %s9818_s27 = smov (!%p531_p8, %s5940_s27), 1 }
  0x42   : > { %6533 = vmatpush3.bf16.msra.mxu1 %v7641_v63  ;;  %6476 = vmatprep.subr.bf16.mxu0 %v7642_v0  ;;  %v7658_v16 = vld [vmem:[%s9737_s1 + $0x70] sm:$0xff]   ;;  %v7662_v20 = vld [vmem:[%s9737_s1 + $0x78] sm:$0xff]   ;;  %v7669_v26 = vld [vmem:[%s8166_s13 + $0x70] ss:$8 sps:$4 sm:$0xff]   ;;  %s7607_s9 = smul.u32 36, %s9818_s27 }
  0x43   : > { %6534 = vmatprep.subr.bf16.mxu1 %v7643_v1  ;;  %v7659_v17 = vld [vmem:[%s9737_s1 + $0x70] sm:$0xff]   ;;  %v7663_v21 = vld [vmem:[%s9737_s1 + $0x78] sm:$0xff]   ;;  %v7671_v27 = vld [vmem:[%s8166_s13 + $0x74] ss:$8 sps:$4 sm:$0xff]  }
  0x44   : > { %v7660_v18 = vld [vmem:[%s9737_s1 + $0x30] sm:$0xff]   ;;  %v7664_v22 = vld [vmem:[%s9737_s1 + $0x38] sm:$0xff]   ;;  %v7672_v28 = vld [vmem:[%s8166_s13 + $0x14] ss:$8 sps:$4 sm:$0xff]   ;;  %1126 = vmatprep.mubr.bf16.mxu1 %v7671_v27  ;;  %s9698_s11 = scalar_lea.vmem %s9743_s7, %s7607_s9 }
  0x45   : > { %6477 = vmatpush3.bf16.msra.mxu0 %v7644_v2  ;;  %v7661_v19 = vld [vmem:[%s9737_s1 + $0x30] sm:$0xff]   ;;  %v7665_v23 = vld [vmem:[%s9737_s1 + $0x38] sm:$0xff]   ;;  %v7676_v30 = vld [vmem:[%s8166_s13 + $0x10] ss:$8 sps:$4 sm:$0xff]  }
  0x46   : > { %6535 = vmatpush3.bf16.msra.mxu1 %v7645_v3  ;;  %6478 = vmatprep.subr.bf16.mxu0 %v7646_v4  ;;  %v7666_v24 = vld [vmem:[%s8166_s13] ss:$8 sps:$4 sm:$0xff]   ;;  %v7668_v25 = vld [vmem:[%s8166_s13 + $0x4] ss:$8 sps:$4 sm:$0xff]   ;;  %v7680_v33 = vld [vmem:[%s8166_s13 + $0x94] ss:$8 sps:$4 sm:$0xff]  }
  0x47   : > { %6536 = vmatprep.subr.bf16.mxu1 %v7647_v5  ;;  %788 = vmatprep.mubr.bf16.mxu0 %v7668_v25  ;;  %v7674_v29 = vld [vmem:[%s8166_s13 + $0x84] ss:$8 sps:$4 sm:$0xff]   ;;  %v7677_v31 = vld [vmem:[%s8166_s13 + $0x80] ss:$8 sps:$4 sm:$0xff]   ;;  %v7682_v34 = vld [vmem:[%s9737_s1 + $0x40] sm:$0xff]  }
  0x48   : > { %v7678_v32 = vld [vmem:[%s8166_s13 + $0x24] ss:$8 sps:$4 sm:$0xff]   ;;  %v7685_v35 = vld [vmem:[%s9737_s1] sm:$0xff]   ;;  %v7686_v36 = vld [vmem:[%s9737_s1 + $0x48] sm:$0xff]  }
  0x49   : > { %6479 = vmatpush3.bf16.msra.mxu0 %v7648_v6  ;;  %v7689_v37 = vld [vmem:[%s9737_s1 + $0x8] sm:$0xff]   ;;  %v7683_v38 = vld [vmem:[%s8166_s13 + $0x20] ss:$8 sps:$4 sm:$0xff]   ;;  %v7700_v45 = vld [vmem:[%s9737_s1 + $0x40] sm:$0xff]  }
  0x4a   : > { %6537 = vmatpush3.bf16.msra.mxu1 %v7649_v7  ;;  %6480 = vmatprep.subr.bf16.mxu0 %v7650_v8  ;;  %v7691_v39 = vld [vmem:[%s9737_s1 + $0x50] sm:$0xff]   ;;  %v7684_v41 = vld [vmem:[%s8166_s13 + $0x90] ss:$8 sps:$4 sm:$0xff]   ;;  %v7687_v42 = vld [vmem:[%s8166_s13 + $0x34] ss:$8 sps:$4 sm:$0xff]  }
  0x4b   : > { %6538 = vmatprep.subr.bf16.mxu1 %v7651_v9  ;;  %v7692_v40 = vld [vmem:[%s9737_s1 + $0x10] sm:$0xff]   ;;  %v7696_v43 = vld [vmem:[%s9737_s1 + $0x58] sm:$0xff]   ;;  %v7702_v46 = vld [vmem:[%s9737_s1] sm:$0xff]  }
  0x4c   : > { %v7697_v44 = vld [vmem:[%s9737_s1 + $0x18] sm:$0xff]   ;;  %v7690_v47 = vld [vmem:[%s8166_s13 + $0x30] ss:$8 sps:$4 sm:$0xff]   ;;  %v7698_v58 = vld [vmem:[%s8166_s13 + $0x54] ss:$8 sps:$4 sm:$0xff]  }
  0x4d   : > { %6481 = vmatpush3.bf16.msra.mxu0 %v7652_v10  ;;  %v7703_v48 = vld [vmem:[%s9737_s1 + $0x60] sm:$0xff]   ;;  %v7705_v50 = vld [vmem:[%s9737_s1 + $0x48] sm:$0xff]   ;;  %v7693_v51 = vld [vmem:[%s8166_s13 + $0x44] ss:$8 sps:$4 sm:$0xff]  }
  0x4e   : > { %6539 = vmatpush3.bf16.msra.mxu1 %v7653_v11  ;;  %6482 = vmatprep.subr.bf16.mxu0 %v7654_v12  ;;  %v7704_v49 = vld [vmem:[%s9737_s1 + $0x20] sm:$0xff]   ;;  %v7708_v52 = vld [vmem:[%s8166_s13 + $0xa4] ss:$8 sps:$4 sm:$0xff]   ;;  %v7710_v53 = vld [vmem:[%s9737_s1 + $0x8] sm:$0xff]  }
  0x4f   : > { %6540 = vmatprep.subr.bf16.mxu1 %v7655_v13  ;;  %v7712_v54 = vld [vmem:[%s8166_s13 + $0xa0] ss:$8 sps:$4 sm:$0xff]   ;;  %v7713_v55 = vld [vmem:[%s9737_s1 + $0x68] sm:$0xff]   ;;  %v7706_v4 = vld [vmem:[%s8166_s13 + $0x64] ss:$8 sps:$4 sm:$0xff]  }
  0x50   : > { %v7695_v56 = vld [vmem:[%s8166_s13 + $0x40] ss:$8 sps:$4 sm:$0xff]   ;;  %v7714_v57 = vld [vmem:[%s9737_s1 + $0x28] sm:$0xff]   ;;  %v7729_v7 = vld [vmem:[%s8166_s13 + $0xc4] ss:$8 sps:$4 sm:$0xff]  }
  0x51   : > { %6483 = vmatpush3.bf16.msra.mxu0 %v7656_v14  ;;  %v7715_v59 = vld [vmem:[%s9737_s1 + $0x70] sm:$0xff]   ;;  %v7719_v63 = vld [vmem:[%s8166_s13 + $0xb4] ss:$8 sps:$4 sm:$0xff]   ;;  %v7721_v0 = vld [vmem:[%s8166_s13 + $0xb0] ss:$8 sps:$4 sm:$0xff]  }
  0x52   : > { %6541 = vmatpush3.bf16.msra.mxu1 %v7657_v15  ;;  %6484 = vmatprep.subr.bf16.mxu0 %v7658_v16  ;;  %v7716_v60 = vld [vmem:[%s9737_s1 + $0x50] sm:$0xff]   ;;  %v7722_v1 = vld [vmem:[%s9737_s1 + $0x78] sm:$0xff]   ;;  %v7701_v3 = vld [vmem:[%s8166_s13 + $0x50] ss:$8 sps:$4 sm:$0xff]  }
  0x53   : > { %6542 = vmatprep.subr.bf16.mxu1 %v7659_v17  ;;  %v7717_v61 = vld [vmem:[%s9737_s1 + $0x30] sm:$0xff]   ;;  %v7723_v2 = vld [vmem:[%s9737_s1 + $0x38] sm:$0xff]   ;;  %v7732_v9 = vld [vmem:[%s9737_s1 + $0x60] sm:$0xff]  }
  0x54   : > { %v7718_v62 = vld [vmem:[%s9737_s1 + $0x10] sm:$0xff]   ;;  %v7727_v5 = vld [vmem:[%s9737_s1 + $0x58] sm:$0xff]   ;;  %v7735_v10 = vld [vmem:[%s9737_s1 + $0x20] sm:$0xff]  }
  0x55   : > { %6485 = vmatpush3.bf16.msra.mxu0 %v7660_v18  ;;  %v7728_v6 = vld [vmem:[%s9737_s1 + $0x18] sm:$0xff]   ;;  %v7737_v12 = vld [vmem:[%s8166_s13 + $0xd4] ss:$8 sps:$4 sm:$0xff]   ;;  %v7739_v16 = vld [vmem:[%s8166_s13 + $0xd0] ss:$8 sps:$4 sm:$0xff]  }
  0x56   : > { %6543 = vmatpush3.bf16.msra.mxu1 %v7661_v19  ;;  %6486 = vmatprep.subr.bf16.mxu0 %v7662_v20  ;;  %v7731_v8 = vld [vmem:[%s8166_s13 + $0xc0] ss:$8 sps:$4 sm:$0xff]   ;;  %v7726_v13 = vld [vmem:[%s8166_s13 + $0xe4] ss:$8 sps:$4 sm:$0xff]   ;;  %v7740_v14 = vld [vmem:[%s9737_s1 + $0x68] sm:$0xff]  }
  0x57   : > { %6544 = vmatprep.subr.bf16.mxu1 %v7663_v21  ;;  %v7711_v11 = vld [vmem:[%s8166_s13 + $0x60] ss:$8 sps:$4 sm:$0xff]   ;;  %v7741_v15 = vld [vmem:[%s9737_s1 + $0x28] sm:$0xff]   ;;  %v7757_v25 = vld [vmem:[%s8166_s13 + $0x164] ss:$8 sps:$4 sm:$0xff]  }
  0x58   : > { %v7745_v17 = vld [vmem:[%s9737_s1 + $0x70] sm:$0xff]   ;;  %v7747_v19 = vld [vmem:[%s9737_s1 + $0x78] sm:$0xff]  }
  0x59   : > { %6487 = vmatpush3.bf16.msra.mxu0 %v7664_v22  ;;  %v7746_v18 = vld [vmem:[%s9737_s1 + $0x30] sm:$0xff]   ;;  %v7748_v21 = vld [vmem:[%s9737_s1 + $0x38] sm:$0xff]   ;;  %v7753_v22 = vld [vmem:[%s8166_s13 + $0x154] ss:$8 sps:$4 sm:$0xff]  }
  0x5a   : > { %6545 = vmatpush3.bf16.msra.mxu1 %v7665_v23  ;;  %6588 = vmatprep.subr.bf16.mxu0 %v7682_v34  ;;  %v7724_v20 = vld [vmem:[%s8166_s13 + $0xe0] ss:$8 sps:$4 sm:$0xff]   ;;  %v7733_v23 = vld [vmem:[%s8166_s13 + $0xf4] ss:$8 sps:$4 sm:$0xff]   ;;  %v7742_v27 = vld [vmem:[%s8166_s13 + $0x104] ss:$8 sps:$4 sm:$0xff]  }
  0x5b   : > { %6646 = vmatprep.subr.bf16.mxu1 %v7700_v45  ;;  %v7769_v34 = vld [vmem:[%s8166_s13 + $0x184] ss:$8 sps:$4 sm:$0xff]   ;;  %v7778_v45 = vld [vmem:[%s8166_s13 + $0x1a0] ss:$8 sps:$4 sm:$0xff]  }
  0x5c   : > { %789 = vmatmul.mubr.bf16.vlgmr.msra.gmra.mrb[0].mxu0 %v7666_v24  ;;  %v7751_v24 = vld [vmem:[%s8166_s13 + $0x150] ss:$8 sps:$4 sm:$0xff]  }
  0x5d   : > { %1127 = vmatmul.mubr.bf16.vlgmr.msra.gmra.mrb[0].mxu1 %v7669_v26  ;;  %796 = vmatprep.mubr.bf16.mxu0 %v7672_v28  ;;  %v7736_v26 = vld [vmem:[%s8166_s13 + $0xf0] ss:$8 sps:$4 sm:$0xff]   ;;  %v7760_v28 = vld [vmem:[%s8166_s13 + $0x160] ss:$8 sps:$4 sm:$0xff]  }
  0x5e   : > { %1134 = vmatprep.mubr.bf16.mxu1 %v7674_v29  ;;  %6589 = vmatpush3.bf16.msra.mxu0 %v7685_v35  ;;  %v7763_v29 = vld [vmem:[%s8166_s13 + $0x174] ss:$8 sps:$4 sm:$0xff]   ;;  %v7754_v35 = vld [vmem:[%s8166_s13 + $0x110] ss:$8 sps:$4 sm:$0xff]  }
  0x5f   : > { %6590 = vmatprep.subr.bf16.mxu0 %v7686_v36  ;;  %6647 = vmatpush3.bf16.msra.mxu1 %v7702_v46  ;;  %v7755_v36 = vld [vmem:[%s8166_s13 + $0x124] ss:$8 sps:$4 sm:$0xff]   ;;  %v7779_v46 = vld [vmem:[%s8166_s13 + $0x1b4] ss:$8 sps:$4 sm:$0xff]  }
  0x60   : > { %6648 = vmatprep.subr.bf16.mxu1 %v7705_v50  ;;  %v8329_v50 = vld [vmem:[%s9739_s3] sm:$0xff]  }
  0x62   : > { %6591 = vmatpush3.bf16.msra.mxu0 %v7689_v37  ;;  %v7772_v37 = vld [vmem:[%s8166_s13 + $0x180] ss:$8 sps:$4 sm:$0xff]  }
  0x63   : > { %6592 = vmatprep.subr.bf16.mxu0 %v7691_v39  ;;  %6649 = vmatpush3.bf16.msra.mxu1 %v7710_v53  ;;  %v7759_v39 = vld [vmem:[%s8166_s13 + $0x120] ss:$8 sps:$4 sm:$0xff]   ;;  %v8335_v53 = vld [vmem:[%s9738_s2] ss:$0 sm:$0xff] }
  0x64   : > { %797 = vmatmul.mubr.bf16.gmra.mrb[4].mxu0 %v7676_v30  ;;  %6650 = vmatprep.subr.bf16.mxu1 %v7716_v60  ;;  %v7744_v30 = vld [vmem:[%s8166_s13 + $0x100] ss:$8 sps:$4 sm:$0xff]  }
  0x65   : > { %1135 = vmatmul.mubr.bf16.gmra.mrb[4].mxu1 %v7677_v31  ;;  %804 = vmatprep.mubr.bf16.mxu0 %v7678_v32  ;;  %v7782_v31 = vld [vmem:[%s9739_s3 + $0x10] sm:$0xff]   ;;  %v7749_v32 = vld [vmem:[%s8166_s13 + $0x114] ss:$8 sps:$4 sm:$0xff]  }
  0x66   : > { %1142 = vmatprep.mubr.bf16.mxu1 %v7680_v33  ;;  %6593 = vmatpush3.bf16.msra.mxu0 %v7692_v40  ;;  %v7766_v33 = vld [vmem:[%s8166_s13 + $0x170] ss:$8 sps:$4 sm:$0xff]   ;;  %v7761_v40 = vld [vmem:[%s8166_s13 + $0x134] ss:$8 sps:$4 sm:$0xff]  }
  0x67   : > { %6594 = vmatprep.subr.bf16.mxu0 %v7696_v43  ;;  %6651 = vmatpush3.bf16.msra.mxu1 %v7718_v62  ;;  %v7765_v43 = vld [vmem:[%s8166_s13 + $0x130] ss:$8 sps:$4 sm:$0xff]  }
  0x68   : > { %6652 = vmatprep.subr.bf16.mxu1 %v7727_v5 }
  0x6a   : > { %6595 = vmatpush3.bf16.msra.mxu0 %v7697_v44  ;;  %v7767_v44 = vld [vmem:[%s8166_s13 + $0x144] ss:$8 sps:$4 sm:$0xff]  }
  0x6b   : > { %6596 = vmatprep.subr.bf16.mxu0 %v7703_v48  ;;  %6653 = vmatpush3.bf16.msra.mxu1 %v7728_v6  ;;  %v7771_v48 = vld [vmem:[%s8166_s13 + $0x140] ss:$8 sps:$4 sm:$0xff]  }
  0x6c   : > { %805 = vmatmul.mubr.bf16.gmra.mrb[8].mxu0 %v7683_v38  ;;  %6654 = vmatprep.subr.bf16.mxu1 %v7732_v9  ;;  %v7773_v38 = vld [vmem:[%s8166_s13 + $0x194] ss:$8 sps:$4 sm:$0xff]  }
  0x6d   : > { %1143 = vmatmul.mubr.bf16.gmra.mrb[8].mxu1 %v7684_v41  ;;  %812 = vmatprep.mubr.bf16.mxu0 %v7687_v42  ;;  %v7775_v41 = vld [vmem:[%s8166_s13 + $0x190] ss:$8 sps:$4 sm:$0xff]   ;;  %v7776_v42 = vld [vmem:[%s8166_s13 + $0x1a4] ss:$8 sps:$4 sm:$0xff]  }
  0x6e   : > { %6597 = vmatpush3.bf16.msra.mxu0 %v7704_v49  ;;  %1150 = vmatprep.mubr.bf16.mxu1 %v7708_v52  ;;  %v7781_v49 = vld [vmem:[%s8166_s13 + $0x1b0] ss:$8 sps:$4 sm:$0xff]  }
  0x6f   : > { %6598 = vmatprep.subr.bf16.mxu0 %v7713_v55  ;;  %6655 = vmatpush3.bf16.msra.mxu1 %v7735_v10 }
  0x70   : > { %6656 = vmatprep.subr.bf16.mxu1 %v7740_v14 }
  0x72   : > { %6599 = vmatpush3.bf16.msra.mxu0 %v7714_v57 }
  0x73   : > { %6600 = vmatprep.subr.bf16.mxu0 %v7715_v59  ;;  %6657 = vmatpush3.bf16.msra.mxu1 %v7741_v15 }
  0x74   : > { %813 = vmatmul.mubr.bf16.gmra.mrb[12].mxu0 %v7690_v47  ;;  %6658 = vmatprep.subr.bf16.mxu1 %v7745_v17  ;;  %v7783_v47 = vld [vmem:[%s9739_s3 + $0x18] sm:$0xff]  }
  0x75   : > { %820 = vmatprep.mubr.bf16.mxu0 %v7693_v51  ;;  %1151 = vmatmul.mubr.bf16.gmra.mrb[12].mxu1 %v7712_v54 }
  0x76   : > { %6601 = vmatpush3.bf16.msra.mxu0 %v7717_v61  ;;  %1158 = vmatprep.mubr.bf16.mxu1 %v7719_v63 }
  0x77   : > { %6602 = vmatprep.subr.bf16.mxu0 %v7722_v1  ;;  %6659 = vmatpush3.bf16.msra.mxu1 %v7746_v18 }
  0x78   : > { %6660 = vmatprep.subr.bf16.mxu1 %v7747_v19 }
  0x7a   : > { %6603 = vmatpush3.bf16.msra.mxu0 %v7723_v2 }
  0x7b   : > { %6661 = vmatpush3.bf16.msra.mxu1 %v7748_v21  ;;  %6913 = vmatprep.subr.bf16.mxu0 %v7782_v31 }
  0x7c   : > { %821 = vmatmul.mubr.bf16.gmra.mrb[16].mxu0 %v7695_v56  ;;  %7421 = vmatprep.subr.bf16.mxu1 %v7782_v31 }
  0x7d   : > { %828 = vmatprep.mubr.bf16.mxu0 %v7698_v58  ;;  %1159 = vmatmul.mubr.bf16.gmra.mrb[16].mxu1 %v7721_v0 }
  0x7e   : > { %1166 = vmatprep.mubr.bf16.mxu1 %v7729_v7 }
  0x84   : > { %829 = vmatmul.mubr.bf16.gmra.mrb[20].mxu0 %v7701_v3 }
  0x85   : > { %836 = vmatprep.mubr.bf16.mxu0 %v7706_v4  ;;  %1167 = vmatmul.mubr.bf16.gmra.mrb[20].mxu1 %v7731_v8 }
  0x86   : > { %1174 = vmatprep.mubr.bf16.mxu1 %v7737_v12 }
  0x8c   : > { %837 = vmatmul.mubr.bf16.gmra.mrb[24].mxu0 %v7711_v11 }
  0x8d   : > { %1464 = vmatprep.mubr.bf16.mxu0 %v7726_v13  ;;  %1175 = vmatmul.mubr.bf16.gmra.mrb[24].mxu1 %v7739_v16 }
  0x8e   : > { %1802 = vmatprep.mubr.bf16.mxu1 %v7753_v22 }
  0x94   : > { %1465 = vmatmul.mubr.bf16.vlgmr.msra.gmra.mrb[28].mxu0 %v7724_v20 }
  0x95   : > { %1472 = vmatprep.mubr.bf16.mxu0 %v7733_v23  ;;  %1803 = vmatmul.mubr.bf16.vlgmr.msra.gmra.mrb[28].mxu1 %v7751_v24 }
  0x96   : > { %1810 = vmatprep.mubr.bf16.mxu1 %v7757_v25  ;;  %6914 = vmatpush3.bf16.msra.mxu0 %v7782_v31 }
  0x97   : > { %7423 = vmatpush3.bf16.msra.mxu1 %v7782_v31  ;;  %6915 = vmatprep.subr.bf16.mxu0 %v7783_v47 }
  0x98   : > { %7422 = vmatprep.subr.bf16.mxu1 %v7783_v47 }
  0x9a   : > { %6916 = vmatpush3.bf16.msra.mxu0 %v7783_v47 }
  0x9b   : > { %7424 = vmatpush3.bf16.msra.mxu1 %v7783_v47  ;;  %6929 = vmatprep.subr.bf16.mxu0 %v8329_v50 }
  0x9c   : > { %1473 = vmatmul.mubr.bf16.gmra.mrb[32].mxu0 %v7736_v26 }
  0x9d   : > { %1480 = vmatprep.mubr.bf16.mxu0 %v7742_v27  ;;  %1811 = vmatmul.mubr.bf16.gmra.mrb[32].mxu1 %v7760_v28 }
  0x9e   : > { %1818 = vmatprep.mubr.bf16.mxu1 %v7763_v29 }
  0xa4   : > { %1481 = vmatmul.mubr.bf16.gmra.mrb[36].mxu0 %v7744_v30 }
  0xa5   : > { %1488 = vmatprep.mubr.bf16.mxu0 %v7749_v32  ;;  %1819 = vmatmul.mubr.bf16.gmra.mrb[36].mxu1 %v7766_v33 }
  0xa6   : > { %1826 = vmatprep.mubr.bf16.mxu1 %v7769_v34 }
  0xac   : > { %1489 = vmatmul.mubr.bf16.gmra.mrb[40].mxu0 %v7754_v35 }
  0xad   : > { %1496 = vmatprep.mubr.bf16.mxu0 %v7755_v36  ;;  %1827 = vmatmul.mubr.bf16.gmra.mrb[40].mxu1 %v7772_v37 }
  0xae   : > { %1834 = vmatprep.mubr.bf16.mxu1 %v7773_v38 }
  0xb4   : > { %1497 = vmatmul.mubr.bf16.gmra.mrb[44].mxu0 %v7759_v39 }
  0xb5   : > { %1504 = vmatprep.mubr.bf16.mxu0 %v7761_v40  ;;  %1835 = vmatmul.mubr.bf16.gmra.mrb[44].mxu1 %v7775_v41 }
  0xb6   : > { %1842 = vmatprep.mubr.bf16.mxu1 %v7776_v42 }
  0xbc   : > { %1505 = vmatmul.mubr.bf16.gmra.mrb[48].mxu0 %v7765_v43 }
  0xbd   : > { %1512 = vmatprep.mubr.bf16.mxu0 %v7767_v44  ;;  %1843 = vmatmul.mubr.bf16.gmra.mrb[48].mxu1 %v7778_v45 }
  0xbe   : > { %1850 = vmatprep.mubr.bf16.mxu1 %v7779_v46 }
  0xc4   : > { %1513 = vmatmul.mubr.bf16.gmra.mrb[52].mxu0 %v7771_v48 }
  0xc5   : > { %1851 = vmatmul.mubr.bf16.gmra.mrb[52].mxu1 %v7781_v49 }
 0x12f   : > { %v6488_v51 = vpop.f32.mrb[0].mxu0 }
 0x130   : > { %v6546_v52 = vpop.f32.mrb[0].mxu1  ;;  %v6489_v54 = vpop.f32.mrb[1].mxu0 }
 0x131   : > { %v6490_v55 = vadd.f32 %v6489_v54, %v6488_v51  ;;  %v6547_v56 = vpop.f32.mrb[1].mxu1  ;;  %v6491_v57 = vpop.f32.mrb[2].mxu0 }
 0x132   : > { %v6548_v58 = vadd.f32 %v6547_v56, %v6546_v52  ;;  %v6549_v59 = vpop.f32.mrb[2].mxu1  ;;  %v6492_v60 = vpop.f32.mrb[3].mxu0 }
 0x133   : > { %v791_v61 = vadd.f32 %v6490_v55, %v8335_v53  ;;  %v6493_v62 = vadd.f32 %v6492_v60, %v6491_v57  ;;  %v6550_v63 = vpop.f32.mrb[3].mxu1 }
 0x134   : > { %v1129_v0 = vadd.f32 %v6548_v58, %v8335_v53  ;;  %v6551_v1 = vadd.f32 %v6550_v63, %v6549_v59  ;;  %v7785_v63 = vld [vmem:[%s9739_s3 + $0x8] sm:$0xff]  }
 0x135   : > { %v794_v2 = vadd.f32 %v6493_v62, %v8335_v53  ;;  %v845_v5 = vmax.f32 %v791_v61, 0.0 }
 0x136   : > { %v1183_v3 = vmax.f32 %v1129_v0, 0.0  ;;  %v1132_v4 = vadd.f32 %v6551_v1, %v8335_v53 }
 0x137   : > { %v846_v6 = vmax.f32 %v794_v2, 0.0  ;;  %v6494_v7 = vpop.f32.mrb[4].mxu0 }
 0x138   : > { %v1184_v8 = vmax.f32 %v1132_v4, 0.0  ;;  %v6552_v9 = vpop.f32.mrb[4].mxu1  ;;  %v6495_v10 = vpop.f32.mrb[5].mxu0 }
 0x139   : > { %v859_v11 = vpack.c.bf16 %v846_v6, %v845_v5  ;;  %v6496_v12 = vadd.f32 %v6495_v10, %v6494_v7  ;;  %v6553_v13 = vpop.f32.mrb[5].mxu1  ;;  %v6497_v14 = vpop.f32.mrb[6].mxu0 }
 0x13a   : > { %v1197_v15 = vpack.c.bf16 %v1184_v8, %v1183_v3  ;;  %v6554_v16 = vadd.f32 %v6553_v13, %v6552_v9  ;;  %v6555_v17 = vpop.f32.mrb[6].mxu1  ;;  %v6498_v18 = vpop.f32.mrb[7].mxu0 }
 0x13b   : > { %867 = vst.msk [vmem:[#allocation2] sm:$0xff] %vm866_vm0, %v859_v11  ;;  %v799_v19 = vadd.f32 %v6496_v12, %v8335_v53  ;;  %v6499_v20 = vadd.f32 %v6498_v18, %v6497_v14  ;;  %v6556_v21 = vpop.f32.mrb[7].mxu1  ;;  %v7786_v11 = vld [vmem:[%s9739_s3 + $0x20] sm:$0xff]  }
 0x13c   : > { %1205 = vst.msk [vmem:[#allocation2 + $0x38] sm:$0xff] %vm866_vm0, %v1197_v15  ;;  %v1137_v22 = vadd.f32 %v6554_v16, %v8335_v53  ;;  %v6557_v23 = vadd.f32 %v6556_v21, %v6555_v17 }
 0x13d   : > { %v802_v24 = vadd.f32 %v6499_v20, %v8335_v53  ;;  %v847_v27 = vmax.f32 %v799_v19, 0.0 }
 0x13e   : > { %v1185_v25 = vmax.f32 %v1137_v22, 0.0  ;;  %v1140_v26 = vadd.f32 %v6557_v23, %v8335_v53 }
 0x13f   : > { %v848_v28 = vmax.f32 %v802_v24, 0.0  ;;  %v6500_v29 = vpop.f32.mrb[8].mxu0 }
 0x140   : > { %v1186_v30 = vmax.f32 %v1140_v26, 0.0  ;;  %v6558_v31 = vpop.f32.mrb[8].mxu1  ;;  %v6501_v32 = vpop.f32.mrb[9].mxu0 }
 0x141   : > { %v860_v33 = vpack.c.bf16 %v848_v28, %v847_v27  ;;  %v6502_v34 = vadd.f32 %v6501_v32, %v6500_v29  ;;  %v6559_v35 = vpop.f32.mrb[9].mxu1  ;;  %v6503_v36 = vpop.f32.mrb[10].mxu0 }
 0x142   : > { %v1198_v37 = vpack.c.bf16 %v1186_v30, %v1185_v25  ;;  %v6560_v38 = vadd.f32 %v6559_v35, %v6558_v31  ;;  %v6561_v39 = vpop.f32.mrb[10].mxu1  ;;  %v6504_v40 = vpop.f32.mrb[11].mxu0  ;;  %v8367_v6 = vld [vmem:[#allocation2] sm:$0xff] }
 0x143   : > { %868 = vst.msk [vmem:[#allocation2 + $0x8] sm:$0xff] %vm866_vm0, %v860_v33  ;;  %v807_v41 = vadd.f32 %v6502_v34, %v8335_v53  ;;  %v6505_v42 = vadd.f32 %v6504_v40, %v6503_v36  ;;  %v6562_v43 = vpop.f32.mrb[11].mxu1  ;;  %v8349_v44 = vld [vmem:[#allocation2 + $0x38] sm:$0xff] }
 0x144   : > { %1206 = vst.msk [vmem:[#allocation2 + $0x40] sm:$0xff] %vm866_vm0, %v1198_v37  ;;  %v1145_v45 = vadd.f32 %v6560_v38, %v8335_v53  ;;  %v6563_v46 = vadd.f32 %v6562_v43, %v6561_v39  ;;  %6917 = vmatprep.mubr.msk.bf16.mxu0 %vm866_vm0, %v8349_v44  ;;  %v7787_v37 = vld [vmem:[%s9739_s3 + $0x28] sm:$0xff]  }
 0x145   : > { %v810_v47 = vadd.f32 %v6505_v42, %v8335_v53  ;;  %v849_v51 = vmax.f32 %v807_v41, 0.0 }
 0x146   : > { %v1187_v48 = vmax.f32 %v1145_v45, 0.0  ;;  %v1148_v49 = vadd.f32 %v6563_v46, %v8335_v53 }
 0x147   : > { %v850_v52 = vmax.f32 %v810_v47, 0.0  ;;  %v6506_v54 = vpop.f32.mrb[12].mxu0 }
 0x148   : > { %v1188_v55 = vmax.f32 %v1148_v49, 0.0  ;;  %v6507_v56 = vpop.f32.mrb[13].mxu0  ;;  %v6564_v60 = vpop.f32.mrb[12].mxu1 }
 0x149   : > { %v861_v57 = vpack.c.bf16 %v850_v52, %v849_v51  ;;  %v6508_v58 = vadd.f32 %v6507_v56, %v6506_v54  ;;  %v6509_v59 = vpop.f32.mrb[14].mxu0  ;;  %v6565_v0 = vpop.f32.mrb[13].mxu1  ;;  %v8411_v56 = vld [vmem:[%s9739_s3 + $0x30] sm:$0xff]  }
 0x14a   : > { %v1199_v61 = vpack.c.bf16 %v1188_v55, %v1187_v48  ;;  %v6510_v62 = vpop.f32.mrb[15].mxu0  ;;  %v6566_v4 = vadd.f32 %v6565_v0, %v6564_v60  ;;  %v6567_v5 = vpop.f32.mrb[14].mxu1  ;;  %v8377_v15 = vld [vmem:[#allocation2 + $0x8] sm:$0xff] }
 0x14b   : > { %869 = vst.msk [vmem:[#allocation2 + $0x10] sm:$0xff] %vm866_vm0, %v861_v57  ;;  %v815_v1 = vadd.f32 %v6508_v58, %v8335_v53  ;;  %v6511_v2 = vadd.f32 %v6510_v62, %v6509_v59  ;;  %v8362_v3 = vld [vmem:[#allocation2 + $0x40] sm:$0xff]  ;;  %v6568_v7 = vpop.f32.mrb[15].mxu1  ;;  %v2152_v25 = vshll.u32 %v8377_v15, 16  ;;  %v2156_v26 = vshrl.u32 %v8377_v15, 16 }
 0x14c   : > { %1207 = vst.msk [vmem:[#allocation2 + $0x48] sm:$0xff] %vm866_vm0, %v1199_v61  ;;  %6918 = vmatmul.mubr.msk.bf16.vlgmr.msra.gmra.mrb[56].mxu0 %vm866_vm0, %v8362_v3  ;;  %v1153_v9 = vadd.f32 %v6566_v4, %v8335_v53  ;;  %v6569_v10 = vadd.f32 %v6568_v7, %v6567_v5  ;;  %v9750_v46 = vrot.slane %v8377_v15, 5  ;;  %v9747_v0 = vrot.slane %v8362_v3, 5 }
 0x14d   : > { %v818_v8 = vadd.f32 %v6511_v2, %v8335_v53  ;;  %6933 = vmatprep.mubr.msk.bf16.mxu0 %vm866_vm0, %v8367_v6  ;;  %6930 = vmatpush3.bf16.msra.mxu0 %v8329_v50  ;;  %v851_v12 = vmax.f32 %v815_v1, 0.0  ;;  %v3464_v40 = vrot.slane %v2156_v26, 5  ;;  %v3465_v41 = vrot.slane %v2152_v25, 6 }
 0x14e   : > { %6931 = vmatprep.subr.bf16.mxu0 %v7785_v63  ;;  %v1189_v16 = vmax.f32 %v1153_v9, 0.0  ;;  %v1156_v17 = vadd.f32 %v6569_v10, %v8335_v53 }
 0x14f   : > { %v852_v13 = vmax.f32 %v818_v8, 0.0  ;;  %v6512_v14 = vpop.f32.mrb[16].mxu0  ;;  %v8423_v1 = vor.u32 %v3465_v41, %v3464_v40 }
 0x150   : > { %v6513_v18 = vpop.f32.mrb[17].mxu0  ;;  %v1190_v21 = vmax.f32 %v1156_v17, 0.0  ;;  %v6570_v24 = vpop.f32.mrb[16].mxu1 }
 0x151   : > { %v862_v19 = vpack.c.bf16 %v852_v13, %v851_v12  ;;  %v6514_v20 = vadd.f32 %v6513_v18, %v6512_v14  ;;  %v6515_v50 = vpop.f32.mrb[18].mxu0  ;;  %6932 = vmatpush3.bf16.msra.mxu0 %v7785_v63  ;;  %v6571_v30 = vpop.f32.mrb[17].mxu1 }
 0x152   : > { %v6516_v22 = vpop.f32.mrb[19].mxu0  ;;  %v8380_v23 = vld [vmem:[#allocation2 + $0x10] sm:$0xff]  ;;  %6945 = vmatprep.subr.bf16.mxu0 %v7786_v11  ;;  %v1200_v29 = vpack.c.bf16 %v1190_v21, %v1189_v16  ;;  %v6572_v32 = vadd.f32 %v6571_v30, %v6570_v24  ;;  %v6573_v33 = vpop.f32.mrb[18].mxu1  ;;  %v2147_v24 = vshll.u32 %v8367_v6, 16 }
 0x153   : > { %870 = vst.msk [vmem:[#allocation2 + $0x18] sm:$0xff] %vm866_vm0, %v862_v19  ;;  %v823_v27 = vadd.f32 %v6514_v20, %v8335_v53  ;;  %v6517_v28 = vadd.f32 %v6516_v22, %v6515_v50  ;;  %v8386_v31 = vld [vmem:[#allocation2 + $0x48] sm:$0xff]  ;;  %v6574_v35 = vpop.f32.mrb[19].mxu1  ;;  %v3166_v36 = vrot.slane %v8380_v23, 5  ;;  %v2164_v51 = vshrl.u32 %v8380_v23, 16 }
 0x154   : > { %6921 = vmatprep.mubr.msk.bf16.mxu1 %vm866_vm0, %v8386_v31  ;;  %1208 = vst.msk [vmem:[#allocation2 + $0x50] sm:$0xff] %vm866_vm0, %v1200_v29  ;;  %v1161_v38 = vadd.f32 %v6572_v32, %v8335_v53  ;;  %v6575_v39 = vadd.f32 %v6574_v35, %v6573_v33  ;;  %v3316_v58 = vrot.slane %v8386_v31, 5  ;;  %v2160_v63 = vshll.u32 %v8380_v23, 16 }
 0x155   : > { %v826_v34 = vadd.f32 %v6517_v28, %v8335_v53  ;;  %v853_v42 = vmax.f32 %v823_v27, 0.0  ;;  %v8416_v57 = vsel %vm3162_vm1, %v9750_v46, %v3166_v36  ;;  %v3468_v16 = vrot.slane %v2164_v51, 5 }
 0x156   : > { %v1191_v48 = vmax.f32 %v1161_v38, 0.0  ;;  %v1164_v49 = vadd.f32 %v6575_v39, %v8335_v53  ;;  %v8433_v12 = vsel %vm3162_vm1, %v9747_v0, %v3316_v58  ;;  %v3469_v20 = vrot.slane %v2160_v63, 6 }
 0x157   : > { %v854_v43 = vmax.f32 %v826_v34, 0.0  ;;  %v6518_v45 = vpop.f32.mrb[20].mxu0 }
 0x158   : > { %6934 = vmatmul.mubr.msk.bf16.vlgmr.msra.gmra.mrb[56].mxu0 %vm866_vm0, %v8377_v15  ;;  %v6519_v47 = vpop.f32.mrb[21].mxu0  ;;  %v1192_v61 = vmax.f32 %v1164_v49, 0.0  ;;  %v6576_v62 = vpop.f32.mrb[20].mxu1 }
 0x159   : > { %v863_v52 = vpack.c.bf16 %v854_v43, %v853_v42  ;;  %v6520_v54 = vadd.f32 %v6519_v47, %v6518_v45  ;;  %6937 = vmatprep.mubr.msk.bf16.mxu0 %vm866_vm0, %v8380_v23  ;;  %v6521_v55 = vpop.f32.mrb[22].mxu0  ;;  %6946 = vmatpush3.bf16.msra.mxu0 %v7786_v11  ;;  %v6577_v5 = vpop.f32.mrb[21].mxu1  ;;  %v3470_v42 = vor.u32 %v3469_v20, %v3468_v16  ;;  %v2145_v47 = vshrl.u32 %v8367_v6, 16 }
 0x15a   : > { %v6522_v59 = vpop.f32.mrb[23].mxu0  ;;  %v8419_v60 = vld [vmem:[#allocation2 + $0x18] sm:$0xff]  ;;  %6947 = vmatprep.subr.bf16.mxu0 %v7787_v37  ;;  %v1201_v7 = vpack.c.bf16 %v1192_v61, %v1191_v48  ;;  %v6578_v8 = vadd.f32 %v6577_v5, %v6576_v62  ;;  %v6579_v9 = vpop.f32.mrb[22].mxu1  ;;  %v2149_v48 = vrot.slane %v2147_v24, 1 }
 0x15b   : > { %871 = vst.msk [vmem:[#allocation2 + $0x20] sm:$0xff] %vm866_vm0, %v863_v52  ;;  %v831_v2 = vadd.f32 %v6520_v54, %v8335_v53  ;;  %v6523_v4 = vadd.f32 %v6522_v59, %v6521_v55  ;;  %v8427_v10 = vld [vmem:[#allocation2 + $0x50] sm:$0xff]  ;;  %v3168_v11 = vrot.slane %v8419_v60, 5  ;;  %v6580_v14 = vpop.f32.mrb[23].mxu1  ;;  %v2168_v35 = vshll.u32 %v8419_v60, 16 }
 0x15c   : > { %6922 = vmatmul.mubr.msk.bf16.vlgmr.msra.gmra.mrb[56].mxu1 %vm866_vm0, %v8427_v10  ;;  %1209 = vst.msk [vmem:[#allocation2 + $0x58] sm:$0xff] %vm866_vm0, %v1201_v7  ;;  %v1169_v17 = vadd.f32 %v6578_v8, %v8335_v53  ;;  %v6581_v18 = vadd.f32 %v6580_v14, %v6579_v9  ;;  %v3318_v30 = vrot.slane %v8427_v10, 5  ;;  %v8468_v59 = vsel %vm3455_vm2, %v8423_v1, %v3470_v42 }
 0x15d   : > { %v834_v13 = vadd.f32 %v6523_v4, %v8335_v53  ;;  %6948 = vmatpush3.bf16.msra.mxu0 %v7787_v37  ;;  %v8444_v19 = vsel %vm3162_vm1, %v3166_v36, %v3168_v11  ;;  %v855_v50 = vmax.f32 %v831_v2, 0.0  ;;  %v2172_v36 = vshrl.u32 %v8419_v60, 16 }
 0x15e   : > { %6961 = vmatprep.subr.bf16.mxu0 %v8411_v56  ;;  %v1193_v28 = vmax.f32 %v1169_v17, 0.0  ;;  %v1172_v29 = vadd.f32 %v6581_v18, %v8335_v53  ;;  %v8458_v41 = vsel %vm3162_vm1, %v3316_v58, %v3318_v30  ;;  %v3473_v5 = vrot.slane %v2168_v35, 6 }
 0x15f   : > { %v856_v21 = vmax.f32 %v834_v13, 0.0  ;;  %v6524_v22 = vpop.f32.mrb[24].mxu0  ;;  %v3472_v6 = vrot.slane %v2172_v36, 5  ;;  %v2150_v13 = vor.u32 %v2149_v48, %v2145_v47  ;;  %v2154_v14 = vrot.slane %v2152_v25, 1 }
 0x160   : > { %6938 = vmatmul.mubr.msk.bf16.gmra.mrb[60].mxu0 %vm866_vm0, %v8419_v60  ;;  %v6525_v27 = vpop.f32.mrb[25].mxu0  ;;  %v1194_v39 = vmax.f32 %v1172_v29, 0.0  ;;  %v6582_v40 = vpop.f32.mrb[24].mxu1  ;;  %v2162_v48 = vrot.slane %v2160_v63, 1 }
 0x161   : > { %v864_v32 = vpack.c.bf16 %v856_v21, %v855_v50  ;;  %v6526_v33 = vadd.f32 %v6525_v27, %v6524_v22  ;;  %v6527_v34 = vpop.f32.mrb[26].mxu0  ;;  %v6583_v49 = vpop.f32.mrb[25].mxu1  ;;  %v3474_v25 = vor.u32 %v3473_v5, %v3472_v6 }
 0x162   : > { %v6528_v37 = vpop.f32.mrb[27].mxu0  ;;  %v8455_v38 = vld [vmem:[#allocation2 + $0x20] sm:$0xff]  ;;  %v1202_v52 = vpack.c.bf16 %v1194_v39, %v1193_v28  ;;  %v6584_v54 = vadd.f32 %v6583_v49, %v6582_v40  ;;  %v6585_v55 = vpop.f32.mrb[26].mxu1 }
 0x163   : > { %872 = vst.msk [vmem:[#allocation2 + $0x28] sm:$0xff] %vm866_vm0, %v864_v32  ;;  %v839_v43 = vadd.f32 %v6526_v33, %v8335_v53  ;;  %v6529_v45 = vadd.f32 %v6528_v37, %v6527_v34  ;;  %6941 = vmatprep.mubr.msk.bf16.mxu0 %vm866_vm0, %v8455_v38  ;;  %v3170_v58 = vrot.slane %v8455_v38, 5  ;;  %v6586_v2 = vpop.f32.mrb[27].mxu1  ;;  %v8471_v4 = vld [vmem:[#allocation2 + $0x58] sm:$0xff]  ;;  %v2176_v21 = vshll.u32 %v8455_v38, 16 }
 0x164   : > { %1210 = vst.msk [vmem:[#allocation2 + $0x60] sm:$0xff] %vm866_vm0, %v1202_v52  ;;  %v1177_v7 = vadd.f32 %v6584_v54, %v8335_v53  ;;  %v6587_v8 = vadd.f32 %v6586_v2, %v6585_v55  ;;  %6925 = vmatprep.mubr.msk.bf16.mxu1 %vm866_vm0, %v8471_v4  ;;  %v3320_v22 = vrot.slane %v8471_v4, 5  ;;  %v2180_v29 = vshrl.u32 %v8455_v38, 16 }
 0x165   : > { %v857_v61 = vmax.f32 %v839_v43, 0.0  ;;  %v842_v62 = vadd.f32 %v6529_v45, %v8335_v53  ;;  %v8486_v17 = vsel %vm3162_vm1, %v3168_v11, %v3170_v58  ;;  %v2334_v11 = vshll.u32 %v8349_v44, 16 }
 0x166   : > { %v1195_v20 = vmax.f32 %v1177_v7, 0.0  ;;  %v1180_v50 = vadd.f32 %v6587_v8, %v8335_v53  ;;  %v2339_v37 = vshll.u32 %v8362_v3, 16  ;;  %v8497_v40 = vsel %vm3162_vm1, %v3318_v30, %v3320_v22 }
 0x167   : > { %v858_v9 = vmax.f32 %v842_v62, 0.0  ;;  %v6604_v16 = vpop.f32.mrb[28].mxu0  ;;  %v2155_v43 = vsel %vm2143_vm3, %v2150_v13, %v2154_v14  ;;  %v3476_v63 = vrot.slane %v2180_v29, 5  ;;  %v3477_v7 = vrot.slane %v2176_v21, 6 }
 0x168   : > { %v6605_v18 = vpop.f32.mrb[29].mxu0  ;;  %v1196_v34 = vmax.f32 %v1180_v50, 0.0  ;;  %v6662_v39 = vpop.f32.mrb[28].mxu1  ;;  %v2158_v8 = vor.u32 %v2156_v26, %v2154_v14 }
 0x169   : > { %v865_v24 = vpack.c.bf16 %v858_v9, %v857_v61  ;;  %v6606_v27 = vadd.f32 %v6605_v18, %v6604_v16  ;;  %v6607_v28 = vpop.f32.mrb[30].mxu0  ;;  %v6663_v49 = vpop.f32.mrb[29].mxu1  ;;  %v8509_v61 = vsel %vm3455_vm2, %v3470_v42, %v3474_v25  ;;  %v2170_v9 = vrot.slane %v2168_v35, 1 }
 0x16a   : > { %v8492_v32 = vld [vmem:[#allocation2 + $0x28] sm:$0xff]  ;;  %v6608_v33 = vpop.f32.mrb[31].mxu0  ;;  %v1203_v52 = vpack.c.bf16 %v1196_v34, %v1195_v20  ;;  %v6664_v54 = vadd.f32 %v6663_v49, %v6662_v39  ;;  %v6665_v30 = vpop.f32.mrb[30].mxu1  ;;  %v2166_v20 = vor.u32 %v2164_v51, %v2162_v48  ;;  %v7789_v34 = vld [vmem:[%s9739_s3 + $0x38] sm:$0xff]   ;;  %v2343_v39 = vshrl.u32 %v8362_v3, 16 }
 0x16b   : > { %873 = vst.msk [vmem:[#allocation2 + $0x30] sm:$0xff] %vm866_vm0, %v865_v24  ;;  %6942 = vmatmul.mubr.msk.bf16.gmra.mrb[64].mxu0 %vm866_vm0, %v8492_v32  ;;  %v1467_v45 = vadd.f32 %v6606_v27, %v8335_v53  ;;  %v6609_v47 = vadd.f32 %v6608_v33, %v6607_v28  ;;  %v9749_v55 = vrot.slane %v8492_v32, 5  ;;  %v8512_v6 = vld [vmem:[#allocation2 + $0x60] sm:$0xff]  ;;  %v6666_v5 = vpop.f32.mrb[31].mxu1  ;;  %v2188_v50 = vshrl.u32 %v8492_v32, 16 }
 0x16c   : > { %6949 = vmatprep.mubr.msk.bf16.mxu0 %vm866_vm0, %v2155_v43  ;;  %1211 = vst.msk [vmem:[#allocation2 + $0x68] sm:$0xff] %vm866_vm0, %v1203_v52  ;;  %6926 = vmatmul.mubr.msk.bf16.gmra.mrb[60].mxu1 %vm866_vm0, %v8512_v6  ;;  %v1805_v42 = vadd.f32 %v6664_v54, %v8335_v53  ;;  %v6667_v13 = vadd.f32 %v6666_v5, %v6665_v30  ;;  %v2184_v14 = vshll.u32 %v8492_v32, 16  ;;  %v9746_v28 = vrot.slane %v8512_v6, 5 }
 0x16d   : > { %v1521_v62 = vmax.f32 %v1467_v45, 0.0  ;;  %v1470_v2 = vadd.f32 %v6609_v47, %v8335_v53  ;;  %v8534_v26 = vsel %vm3162_vm1, %v3170_v58, %v9749_v55  ;;  %v3478_v43 = vor.u32 %v3477_v7, %v3476_v63 }
 0x16e   : > { %v1859_v24 = vmax.f32 %v1805_v42, 0.0  ;;  %v1808_v27 = vadd.f32 %v6667_v13, %v8335_v53  ;;  %v2163_v58 = vsel %vm2143_vm3, %v2158_v8, %v2162_v48  ;;  %v2171_v45 = vsel %vm2143_vm3, %v2166_v20, %v2170_v9 }
 0x16f   : > { %v1522_v16 = vmax.f32 %v1470_v2, 0.0  ;;  %v6610_v18 = vpop.f32.mrb[32].mxu0  ;;  %v8548_v54 = vsel %vm3162_vm1, %v3320_v22, %v9746_v28  ;;  %v8554_v48 = vsel %vm3455_vm2, %v3474_v25, %v3478_v43  ;;  %v3480_v5 = vrot.slane %v2188_v50, 5 }
 0x170   : > { %v6611_v35 = vpop.f32.mrb[33].mxu0  ;;  %v1860_v49 = vmax.f32 %v1808_v27, 0.0  ;;  %v6668_v52 = vpop.f32.mrb[32].mxu1  ;;  %v2332_v22 = vshrl.u32 %v8349_v44, 16  ;;  %v3481_v42 = vrot.slane %v2184_v14, 6  ;;  %v2178_v25 = vrot.slane %v2176_v21, 1 }
 0x171   : > { %v1535_v33 = vpack.c.bf16 %v1522_v16, %v1521_v62  ;;  %v6612_v23 = vadd.f32 %v6611_v35, %v6610_v18  ;;  %v6613_v51 = vpop.f32.mrb[34].mxu0  ;;  %v6669_v2 = vpop.f32.mrb[33].mxu1  ;;  %v2336_v18 = vrot.slane %v2334_v11, 1  ;;  %v3630_v27 = vrot.slane %v2343_v39, 5 }
 0x172   : > { %v6614_v47 = vpop.f32.mrb[35].mxu0  ;;  %v1873_v63 = vpack.c.bf16 %v1860_v49, %v1859_v24  ;;  %v6670_v7 = vadd.f32 %v6669_v2, %v6668_v52  ;;  %v6671_v8 = vpop.f32.mrb[34].mxu1  ;;  %v3631_v21 = vrot.slane %v2339_v37, 6  ;;  %v2186_v11 = vrot.slane %v2184_v14, 1 }
 0x173   : > { %1543 = vst.msk [vmem:[#allocation2 + $0x70] sm:$0xff] %vm866_vm0, %v1535_v33  ;;  %6950 = vmatmul.mubr.msk.bf16.vlgmr.msra.gmra.mrb[56].mxu0 %vm866_vm0, %v2163_v58  ;;  %v1475_v30 = vadd.f32 %v6612_v23, %v8335_v53  ;;  %v6615_v62 = vadd.f32 %v6614_v47, %v6613_v51  ;;  %v6672_v20 = vpop.f32.mrb[35].mxu1  ;;  %v2137_v23 = vld [vmem:[#allocation2 + $0x30] sm:$0x1]  ;;  %v2351_v51 = vshrl.u32 %v8386_v31, 16  ;;  %v8578_v58 = vor.u32 %v3481_v42, %v3480_v5 }
 0x174   : > { %6962 = vmatpush3.bf16.msra.mxu0 %v8411_v56  ;;  %6953 = vmatprep.mubr.msk.bf16.mxu0 %vm866_vm0, %v2171_v45  ;;  %v8569_v56 = vld [vmem:[%s9739_s3 + $0x40] sm:$0xff]   ;;  %1881 = vst.msk [vmem:[#allocation2 + $0xa8] sm:$0xff] %vm866_vm0, %v1873_v63  ;;  %v1813_v35 = vadd.f32 %v6670_v7, %v8335_v53  ;;  %v6673_v24 = vadd.f32 %v6672_v20, %v6671_v8  ;;  %v2347_v49 = vshll.u32 %v8386_v31, 16  ;;  %v2359_v20 = vshrl.u32 %v8427_v10, 16  ;;  %v7791_v31 = vld [vmem:[%s9739_s3 + $0x48] sm:$0xff]  }
 0x175   : > { %v1523_v13 = vmax.f32 %v1475_v30, 0.0  ;;  %v1478_v16 = vadd.f32 %v6615_v62, %v8335_v53  ;;  %6963 = vmatprep.subr.bf16.mxu0 %v7789_v34  ;;  %v2174_v45 = vor.u32 %v2172_v36, %v2170_v9  ;;  %v2182_v2 = vor.u32 %v2180_v29, %v2178_v25 }
 0x176   : > { %v1861_v52 = vmax.f32 %v1813_v35, 0.0  ;;  %v1816_v30 = vadd.f32 %v6673_v24, %v8335_v53  ;;  %v8589_v5 = vsel %vm3455_vm2, %v3478_v43, %v8578_v58  ;;  %v2192_v9 = vshll.u32 %v2137_v23, 16 }
 0x177   : > { %v1524_v33 = vmax.f32 %v1478_v16, 0.0  ;;  %v6616_v44 = vpop.f32.mrb[36].mxu0  ;;  %v2179_v60 = vsel %vm2143_vm3, %v2174_v45, %v2178_v25  ;;  %v8592_v8 = vor.u32 %v3631_v21, %v3630_v27  ;;  %v2187_v38 = vsel %vm2143_vm3, %v2182_v2, %v2186_v11 }
 0x178   : > { %v6617_v47 = vpop.f32.mrb[37].mxu0  ;;  %6964 = vmatpush3.bf16.msra.mxu0 %v7789_v34  ;;  %v1862_v34 = vmax.f32 %v1816_v30, 0.0  ;;  %v6674_v7 = vpop.f32.mrb[36].mxu1  ;;  %v3634_v43 = vrot.slane %v2351_v51, 5  ;;  %v2337_v16 = vor.u32 %v2336_v18, %v2332_v22  ;;  %v3635_v23 = vrot.slane %v2347_v49, 6 }
 0x179   : > { %v1536_v62 = vpack.c.bf16 %v1524_v33, %v1523_v13  ;;  %v6618_v14 = vadd.f32 %v6617_v47, %v6616_v44  ;;  %v6619_v63 = vpop.f32.mrb[38].mxu0  ;;  %6977 = vmatprep.subr.bf16.mxu0 %v8569_v56  ;;  %v6675_v13 = vpop.f32.mrb[37].mxu1  ;;  %v2341_v33 = vrot.slane %v2339_v37, 1  ;;  %v2194_v45 = vrot.slane %v2192_v9, 1 }
 0x17a   : > { %v6620_v36 = vpop.f32.mrb[39].mxu0  ;;  %v1874_v25 = vpack.c.bf16 %v1862_v34, %v1861_v52  ;;  %v6676_v35 = vadd.f32 %v6675_v13, %v6674_v7  ;;  %v6677_v24 = vpop.f32.mrb[38].mxu1  ;;  %v2355_v47 = vshll.u32 %v8427_v10, 16  ;;  %v2367_v2 = vshrl.u32 %v8471_v4, 16 }
 0x17b   : > { %1544 = vst.msk [vmem:[#allocation2 + $0x78] sm:$0xff] %vm866_vm0, %v1536_v62  ;;  %6954 = vmatmul.mubr.msk.bf16.gmra.mrb[60].mxu0 %vm866_vm0, %v2179_v60  ;;  %v1483_v29 = vadd.f32 %v6618_v14, %v8335_v53  ;;  %v6621_v42 = vadd.f32 %v6620_v36, %v6619_v63  ;;  %v6678_v44 = vpop.f32.mrb[39].mxu1  ;;  %v2363_v62 = vshll.u32 %v8471_v4, 16  ;;  %v3636_v14 = vor.u32 %v3635_v23, %v3634_v43 }
 0x17c   : > { %6957 = vmatprep.mubr.msk.bf16.mxu0 %vm866_vm0, %v2187_v38  ;;  %1882 = vst.msk [vmem:[#allocation2 + $0xb0] sm:$0xff] %vm866_vm0, %v1874_v25  ;;  %v1821_v22 = vadd.f32 %v6676_v35, %v8335_v53  ;;  %v6679_v18 = vadd.f32 %v6678_v44, %v6677_v24  ;;  %v2190_v37 = vor.u32 %v2188_v50, %v2186_v11  ;;  %v3638_v9 = vrot.slane %v2359_v20, 5 }
 0x17d   : > { %v1525_v27 = vmax.f32 %v1483_v29, 0.0  ;;  %v1486_v21 = vadd.f32 %v6621_v42, %v8335_v53  ;;  %v8619_v29 = vsel %vm3455_vm2, %v8592_v8, %v3636_v14  ;;  %v2342_v43 = vsel %vm2143_vm3, %v2337_v16, %v2341_v33 }
 0x17e   : > { %v1863_v60 = vmax.f32 %v1821_v22, 0.0  ;;  %v1824_v36 = vadd.f32 %v6679_v18, %v8335_v53  ;;  %v2195_v42 = vsel %vm2143_vm3, %v2190_v37, %v2194_v45  ;;  %v3639_v25 = vrot.slane %v2355_v47, 6 }
 0x17f   : > { %v1526_v52 = vmax.f32 %v1486_v21, 0.0  ;;  %v6622_v30 = vpop.f32.mrb[40].mxu0  ;;  %v3642_v44 = vrot.slane %v2367_v2, 5  ;;  %v3643_v18 = vrot.slane %v2363_v62, 6  ;;  %v2349_v37 = vrot.slane %v2347_v49, 1 }
 0x180   : > { %v6623_v63 = vpop.f32.mrb[41].mxu0  ;;  %v1864_v50 = vmax.f32 %v1824_v36, 0.0  ;;  %v6680_v11 = vpop.f32.mrb[40].mxu1  ;;  %v3640_v22 = vor.u32 %v3639_v25, %v3638_v9 }
 0x181   : > { %v1537_v34 = vpack.c.bf16 %v1526_v52, %v1525_v27  ;;  %v6624_v7 = vadd.f32 %v6623_v63, %v6622_v30  ;;  %v6625_v38 = vpop.f32.mrb[42].mxu0  ;;  %v2375_v27 = vshrl.u32 %v8512_v6, 16  ;;  %v6681_v21 = vpop.f32.mrb[41].mxu1  ;;  %v2371_v63 = vshll.u32 %v8512_v6, 16 }
 0x182   : > { %v6626_v13 = vpop.f32.mrb[43].mxu0  ;;  %v1875_v16 = vpack.c.bf16 %v1864_v50, %v1863_v60  ;;  %v6682_v23 = vadd.f32 %v6681_v21, %v6680_v11  ;;  %v6683_v45 = vpop.f32.mrb[42].mxu1  ;;  %v3644_v25 = vor.u32 %v3643_v18, %v3642_v44 }
 0x183   : > { %1545 = vst.msk [vmem:[#allocation2 + $0x80] sm:$0xff] %vm866_vm0, %v1537_v34  ;;  %6958 = vmatmul.mubr.msk.bf16.gmra.mrb[64].mxu0 %vm866_vm0, %v2195_v42  ;;  %v1491_v35 = vadd.f32 %v6624_v7, %v8335_v53  ;;  %v6627_v24 = vadd.f32 %v6626_v13, %v6625_v38  ;;  %v6684_v36 = vpop.f32.mrb[43].mxu1  ;;  %v2345_v34 = vor.u32 %v2343_v39, %v2341_v33  ;;  %v3646_v39 = vrot.slane %v2375_v27, 5 }
 0x184   : > { %6965 = vmatprep.mubr.msk.bf16.mxu0 %vm866_vm0, %v2342_v43  ;;  %1883 = vst.msk [vmem:[#allocation2 + $0xb8] sm:$0xff] %vm866_vm0, %v1875_v16  ;;  %v1829_v60 = vadd.f32 %v6682_v23, %v8335_v53  ;;  %v6685_v9 = vadd.f32 %v6684_v36, %v6683_v45  ;;  %v2353_v42 = vor.u32 %v2351_v51, %v2349_v37  ;;  %v2357_v43 = vrot.slane %v2355_v47, 1 }
 0x185   : > { %v1527_v52 = vmax.f32 %v1491_v35, 0.0  ;;  %v1494_v30 = vadd.f32 %v6627_v24, %v8335_v53  ;;  %v8643_v13 = vsel %vm3455_vm2, %v3636_v14, %v3640_v22  ;;  %v3647_v51 = vrot.slane %v2371_v63, 6 }
 0x186   : > { %v1865_v50 = vmax.f32 %v1829_v60, 0.0  ;;  %v1832_v11 = vadd.f32 %v6685_v9, %v8335_v53  ;;  %v2350_v47 = vsel %vm2143_vm3, %v2345_v34, %v2349_v37  ;;  %v8653_v23 = vsel %vm3455_vm2, %v3640_v22, %v3644_v25 }
 0x187   : > { %v1528_v7 = vmax.f32 %v1494_v30, 0.0  ;;  %v6628_v38 = vpop.f32.mrb[44].mxu0  ;;  %v2358_v44 = vsel %vm2143_vm3, %v2353_v42, %v2357_v43  ;;  %v8661_v34 = vor.u32 %v3647_v51, %v3646_v39  ;;  %v2365_v9 = vrot.slane %v2363_v62, 1 }
 0x188   : > { %v6629_v49 = vpop.f32.mrb[45].mxu0  ;;  %v1866_v21 = vmax.f32 %v1832_v11, 0.0  ;;  %v6686_v16 = vpop.f32.mrb[44].mxu1  ;;  %v2373_v39 = vrot.slane %v2371_v63, 1 }
 0x189   : > { %v1538_v33 = vpack.c.bf16 %v1528_v7, %v1527_v52  ;;  %v6630_v35 = vadd.f32 %v6629_v49, %v6628_v38  ;;  %v6631_v24 = vpop.f32.mrb[46].mxu0  ;;  %v6687_v52 = vpop.f32.mrb[45].mxu1  ;;  %v8669_v7 = vld [vmem:[%s9739_s3 + $0x50] sm:$0xff]   ;;  %v2361_v38 = vor.u32 %v2359_v20, %v2357_v43  ;;  %v2369_v62 = vor.u32 %v2367_v2, %v2365_v9 }
 0x18a   : > { %v6632_v14 = vpop.f32.mrb[47].mxu0  ;;  %v1876_v30 = vpack.c.bf16 %v1866_v21, %v1865_v50  ;;  %v6688_v37 = vadd.f32 %v6687_v52, %v6686_v16  ;;  %v6689_v36 = vpop.f32.mrb[46].mxu1  ;;  %v8684_v63 = vld [vmem:[#allocation2 + $0x80] sm:$0xff] }
 0x18b   : > { %1546 = vst.msk [vmem:[#allocation2 + $0x88] sm:$0xff] %vm866_vm0, %v1538_v33  ;;  %6966 = vmatmul.mubr.msk.bf16.vlgmr.msra.gmra.mrb[56].mxu0 %vm866_vm0, %v2350_v47  ;;  %v1499_v45 = vadd.f32 %v6630_v35, %v8335_v53  ;;  %v6633_v18 = vadd.f32 %v6632_v14, %v6631_v24  ;;  %v2325_v33 = vld [vmem:[#allocation2 + $0x68] sm:$0x1]  ;;  %v8679_v35 = vsel %vm3455_vm2, %v3644_v25, %v8661_v34 }
 0x18c   : > { %6978 = vmatpush3.bf16.msra.mxu0 %v8569_v56  ;;  %6969 = vmatprep.mubr.msk.bf16.mxu0 %vm866_vm0, %v2358_v44  ;;  %v6690_v56 = vpop.f32.mrb[47].mxu1  ;;  %1884 = vst.msk [vmem:[#allocation2 + $0xc0] sm:$0xff] %vm866_vm0, %v1876_v30  ;;  %v1837_v42 = vadd.f32 %v6688_v37, %v8335_v53  ;;  %v2366_v14 = vsel %vm2143_vm3, %v2361_v38, %v2365_v9  ;;  %v2379_v2 = vshll.u32 %v2325_v33, 16 }
 0x18d   : > { %v1529_v22 = vmax.f32 %v1499_v45, 0.0  ;;  %v1502_v60 = vadd.f32 %v6633_v18, %v8335_v53  ;;  %6979 = vmatprep.subr.bf16.mxu0 %v7791_v31  ;;  %v6691_v49 = vadd.f32 %v6690_v56, %v6689_v36  ;;  %v2374_v25 = vsel %vm2143_vm3, %v2369_v62, %v2373_v39  ;;  %v8690_v45 = vld [vmem:[#allocation2 + $0x78] sm:$0xff] }
 0x18e   : > { %v1867_v10 = vmax.f32 %v1837_v42, 0.0  ;;  %v3799_v56 = vrot.slane %v8684_v63, 5  ;;  %v2381_v38 = vrot.slane %v2379_v2, 1 }
 0x18f   : > { %v1530_v50 = vmax.f32 %v1502_v60, 0.0  ;;  %v6634_v11 = vpop.f32.mrb[48].mxu0  ;;  %v1840_v20 = vadd.f32 %v6691_v49, %v8335_v53  ;;  %v2377_v60 = vor.u32 %v2375_v27, %v2373_v39 }
 0x190   : > { %v6635_v24 = vpop.f32.mrb[49].mxu0  ;;  %6980 = vmatpush3.bf16.msra.mxu0 %v7791_v31  ;;  %v6692_v16 = vpop.f32.mrb[48].mxu1 }
 0x191   : > { %v1539_v43 = vpack.c.bf16 %v1530_v50, %v1529_v22  ;;  %v6636_v51 = vadd.f32 %v6635_v24, %v6634_v11  ;;  %v6637_v47 = vpop.f32.mrb[50].mxu0  ;;  %6993 = vmatprep.subr.bf16.mxu0 %v8669_v7  ;;  %v1868_v21 = vmax.f32 %v1840_v20, 0.0  ;;  %v6693_v18 = vpop.f32.mrb[49].mxu1  ;;  %v9745_v11 = vrot.slane %v8690_v45, 5 }
 0x192   : > { %v6638_v4 = vpop.f32.mrb[51].mxu0  ;;  %v6694_v30 = vadd.f32 %v6693_v18, %v6692_v16  ;;  %v6695_v37 = vpop.f32.mrb[50].mxu1  ;;  %v8698_v42 = vld [vmem:[#allocation2 + $0x88] sm:$0xff] }
 0x193   : > { %1547 = vst.msk [vmem:[#allocation2 + $0x90] sm:$0xff] %vm866_vm0, %v1539_v43  ;;  %6970 = vmatmul.mubr.msk.bf16.gmra.mrb[60].mxu0 %vm866_vm0, %v2366_v14  ;;  %v1507_v31 = vadd.f32 %v6636_v51, %v8335_v53  ;;  %v6639_v44 = vadd.f32 %v6638_v4, %v6637_v47  ;;  %v1877_v52 = vpack.c.bf16 %v1868_v21, %v1867_v10  ;;  %v6696_v9 = vpop.f32.mrb[51].mxu1  ;;  %v3801_v47 = vrot.slane %v8698_v42, 5 }
 0x194   : > { %6973 = vmatprep.mubr.msk.bf16.mxu0 %vm866_vm0, %v2374_v25  ;;  %v1845_v49 = vadd.f32 %v6694_v30, %v8335_v53  ;;  %v6697_v50 = vadd.f32 %v6696_v9, %v6695_v37  ;;  %v8706_v27 = vsel %vm3162_vm1, %v9745_v11, %v3799_v56  ;;  %v2382_v14 = vsel %vm2143_vm3, %v2377_v60, %v2381_v38  ;;  %v8714_v25 = vld [vmem:[#allocation2 + $0x70] sm:$0xff]  ;;  %v7850_v9 = vld [vmem:[%s9738_s2] ss:$0 sm:$0xff] }
 0x195   : > { %v1531_v36 = vmax.f32 %v1507_v31, 0.0  ;;  %v1510_v22 = vadd.f32 %v6639_v44, %v8335_v53  ;;  %1885 = vst.msk [vmem:[#allocation2 + $0xc8] sm:$0xff] %vm866_vm0, %v1877_v52 }
 0x196   : > { %v1869_v10 = vmax.f32 %v1845_v49, 0.0  ;;  %v1848_v20 = vadd.f32 %v6697_v50, %v8335_v53  ;;  %v8726_v49 = vld [vmem:[#allocation2 + $0xb0] sm:$0xff] }
 0x197   : > { %v1532_v62 = vmax.f32 %v1510_v22, 0.0  ;;  %v6640_v33 = vpop.f32.mrb[52].mxu0 }
 0x198   : > { %v6641_v24 = vpop.f32.mrb[53].mxu0  ;;  %v1870_v21 = vmax.f32 %v1848_v20, 0.0  ;;  %v6698_v16 = vpop.f32.mrb[52].mxu1  ;;  %v9751_v20 = vshrl.u32 %v8684_v63, 16 }
 0x199   : > { %v1540_v39 = vpack.c.bf16 %v1532_v62, %v1531_v36  ;;  %v6642_v43 = vadd.f32 %v6641_v24, %v6640_v33  ;;  %v6643_v51 = vpop.f32.mrb[54].mxu0  ;;  %v6699_v18 = vpop.f32.mrb[53].mxu1  ;;  %v8720_v36 = vsel %vm3162_vm1, %v3799_v56, %v3801_v47  ;;  %v8729_v33 = vld [vmem:[#allocation2 + $0xb8] sm:$0xff]  ;;  %v8731_v24 = vld [vmem:[#allocation2 + $0xc0] sm:$0xff] }
 0x19a   : > { %v6644_v4 = vpop.f32.mrb[55].mxu0  ;;  %v8710_v2 = vld [vmem:[#allocation2 + $0x90] sm:$0xff]  ;;  %v1878_v52 = vpack.c.bf16 %v1870_v21, %v1869_v10  ;;  %v6700_v30 = vadd.f32 %v6699_v18, %v6698_v16  ;;  %v6701_v37 = vpop.f32.mrb[54].mxu1  ;;  %v7793_v16 = vld [vmem:[%s9739_s3 + $0x58] sm:$0xff]  }
 0x19b   : > { %1548 = vst.msk [vmem:[#allocation2 + $0x98] sm:$0xff] %vm866_vm0, %v1540_v39  ;;  %6974 = vmatmul.mubr.msk.bf16.gmra.mrb[64].mxu0 %vm866_vm0, %v2382_v14  ;;  %v1515_v31 = vadd.f32 %v6642_v43, %v8335_v53  ;;  %v6645_v44 = vadd.f32 %v6644_v4, %v6643_v51  ;;  %v3803_v22 = vrot.slane %v8710_v2, 5  ;;  %v6702_v53 = vpop.f32.mrb[55].mxu1  ;;  %v9752_v14 = vshrl.u32 %v8690_v45, 16 }
 0x19c   : > { %6981 = vmatprep.mubr.msk.bf16.mxu0 %vm866_vm0, %v8714_v25  ;;  %1886 = vst.msk [vmem:[#allocation2 + $0xd0] sm:$0xff] %vm866_vm0, %v1878_v52  ;;  %v1853_v50 = vadd.f32 %v7850_v9, %v6700_v30  ;;  %v6703_v62 = vadd.f32 %v6702_v53, %v6701_v37  ;;  %v8733_v56 = vld [vmem:[#allocation2 + $0xc8] sm:$0xff]  ;;  %v9744_v4 = vrot.slane %v8726_v49, 5  ;;  %v9761_v30 = vshll.u32 %v8690_v45, 16 }
 0x19d   : > { %v1533_v60 = vmax.f32 %v1515_v31, 0.0  ;;  %v1518_v38 = vadd.f32 %v7850_v9, %v6645_v44  ;;  %v8737_v39 = vsel %vm3162_vm1, %v3801_v47, %v3803_v22  ;;  %v3949_v31 = vrot.slane %v8729_v33, 5 }
 0x19e   : > { %v1871_v43 = vmax.f32 %v1853_v50, 0.0  ;;  %v1856_v51 = vadd.f32 %v7850_v9, %v6703_v62  ;;  %v3951_v44 = vrot.slane %v8731_v24, 5  ;;  %v3953_v18 = vrot.slane %v8733_v56, 5 }
 0x19f   : > { %v1534_v10 = vmax.f32 %v1518_v38, 0.0  ;;  %v9759_v37 = vshll.u32 %v8684_v63, 16  ;;  %v8760_v38 = vsel %vm3162_vm1, %v9744_v4, %v3949_v31  ;;  %v9755_v50 = vshrl.u32 %v8698_v42, 16 }
 0x1a0   : > { %v1872_v47 = vmax.f32 %v1856_v51, 0.0  ;;  %v8767_v62 = vsel %vm3162_vm1, %v3949_v31, %v3951_v44  ;;  %v8775_v51 = vld [vmem:[%s9739_s3 + $0x60] sm:$0xff]   ;;  %v4097_v11 = vrot.slane %v9761_v30, 6 }
 0x1a1   : > { %v1541_v21 = vpack.c.bf16 %v1534_v10, %v1533_v60  ;;  %v4100_v60 = vrot.slane %v9751_v20, 5  ;;  %v8770_v10 = vsel %vm3162_vm1, %v3951_v44, %v3953_v18  ;;  %v4096_v44 = vrot.slane %v9752_v14, 5 }
 0x1a2   : > { %v8747_v52 = vld [vmem:[#allocation2 + $0x98] sm:$0xff]  ;;  %v1879_v53 = vpack.c.bf16 %v1872_v47, %v1871_v43  ;;  %v9754_v43 = vshrl.u32 %v8710_v2, 16  ;;  %v9756_v47 = vshll.u32 %v8710_v2, 16  ;;  %v4101_v0 = vrot.slane %v9759_v37, 6 }
 0x1a3   : > { %1549 = vst.msk [vmem:[#allocation2 + $0xa0] sm:$0xff] %vm866_vm0, %v1541_v21  ;;  %6982 = vmatmul.mubr.msk.bf16.vlgmr.msra.gmra.mrb[56].mxu0 %vm866_vm0, %v8690_v45  ;;  %v9748_v9 = vrot.slane %v8747_v52, 5  ;;  %v8777_v21 = vld [vmem:[#allocation2 + $0xd0] sm:$0xff]  ;;  %v9758_v28 = vshrl.u32 %v8747_v52, 16  ;;  %v4104_v55 = vrot.slane %v9755_v50, 5  ;;  %v9763_v50 = vshrl.u32 %v8726_v49, 16 }
 0x1a4   : > { %6994 = vmatpush3.bf16.msra.mxu0 %v8669_v7  ;;  %6985 = vmatprep.mubr.msk.bf16.mxu0 %vm866_vm0, %v8684_v63  ;;  %v9757_v7 = vshll.u32 %v8698_v42, 16  ;;  %1887 = vst.msk [vmem:[#allocation2 + $0xd8] sm:$0xff] %vm866_vm0, %v1879_v53  ;;  %v9753_v4 = vrot.slane %v8777_v21, 5  ;;  %v8802_v53 = vor.u32 %v4097_v11, %v4096_v44  ;;  %v4102_v46 = vor.u32 %v4101_v0, %v4100_v60 }
 0x1a5   : > { %6995 = vmatprep.subr.bf16.mxu0 %v7793_v16  ;;  %v8784_v31 = vsel %vm3162_vm1, %v3803_v22, %v9748_v9  ;;  %v9760_v22 = vshll.u32 %v8747_v52, 16  ;;  %v4109_v14 = vrot.slane %v9756_v47, 6  ;;  %v9762_v0 = vshrl.u32 %v8729_v33, 16 }
 0x1a6   : > { %v8800_v9 = vsel %vm3162_vm1, %v3953_v18, %v9753_v4  ;;  %v4105_v20 = vrot.slane %v9757_v7, 6  ;;  %v8817_v11 = vsel %vm3455_vm2, %v8802_v53, %v4102_v46  ;;  %v4112_v18 = vrot.slane %v9758_v28, 5 }
 0x1a7   : > { %v4113_v4 = vrot.slane %v9760_v22, 6  ;;  %v9764_v47 = vshll.u32 %v8729_v33, 16  ;;  %v9768_v22 = vshrl.u32 %v8733_v56, 16  ;;  %v4262_v37 = vrot.slane %v9763_v50, 5 }
 0x1a8   : > { %6996 = vmatpush3.bf16.msra.mxu0 %v7793_v16  ;;  %v4108_v16 = vrot.slane %v9754_v43, 5  ;;  %v4106_v60 = vor.u32 %v4105_v20, %v4104_v55  ;;  %v9765_v43 = vshll.u32 %v8726_v49, 16  ;;  %v9767_v55 = vshrl.u32 %v8731_v24, 16 }
 0x1a9   : > { %7009 = vmatprep.subr.bf16.mxu0 %v8775_v51  ;;  %v8837_v20 = vor.u32 %v4113_v4, %v4112_v18  ;;  %v4267_v18 = vrot.slane %v9764_v47, 6  ;;  %v4274_v47 = vrot.slane %v9768_v22, 5 }
 0x1aa   : > { %v4110_v44 = vor.u32 %v4109_v14, %v4108_v16  ;;  %v8830_v7 = vsel %vm3455_vm2, %v4102_v46, %v4106_v60  ;;  %v4266_v14 = vrot.slane %v9762_v0, 5  ;;  %v4263_v4 = vrot.slane %v9765_v43, 6  ;;  %v8857_v0 = vld [vmem:[#allocation2 + $0xa8] sm:$0xff] }
 0x1ab   : > { %6986 = vmatmul.mubr.msk.bf16.gmra.mrb[60].mxu0 %vm866_vm0, %v8698_v42  ;;  %9770 = vst [vmem:[#allocation5_spill] sm:$0xff] %v8830_v7  ;;  %9772 = vst [vmem:[#allocation7_spill] sm:$0xff] %v8837_v20  ;;  %v9774_v46 = vshll.u32 %v8731_v24, 16  ;;  %v9775_v43 = vshll.u32 %v8733_v56, 16 }
 0x1ac   : > { %6989 = vmatprep.mubr.msk.bf16.mxu0 %vm866_vm0, %v8710_v2  ;;  %v8833_v28 = vsel %vm3455_vm2, %v4106_v60, %v4110_v44  ;;  %v8847_v60 = vsel %vm3455_vm2, %v4110_v44, %v8837_v20  ;;  %v8859_v30 = vor.u32 %v4263_v4, %v4262_v37  ;;  %v4270_v44 = vrot.slane %v9767_v55, 5 }
 0x1ad   : > { %9771 = vst [vmem:[#allocation6_spill] sm:$0xff] %v8833_v28  ;;  %9773 = vst [vmem:[#allocation8_spill] sm:$0xff] %v8847_v60  ;;  %v4271_v16 = vrot.slane %v9774_v46, 6  ;;  %v4268_v50 = vor.u32 %v4267_v18, %v4266_v14  ;;  %v4275_v20 = vrot.slane %v9775_v43, 6  ;;  %v9776_v37 = vshrl.u32 %v8777_v21, 16  ;;  %v7795_v43 = vld [vmem:[%s9739_s3 + $0x68] sm:$0xff]  }
 0x1ae   : > { %v9777_v28 = vshll.u32 %v8777_v21, 16 }
 0x1af   : > { %v4272_v60 = vor.u32 %v4271_v16, %v4270_v44  ;;  %v4278_v4 = vrot.slane %v9776_v37, 5  ;;  %v8877_v46 = vsel %vm3455_vm2, %v8859_v30, %v4268_v50  ;;  %v4276_v7 = vor.u32 %v4275_v20, %v4274_v47 }
 0x1b0   : > { %v4279_v55 = vrot.slane %v9777_v28, 6  ;;  %v2789_v47 = vshll.u32 %v8714_v25, 16  ;;  %v9780_v20 = vshll.u32 %v8690_v45, 16  ;;  %v9781_v44 = vshll.u32 %v8684_v63, 16 }
 0x1b1   : > { %v8880_v14 = vsel %vm3455_vm2, %v4268_v50, %v4272_v60  ;;  %v8885_v22 = vsel %vm3455_vm2, %v4272_v60, %v4276_v7  ;;  %v7796_v50 = vld [vmem:[%s9739_s3 + $0x70] sm:$0xff]  }
 0x1b2   : > { %v8882_v18 = vor.u32 %v4279_v55, %v4278_v4  ;;  %v2791_v55 = vrot.slane %v2789_v47, 1  ;;  %v2796_v16 = vrot.slane %v9780_v20, 1  ;;  %v2804_v37 = vrot.slane %v9781_v44, 1  ;;  %v7797_v20 = vld [vmem:[%s9739_s3 + $0x78] sm:$0xff]   ;;  %v7798_v44 = vld [vmem:[%s9739_s3 + $0x80] sm:$0xff]  }
 0x1b3   : > { %6990 = vmatmul.mubr.msk.bf16.gmra.mrb[64].mxu0 %vm866_vm0, %v8747_v52 }
 0x1b4   : > { %6997 = vmatprep.mubr.msk.bf16.mxu0 %vm866_vm0, %v8857_v0  ;;  %9778 = vst [vmem:[#allocation9_spill] sm:$0xff] %v8882_v18  ;;  %v8892_v28 = vsel %vm3455_vm2, %v4276_v7, %v8882_v18  ;;  %v2787_v7 = vshrl.u32 %v8714_v25, 16  ;;  %v9782_v25 = vshrl.u32 %v8690_v45, 16 }
 0x1b5   : > { %9779 = vst [vmem:[#allocation10_spill] sm:$0xff] %v8892_v28 }
 0x1b6   : > { %v2800_v4 = vor.u32 %v9782_v25, %v2796_v16  ;;  %v9786_v25 = vshrl.u32 %v8698_v42, 16 }
 0x1bb   : > { %6998 = vmatmul.mubr.msk.bf16.vlgmr.msra.gmra.mrb[56].mxu0 %vm866_vm0, %v8726_v49 }
 0x1bc   : > { %7010 = vmatpush3.bf16.msra.mxu0 %v8775_v51  ;;  %7001 = vmatprep.mubr.msk.bf16.mxu0 %vm866_vm0, %v8729_v33  ;;  %v2792_v51 = vor.u32 %v2791_v55, %v2787_v7  ;;  %v9784_v7 = vshll.u32 %v8698_v42, 16  ;;  %v2974_v42 = vshrl.u32 %v8857_v0, 16 }
 0x1bd   : > { %7011 = vmatprep.subr.bf16.mxu0 %v7795_v43 }
 0x1be   : > { %v2797_v60 = vsel %vm2143_vm3, %v2792_v51, %v2796_v16  ;;  %v2812_v55 = vrot.slane %v9784_v7, 1  ;;  %v2805_v51 = vsel %vm2143_vm3, %v2800_v4, %v2804_v37  ;;  %v9785_v16 = vshll.u32 %v8710_v2, 16 }
 0x1bf   : > { %v9788_v7 = vshll.u32 %v8747_v52, 16 }
 0x1c0   : > { %7012 = vmatpush3.bf16.msra.mxu0 %v7795_v43  ;;  %v9783_v43 = vshrl.u32 %v8684_v63, 16  ;;  %v2820_v63 = vrot.slane %v9785_v16, 1 }
 0x1c1   : > { %7025 = vmatprep.subr.bf16.mxu0 %v7796_v50 }
 0x1c2   : > { %v2808_v47 = vor.u32 %v9783_v43, %v2804_v37  ;;  %v2816_v43 = vor.u32 %v9786_v25, %v2812_v55  ;;  %v9787_v37 = vshrl.u32 %v8710_v2, 16  ;;  %v9789_v2 = vshrl.u32 %v8747_v52, 16 }
 0x1c3   : > { %7002 = vmatmul.mubr.msk.bf16.gmra.mrb[60].mxu0 %vm866_vm0, %v8731_v24 }
 0x1c4   : > { %7005 = vmatprep.mubr.msk.bf16.mxu0 %vm866_vm0, %v8733_v56  ;;  %v2824_v4 = vor.u32 %v9787_v37, %v2820_v63 }
 0x1cb   : > { %7006 = vmatmul.mubr.msk.bf16.gmra.mrb[64].mxu0 %vm866_vm0, %v8777_v21 }
 0x1cc   : > { %7013 = vmatprep.mubr.msk.bf16.mxu0 %vm866_vm0, %v2797_v60  ;;  %v2813_v60 = vsel %vm2143_vm3, %v2808_v47, %v2812_v55  ;;  %v2828_v47 = vrot.slane %v9788_v7, 1 }
 0x1ce   : > { %v2829_v18 = vsel %vm2143_vm3, %v2824_v4, %v2828_v47  ;;  %v2832_v25 = vor.u32 %v9789_v2, %v2828_v47  ;;  %v9793_v47 = vshrl.u32 %v8729_v33, 16 }
 0x1d3   : > { %7014 = vmatmul.mubr.msk.bf16.vlgmr.msra.gmra.mrb[56].mxu0 %vm866_vm0, %v2805_v51  ;;  %v2976_v51 = vshll.u32 %v8857_v0, 16  ;;  %v9791_v0 = vshll.u32 %v8729_v33, 16 }
 0x1d4   : > { %7026 = vmatpush3.bf16.msra.mxu0 %v7796_v50  ;;  %7017 = vmatprep.mubr.msk.bf16.mxu0 %vm866_vm0, %v2813_v60  ;;  %v2780_v50 = vld [vmem:[#allocation2 + $0xa0] sm:$0x1]  ;;  %v2821_v60 = vsel %vm2143_vm3, %v2816_v43, %v2820_v63 }
 0x1d5   : > { %7027 = vmatprep.subr.bf16.mxu0 %v7797_v20  ;;  %v2834_v16 = vshll.u32 %v2780_v50, 16  ;;  %v2978_v55 = vrot.slane %v2976_v51, 1  ;;  %v2991_v4 = vrot.slane %v9791_v0, 1 }
 0x1d7   : > { %v2836_v37 = vrot.slane %v2834_v16, 1  ;;  %v2979_v7 = vor.u32 %v2978_v55, %v2974_v42  ;;  %v2995_v51 = vor.u32 %v9793_v47, %v2991_v4  ;;  %v7799_v42 = vld [vmem:[%s9739_s3 + $0x88] sm:$0xff]  }
 0x1d8   : > { %7028 = vmatpush3.bf16.msra.mxu0 %v7797_v20  ;;  %v9790_v20 = vshll.u32 %v8726_v49, 16 }
 0x1d9   : > { %7041 = vmatprep.subr.bf16.mxu0 %v7798_v44  ;;  %v2837_v63 = vsel %vm2143_vm3, %v2832_v25, %v2836_v37  ;;  %v7800_v25 = vld [vmem:[%s9739_s3 + $0x90] sm:$0xff]   ;;  %v9796_v37 = vshrl.u32 %v8731_v24, 16 }
 0x1da   : > { %v2983_v28 = vrot.slane %v9790_v20, 1  ;;  %v9797_v20 = vshrl.u32 %v8733_v56, 16 }
 0x1db   : > { %7018 = vmatmul.mubr.msk.bf16.gmra.mrb[60].mxu0 %vm866_vm0, %v2821_v60  ;;  %v9794_v60 = vshll.u32 %v8731_v24, 16  ;;  %v9799_v24 = vshrl.u32 %v8777_v21, 16 }
 0x1dc   : > { %7021 = vmatprep.mubr.msk.bf16.mxu0 %vm866_vm0, %v2829_v18  ;;  %v2984_v43 = vsel %vm2143_vm3, %v2979_v7, %v2983_v28  ;;  %v9792_v18 = vshrl.u32 %v8726_v49, 16 }
 0x1dd   : > { %v2999_v16 = vrot.slane %v9794_v60, 1 }
 0x1de   : > { %v2987_v50 = vor.u32 %v9792_v18, %v2983_v28  ;;  %v9795_v28 = vshll.u32 %v8733_v56, 16 }
 0x1df   : > { %v3000_v2 = vsel %vm2143_vm3, %v2995_v51, %v2999_v16  ;;  %v3003_v7 = vor.u32 %v9796_v37, %v2999_v16  ;;  %v3148_v51 = vld [vmem:[#allocation2] sm:$0xe0]  ;;  %v9801_v37 = vrot.slane %v8492_v32, 5 }
 0x1e0   : > { %v2992_v55 = vsel %vm2143_vm3, %v2987_v50, %v2991_v4  ;;  %v3007_v33 = vrot.slane %v9795_v28, 1  ;;  %v3163_v60 = vrot.slane %v3148_v51, 5  ;;  %v3149_v28 = vld [vmem:[#allocation2 + $0x30] sm:$0x1f]  ;;  %v3457_v32 = vshrl.u32 %v3148_v51, 16 }
 0x1e2   : > { %v3008_v4 = vsel %vm2143_vm3, %v3003_v7, %v3007_v33  ;;  %v9802_v7 = vrot.slane %v8362_v3, 5  ;;  %v7804_v3 = vld [vmem:[%s9739_s3 + $0xb0] sm:$0xff]  }
 0x1e3   : > { %7022 = vmatmul.mubr.msk.bf16.gmra.mrb[64].mxu0 %vm866_vm0, %v2837_v63  ;;  %v3011_v63 = vor.u32 %v9797_v20, %v3007_v33  ;;  %v3174_v33 = vrot.slane %v3149_v28, 5 }
 0x1e4   : > { %7029 = vmatprep.mubr.msk.bf16.mxu0 %vm866_vm0, %v2984_v43  ;;  %v9798_v43 = vshll.u32 %v8777_v21, 16 }
 0x1e6   : > { %v3015_v0 = vrot.slane %v9798_v43, 1 }
 0x1e8   : > { %v3016_v50 = vsel %vm2143_vm3, %v3011_v63, %v3015_v0  ;;  %v3019_v47 = vor.u32 %v9799_v24, %v3015_v0  ;;  %v3300_v63 = vld [vmem:[#allocation2 + $0x68] sm:$0x1f] }
 0x1e9   : > { %v3324_v0 = vrot.slane %v3300_v63, 5 }
 0x1eb   : > { %7030 = vmatmul.mubr.msk.bf16.vlgmr.msra.gmra.mrb[56].mxu0 %vm866_vm0, %v2992_v55 }
 0x1ec   : > { %7042 = vmatpush3.bf16.msra.mxu0 %v7798_v44  ;;  %7033 = vmatprep.mubr.msk.bf16.mxu0 %vm866_vm0, %v3000_v2  ;;  %v2967_v44 = vld [vmem:[#allocation2 + $0xd8] sm:$0x1] }
 0x1ed   : > { %7043 = vmatprep.subr.bf16.mxu0 %v7799_v42  ;;  %v3021_v18 = vshll.u32 %v2967_v44, 16  ;;  %v7801_v2 = vld [vmem:[%s9739_s3 + $0x98] sm:$0xff]   ;;  %v9803_v44 = vrot.slane %v8512_v6, 5  ;;  %v3449_v6 = vld [vmem:[#allocation2 + $0x30] sm:$0x3f] }
 0x1ef   : > { %v3023_v56 = vrot.slane %v3021_v18, 1 }
 0x1f0   : > { %7044 = vmatpush3.bf16.msra.mxu0 %v7799_v42  ;;  %v9800_v42 = vrot.slane %v8377_v15, 5  ;;  %v7802_v15 = vld [vmem:[%s9739_s3 + $0xa0] sm:$0xff]  }
 0x1f1   : > { %7057 = vmatprep.subr.bf16.mxu0 %v7800_v25  ;;  %v3024_v16 = vsel %vm2143_vm3, %v3019_v47, %v3023_v56  ;;  %v3485_v56 = vshrl.u32 %v3449_v6, 16 }
 0x1f2   : > { %v3165_v55 = vsel %vm3162_vm1, %v3163_v60, %v9800_v42 }
 0x1f3   : > { %7034 = vmatmul.mubr.msk.bf16.gmra.mrb[60].mxu0 %vm866_vm0, %v3008_v4  ;;  %v3325_v4 = vsel %vm3162_vm1, %v9803_v44, %v3324_v0  ;;  %v3487_v42 = vrot.slane %v3485_v56, 5  ;;  %v9806_v0 = vrot.slane %v8726_v49, 5  ;;  %v7812_v49 = vld [vmem:[%s9739_s3 + $0xf0] sm:$0xff]   ;;  %v3933_v44 = vld [vmem:[#allocation2 + $0xd8] sm:$0x1f] }
 0x1f4   : > { %7037 = vmatprep.mubr.msk.bf16.mxu0 %vm866_vm0, %v3016_v50  ;;  %v9808_v56 = vld [vmem:[#allocation5_spill] sm:$0xff] }
 0x1fb   : > { %7038 = vmatmul.mubr.msk.bf16.gmra.mrb[64].mxu0 %vm866_vm0, %v3024_v16 }
 0x1fc   : > { %7045 = vmatprep.mubr.msk.bf16.mxu0 %vm866_vm0, %v3165_v55 }
 0x203   : > { %7046 = vmatmul.mubr.msk.bf16.vlgmr.msra.gmra.mrb[56].mxu0 %vm866_vm0, %v8416_v57  ;;  %v3299_v57 = vld [vmem:[#allocation2 + $0x38] sm:$0xe0] }
 0x204   : > { %7058 = vmatpush3.bf16.msra.mxu0 %v7800_v25  ;;  %7049 = vmatprep.mubr.msk.bf16.mxu0 %vm866_vm0, %v8444_v19  ;;  %v3313_v25 = vrot.slane %v3299_v57, 5  ;;  %v3175_v19 = vsel %vm3162_vm1, %v9801_v37, %v3174_v33  ;;  %v3623_v60 = vshrl.u32 %v3299_v57, 16  ;;  %v3626_v16 = vshll.u32 %v3299_v57, 16  ;;  %v7807_v37 = vld [vmem:[%s9739_s3 + $0xc8] sm:$0xff]  }
 0x205   : > { %7059 = vmatprep.subr.bf16.mxu0 %v7801_v2 }
 0x206   : > { %v3315_v20 = vsel %vm3162_vm1, %v3313_v25, %v9802_v7  ;;  %v3628_v55 = vrot.slane %v3626_v16, 6 }
 0x208   : > { %7060 = vmatpush3.bf16.msra.mxu0 %v7801_v2 }
 0x209   : > { %7073 = vmatprep.subr.bf16.mxu0 %v7802_v15 }
 0x20b   : > { %7050 = vmatmul.mubr.msk.bf16.gmra.mrb[60].mxu0 %vm866_vm0, %v8486_v17  ;;  %v7803_v17 = vld [vmem:[%s9739_s3 + $0xa8] sm:$0xff]  }
 0x20c   : > { %7053 = vmatprep.mubr.msk.bf16.mxu0 %vm866_vm0, %v8534_v26  ;;  %v3460_v26 = vshll.u32 %v3148_v51, 16  ;;  %v3488_v51 = vshll.u32 %v3449_v6, 16 }
 0x20e   : > { %v3462_v43 = vrot.slane %v3460_v26, 6  ;;  %v9804_v26 = vrot.slane %v8690_v45, 5  ;;  %v3932_v45 = vld [vmem:[#allocation2 + $0xa8] sm:$0xe0] }
 0x20f   : > { %v4258_v16 = vshll.u32 %v3932_v45, 16 }
 0x213   : > { %7054 = vmatmul.mubr.msk.bf16.gmra.mrb[64].mxu0 %vm866_vm0, %v3175_v19 }
 0x214   : > { %7061 = vmatprep.mubr.msk.bf16.mxu0 %vm866_vm0, %v3315_v20 }
 0x21b   : > { %7062 = vmatmul.mubr.msk.bf16.vlgmr.msra.gmra.mrb[56].mxu0 %vm866_vm0, %v8433_v12  ;;  %v3459_v12 = vrot.slane %v3457_v32, 5 }
 0x21c   : > { %7074 = vmatpush3.bf16.msra.mxu0 %v7802_v15  ;;  %7065 = vmatprep.mubr.msk.bf16.mxu0 %vm866_vm0, %v8458_v41 }
 0x21d   : > { %7075 = vmatprep.subr.bf16.mxu0 %v7803_v17  ;;  %v3463_v41 = vor.u32 %v3462_v43, %v3459_v12  ;;  %v3946_v12 = vrot.slane %v3932_v45, 5  ;;  %v9805_v43 = vrot.slane %v8747_v52, 5 }
 0x21f   : > { %v3467_v18 = vsel %vm3455_vm2, %v3463_v41, %v8423_v1  ;;  %v7806_v1 = vld [vmem:[%s9739_s3 + $0xc0] sm:$0xff]   ;;  %v3948_v41 = vsel %vm3162_vm1, %v3946_v12, %v9806_v0 }
 0x220   : > { %7076 = vmatpush3.bf16.msra.mxu0 %v7803_v17 }
 0x221   : > { %7089 = vmatprep.subr.bf16.mxu0 %v7804_v3 }
 0x223   : > { %7066 = vmatmul.mubr.msk.bf16.gmra.mrb[60].mxu0 %vm866_vm0, %v8497_v40 }
 0x224   : > { %7069 = vmatprep.mubr.msk.bf16.mxu0 %vm866_vm0, %v8548_v54  ;;  %v7805_v54 = vld [vmem:[%s9739_s3 + $0xb8] sm:$0xff]  }
 0x22b   : > { %7070 = vmatmul.mubr.msk.bf16.gmra.mrb[64].mxu0 %vm866_vm0, %v3325_v4 }
 0x22c   : > { %7077 = vmatprep.mubr.msk.bf16.mxu0 %vm866_vm0, %v3467_v18 }
 0x22f   : > { %v9035_v40 = vpop.f32.mrb[56].mxu1 }
 0x230   : > { %v9040_v50 = vpop.f32.mrb[57].mxu1 }
 0x231   : > { %v9042_v24 = vpop.f32.mrb[58].mxu1 }
 0x232   : > { %v9046_v47 = vpop.f32.mrb[59].mxu1 }
 0x233   : > { %7078 = vmatmul.mubr.msk.bf16.vlgmr.msra.gmra.mrb[56].mxu0 %vm866_vm0, %v8468_v59  ;;  %v3490_v59 = vrot.slane %v3488_v51, 6 }
 0x234   : > { %7090 = vmatpush3.bf16.msra.mxu0 %v7804_v3  ;;  %7081 = vmatprep.mubr.msk.bf16.mxu0 %vm866_vm0, %v8509_v61  ;;  %v3625_v61 = vrot.slane %v3623_v60, 5  ;;  %v4255_v60 = vshrl.u32 %v3932_v45, 16 }
 0x235   : > { %7091 = vmatprep.subr.bf16.mxu0 %v7805_v54  ;;  %v3491_v2 = vor.u32 %v3490_v59, %v3487_v42  ;;  %v9809_v59 = vld [vmem:[#allocation6_spill] sm:$0xff] }
 0x236   : > { %v3629_v15 = vor.u32 %v3628_v55, %v3625_v61  ;;  %v4257_v61 = vrot.slane %v4255_v60, 5  ;;  %v4260_v55 = vrot.slane %v4258_v16, 6 }
 0x237   : > { %v3492_v33 = vsel %vm3455_vm2, %v8578_v58, %v3491_v2  ;;  %v3616_v58 = vld [vmem:[#allocation2 + $0x68] sm:$0x3f] }
 0x238   : > { %7092 = vmatpush3.bf16.msra.mxu0 %v7805_v54  ;;  %v3633_v57 = vsel %vm3455_vm2, %v3629_v15, %v8592_v8  ;;  %v7808_v8 = vld [vmem:[%s9739_s3 + $0xd0] sm:$0xff]   ;;  %v3651_v19 = vshrl.u32 %v3616_v58, 16  ;;  %v3654_v7 = vshll.u32 %v3616_v58, 16  ;;  %v9807_v54 = vrot.slane %v8777_v21, 5  ;;  %v9810_v2 = vld [vmem:[#allocation8_spill] sm:$0xff] }
 0x239   : > { %7105 = vmatprep.subr.bf16.mxu0 %v7806_v1  ;;  %v4261_v15 = vor.u32 %v4260_v55, %v4257_v61  ;;  %v4248_v58 = vld [vmem:[#allocation2 + $0xd8] sm:$0x3f] }
 0x23a   : > { %v3653_v20 = vrot.slane %v3651_v19, 5  ;;  %v3656_v17 = vrot.slane %v3654_v7, 6  ;;  %v4286_v19 = vshll.u32 %v4248_v58, 16 }
 0x23b   : > { %7082 = vmatmul.mubr.msk.bf16.gmra.mrb[60].mxu0 %vm866_vm0, %v8554_v48 }
 0x23c   : > { %7085 = vmatprep.mubr.msk.bf16.mxu0 %vm866_vm0, %v8589_v5  ;;  %v3657_v3 = vor.u32 %v3656_v17, %v3653_v20  ;;  %v4288_v20 = vrot.slane %v4286_v19, 6  ;;  %v9812_v17 = vld [vmem:[#allocation10_spill] sm:$0xff] }
 0x23e   : > { %v3658_v32 = vsel %vm3455_vm2, %v8661_v34, %v3657_v3  ;;  %v7810_v34 = vld [vmem:[%s9739_s3 + $0xe0] sm:$0xff]  }
 0x23f   : > { %v9057_v28 = vpop.f32.mrb[60].mxu1 }
 0x240   : > { %v9061_v25 = vpop.f32.mrb[61].mxu1 }
 0x241   : > { %v9066_v48 = vpop.f32.mrb[62].mxu1 }
 0x242   : > { %v9069_v5 = vpop.f32.mrb[63].mxu1 }
 0x243   : > { %7086 = vmatmul.mubr.msk.bf16.gmra.mrb[64].mxu0 %vm866_vm0, %v3492_v33  ;;  %v9811_v33 = vld [vmem:[#allocation7_spill] sm:$0xff] }
 0x244   : > { %7093 = vmatprep.mubr.msk.bf16.mxu0 %vm866_vm0, %v3633_v57 }
 0x24b   : > { %7094 = vmatmul.mubr.msk.bf16.vlgmr.msra.gmra.mrb[56].mxu0 %vm866_vm0, %v8619_v29  ;;  %v3782_v29 = vld [vmem:[#allocation2 + $0x70] sm:$0xe0] }
 0x24c   : > { %7106 = vmatpush3.bf16.msra.mxu0 %v7806_v1  ;;  %7097 = vmatprep.mubr.msk.bf16.mxu0 %vm866_vm0, %v8643_v13  ;;  %v3796_v13 = vrot.slane %v3782_v29, 5  ;;  %v4089_v52 = vshrl.u32 %v3782_v29, 16 }
 0x24d   : > { %7107 = vmatprep.subr.bf16.mxu0 %v7807_v37 }
 0x24e   : > { %v3798_v63 = vsel %vm3162_vm1, %v3796_v13, %v9804_v26  ;;  %v4091_v4 = vrot.slane %v4089_v52, 5  ;;  %v7816_v13 = vld [vmem:[%s9741_s5 + $0x30] sm:$0xff]   ;;  %v6302_v26 = vld [vmem:[%s9740_s4] ss:$0 sm:$0xff] }
 0x250   : > { %7108 = vmatpush3.bf16.msra.mxu0 %v7807_v37  ;;  %v4265_v37 = vsel %vm3455_vm2, %v4261_v15, %v8859_v30 }
 0x251   : > { %7121 = vmatprep.subr.bf16.mxu0 %v7808_v8 }
 0x253   : > { %7098 = vmatmul.mubr.msk.bf16.gmra.mrb[60].mxu0 %vm866_vm0, %v8653_v23  ;;  %v7809_v23 = vld [vmem:[%s9739_s3 + $0xd8] sm:$0xff]  }
 0x254   : > { %7101 = vmatprep.mubr.msk.bf16.mxu0 %vm866_vm0, %v8679_v35  ;;  %v3783_v35 = vld [vmem:[#allocation2 + $0xa0] sm:$0x1f] }
 0x25b   : > { %7102 = vmatmul.mubr.msk.bf16.gmra.mrb[64].mxu0 %vm866_vm0, %v3658_v32  ;;  %v7817_v32 = vld [vmem:[%s9741_s5 + $0x38] sm:$0xff]  }
 0x25c   : > { %7109 = vmatprep.mubr.msk.bf16.mxu0 %vm866_vm0, %v3798_v63 }
 0x263   : > { %7110 = vmatmul.mubr.msk.bf16.vlgmr.msra.gmra.mrb[56].mxu0 %vm866_vm0, %v8706_v27  ;;  %v3807_v27 = vrot.slane %v3783_v35, 5 }
 0x264   : > { %7122 = vmatpush3.bf16.msra.mxu0 %v7808_v8  ;;  %7113 = vmatprep.mubr.msk.bf16.mxu0 %vm866_vm0, %v8720_v36  ;;  %v4283_v8 = vshrl.u32 %v4248_v58, 16 }
 0x265   : > { %7123 = vmatprep.subr.bf16.mxu0 %v7809_v23  ;;  %v3808_v36 = vsel %vm3162_vm1, %v9805_v43, %v3807_v27 }
 0x266   : > { %v4285_v7 = vrot.slane %v4283_v8, 5 }
 0x268   : > { %7124 = vmatpush3.bf16.msra.mxu0 %v7809_v23  ;;  %v4289_v30 = vor.u32 %v4288_v20, %v4285_v7 }
 0x269   : > { %7137 = vmatprep.subr.bf16.mxu0 %v7810_v34 }
 0x26b   : > { %7114 = vmatmul.mubr.msk.bf16.gmra.mrb[60].mxu0 %vm866_vm0, %v8737_v39  ;;  %v7811_v39 = vld [vmem:[%s9739_s3 + $0xe8] sm:$0xff]  }
 0x26c   : > { %7117 = vmatprep.mubr.msk.bf16.mxu0 %vm866_vm0, %v8784_v31  ;;  %v4092_v31 = vshll.u32 %v3782_v29, 16  ;;  %v9813_v29 = vld [vmem:[#allocation9_spill] sm:$0xff] }
 0x26d   : > { %v4290_v3 = vsel %vm3455_vm2, %v9813_v29, %v4289_v30  ;;  %v7818_v30 = vld [vmem:[%s9741_s5] sm:$0xff]  }
 0x26e   : > { %v4094_v18 = vrot.slane %v4092_v31, 6 }
 0x273   : > { %7118 = vmatmul.mubr.msk.bf16.gmra.mrb[64].mxu0 %vm866_vm0, %v3808_v36 }
 0x274   : > { %7125 = vmatprep.mubr.msk.bf16.mxu0 %vm866_vm0, %v3948_v41 }
 0x27b   : > { %7126 = vmatmul.mubr.msk.bf16.vlgmr.msra.gmra.mrb[56].mxu0 %vm866_vm0, %v8760_v38  ;;  %v3957_v38 = vrot.slane %v3933_v44, 5 }
 0x27c   : > { %7138 = vmatpush3.bf16.msra.mxu0 %v7810_v34  ;;  %7129 = vmatprep.mubr.msk.bf16.mxu0 %vm866_vm0, %v8767_v62  ;;  %v4095_v62 = vor.u32 %v4094_v18, %v4091_v4 }
 0x27d   : > { %7139 = vmatprep.subr.bf16.mxu0 %v7811_v39  ;;  %v3958_v6 = vsel %vm3162_vm1, %v9807_v54, %v3957_v38 }
 0x27e   : > { %v4099_v1 = vsel %vm3455_vm2, %v4095_v62, %v8802_v53 }
 0x280   : > { %7140 = vmatpush3.bf16.msra.mxu0 %v7811_v39 }
 0x281   : > { %7153 = vmatprep.subr.bf16.mxu0 %v7812_v49 }
 0x283   : > { %7130 = vmatmul.mubr.msk.bf16.gmra.mrb[60].mxu0 %vm866_vm0, %v8770_v10  ;;  %v7813_v10 = vld [vmem:[%s9739_s3 + $0xf8] sm:$0xff]  }
 0x284   : > { %7133 = vmatprep.mubr.msk.bf16.mxu0 %vm866_vm0, %v8800_v9  ;;  %v4082_v9 = vld [vmem:[#allocation2 + $0xa0] sm:$0x3f] }
 0x285   : > { %v4117_v21 = vshrl.u32 %v4082_v9, 16  ;;  %v4120_v51 = vshll.u32 %v4082_v9, 16 }
 0x287   : > { %v4119_v53 = vrot.slane %v4117_v21, 5  ;;  %v4122_v42 = vrot.slane %v4120_v51, 6 }
 0x28b   : > { %7134 = vmatmul.mubr.msk.bf16.gmra.mrb[64].mxu0 %vm866_vm0, %v3958_v6 }
 0x28c   : > { %7141 = vmatprep.mubr.msk.bf16.mxu0 %vm866_vm0, %v4099_v1 }
 0x293   : > { %7142 = vmatmul.mubr.msk.bf16.vlgmr.msra.gmra.mrb[56].mxu0 %vm866_vm0, %v8817_v11  ;;  %v4123_v11 = vor.u32 %v4122_v42, %v4119_v53 }
 0x294   : > { %7154 = vmatpush3.bf16.msra.mxu0 %v7812_v49  ;;  %7145 = vmatprep.mubr.msk.bf16.mxu0 %vm866_vm0, %v9808_v56 }
 0x295   : > { %7155 = vmatprep.subr.bf16.mxu0 %v7813_v10  ;;  %v4124_v57 = vsel %vm3455_vm2, %v9811_v33, %v4123_v11 }
 0x298   : > { %7156 = vmatpush3.bf16.msra.mxu0 %v7813_v10 }
 0x29b   : > { %7146 = vmatmul.mubr.msk.bf16.gmra.mrb[60].mxu0 %vm866_vm0, %v9809_v59 }
 0x29c   : > { %7149 = vmatprep.mubr.msk.bf16.mxu0 %vm866_vm0, %v9810_v2 }
 0x2a3   : > { %7150 = vmatmul.mubr.msk.bf16.gmra.mrb[64].mxu0 %vm866_vm0, %v4124_v57 }
 0x2a4   : > { %7157 = vmatprep.mubr.msk.bf16.mxu0 %vm866_vm0, %v4265_v37 }
 0x2ab   : > { %7158 = vmatmul.mubr.msk.bf16.vlgmr.msra.gmra.mrb[56].mxu0 %vm866_vm0, %v8877_v46  ;;  %v7875_v46 = vmov 0.0  }
 0x2ac   : > { %7161 = vmatprep.mubr.msk.bf16.mxu0 %vm866_vm0, %v8880_v14  ;;  %7169 = vmatprep.subr.bf16.mxu1 %v7875_v46  ;;  %v7814_v14 = vld [vmem:[%s9741_s5 + $0x20] sm:$0xff]  }
 0x2ad   : > { %7170 = vmatpush3.bf16.msra.mxu1 %v7814_v14  ;;  %7177 = vmatprep.mubr.msk.bf16.mxu1 %vm7876_vm4, %v7875_v46 }
 0x2ae   : > { %7171 = vmatprep.subr.bf16.mxu1 %v7875_v46 }
 0x2b3   : > { %7162 = vmatmul.mubr.msk.bf16.gmra.mrb[60].mxu0 %vm866_vm0, %v8885_v22  ;;  %v7815_v22 = vld [vmem:[%s9741_s5 + $0x28] sm:$0xff]  }
 0x2b4   : > { %7165 = vmatprep.mubr.msk.bf16.mxu0 %vm866_vm0, %v9812_v17  ;;  %7172 = vmatpush3.bf16.msra.mxu1 %v7815_v22 }
 0x2b5   : > { %7173 = vmatprep.subr.bf16.mxu1 %v7875_v46 }
 0x2b8   : > { %7174 = vmatpush3.bf16.msra.mxu1 %v7816_v13 }
 0x2b9   : > { %7175 = vmatprep.subr.bf16.mxu1 %v7875_v46 }
 0x2bb   : > { %7166 = vmatmul.mubr.msk.bf16.gmra.mrb[64].mxu0 %vm866_vm0, %v4290_v3 }
 0x2bc   : > { %7176 = vmatpush3.bf16.msra.mxu1 %v7817_v32 }
 0x2bd   : > { %7197 = vmatprep.subr.bf16.mxu1 %v7875_v46 }
 0x37e   : > { %v7159_v63 = vpop.f32.mrb[56].mxu0 }
 0x37f   : > { %v4423_v23 = vadd.f32 %v7159_v63, %v6302_v26  ;;  %v4355_v34 = vpop.f32.mrb[57].mxu0 }
 0x380   : > { %v4421_v35 = vadd.f32 %v6302_v26, %v4355_v34  ;;  %v7160_v45 = vpop.f32.mrb[58].mxu0 }
 0x381   : > { %v4424_v27 = vadd.f32 %v7160_v45, %v6302_v26  ;;  %v4358_v12 = vpop.f32.mrb[59].mxu0  ;;  %v4435_v36 = vmax.f32 %v4423_v23, 0.0 }
 0x382   : > { %v4422_v43 = vadd.f32 %v6302_v26, %v4358_v12  ;;  %v4433_v41 = vmax.f32 %v4421_v35, 0.0 }
 0x383   : > { %v4436_v0 = vmax.f32 %v4424_v27, 0.0 }
 0x384   : > { %v4434_v39 = vmax.f32 %v4422_v43, 0.0 }
 0x385   : > { %v4446_v49 = vpack.c.bf16 %v4436_v0, %v4435_v36 }
 0x386   : > { %v4445_v52 = vpack.c.bf16 %v4434_v39, %v4433_v41  ;;  %v7163_v31 = vpop.f32.mrb[60].mxu0 }
 0x387   : > { %4453 = vst.msk [vmem:[#allocation3 + $0x8] sm:$0xff] %vm4451_vm5, %v4446_v49  ;;  %v7425_v44 = vadd.f32 %v7163_v31, %v9035_v40  ;;  %v4371_v4 = vpop.f32.mrb[61].mxu0 }
 0x388   : > { %4452 = vst.msk [vmem:[#allocation3] sm:$0xff] %vm4451_vm5, %v4445_v52  ;;  %v7426_v18 = vadd.f32 %v4371_v4, %v9040_v50  ;;  %v7164_v38 = vpop.f32.mrb[62].mxu0 }
 0x389   : > { %v4427_v62 = vadd.f32 %v7425_v44, %v6302_v26  ;;  %v7427_v54 = vadd.f32 %v7164_v38, %v9042_v24  ;;  %v4374_v6 = vpop.f32.mrb[63].mxu0  ;;  %v7820_v38 = vld [vmem:[%s9741_s5 + $0x10] sm:$0xff]  }
 0x38a   : > { %v4425_v1 = vadd.f32 %v7426_v18, %v6302_v26  ;;  %v7428_v10 = vadd.f32 %v4374_v6, %v9046_v47 }
 0x38b   : > { %v4428_v9 = vadd.f32 %v7427_v54, %v6302_v26  ;;  %v4439_v21 = vmax.f32 %v4427_v62, 0.0 }
 0x38c   : > { %v4426_v56 = vadd.f32 %v7428_v10, %v6302_v26  ;;  %v4437_v60 = vmax.f32 %v4425_v1, 0.0 }
 0x38d   : > { %v4440_v51 = vmax.f32 %v4428_v9, 0.0 }
 0x38e   : > { %v4438_v16 = vmax.f32 %v4426_v56, 0.0  ;;  %v7167_v40 = vpop.f32.mrb[64].mxu0  ;;  %v9191_v53 = vld [vmem:[#allocation3 + $0x8] sm:$0xff] }
 0x38f   : > { %v4448_v42 = vpack.c.bf16 %v4440_v51, %v4439_v21  ;;  %v7429_v50 = vadd.f32 %v7167_v40, %v9057_v28  ;;  %v4387_v59 = vpop.f32.mrb[65].mxu0  ;;  %v9194_v61 = vld [vmem:[#allocation3] sm:$0xff]  ;;  %v4489_v11 = vshll.u32 %v9191_v53, 16  ;;  %v4493_v37 = vshrl.u32 %v9191_v53, 16 }
 0x390   : > { %v4447_v24 = vpack.c.bf16 %v4438_v16, %v4437_v60  ;;  %v7430_v55 = vadd.f32 %v4387_v59, %v9061_v25  ;;  %v7168_v2 = vpop.f32.mrb[66].mxu0  ;;  %v4484_v47 = vshll.u32 %v9194_v61, 16  ;;  %v4482_v25 = vshrl.u32 %v9194_v61, 16 }
 0x391   : > { %4455 = vst.msk [vmem:[#allocation3 + $0x18] sm:$0xff] %vm4451_vm5, %v4448_v42  ;;  %v4431_v15 = vadd.f32 %v7429_v50, %v6302_v26  ;;  %v7431_v33 = vadd.f32 %v7168_v2, %v9066_v48  ;;  %v4390_v57 = vpop.f32.mrb[67].mxu0  ;;  %v4491_v17 = vrot.slane %v4489_v11, 1  ;;  %v5056_v13 = vrot.slane %v4493_v37, 5  ;;  %v7821_v42 = vld [vmem:[%s9741_s5 + $0x18] sm:$0xff]  }
 0x392   : > { %4454 = vst.msk [vmem:[#allocation3 + $0x10] sm:$0xff] %vm4451_vm5, %v4447_v24  ;;  %v4429_v28 = vadd.f32 %v7430_v55, %v6302_v26  ;;  %v7432_v58 = vadd.f32 %v4390_v57, %v9069_v5  ;;  %v4486_v8 = vrot.slane %v4484_v47, 1  ;;  %v5059_v32 = vrot.slane %v4489_v11, 6 }
 0x393   : > { %v4432_v19 = vadd.f32 %v7431_v33, %v6302_v26  ;;  %v4443_v48 = vmax.f32 %v4431_v15, 0.0  ;;  %v4755_v34 = vrot.slane %v9191_v53, 1  ;;  %v4905_v35 = vrot.slane %v9191_v53, 5 }
 0x394   : > { %v4430_v7 = vadd.f32 %v7432_v58, %v6302_v26  ;;  %v4487_v20 = vor.u32 %v4486_v8, %v4482_v25  ;;  %v4441_v29 = vmax.f32 %v4429_v28, 0.0  ;;  %v7819_v26 = vld [vmem:[%s9741_s5 + $0x8] sm:$0xff]   ;;  %v9219_v45 = vor.u32 %v5059_v32, %v5056_v13 }
 0x395   : > { %v4444_v3 = vmax.f32 %v4432_v19, 0.0  ;;  %v4495_v31 = vor.u32 %v4493_v37, %v4491_v17  ;;  %v5232_v16 = vrot.slane %v9191_v53, 6 }
 0x396   : > { %v4442_v14 = vmax.f32 %v4430_v7, 0.0  ;;  %v4492_v22 = vsel %vm2143_vm3, %v4487_v20, %v4491_v17 }
 0x397   : > { %v4450_v5 = vpack.c.bf16 %v4444_v3, %v4443_v48  ;;  %7178 = vmatmul.mubr.msk.bf16.vlgmr.msra.gmra.mrb[64].mxu1 %vm4451_vm5, %v4492_v22 }
 0x398   : > { %v4449_v63 = vpack.c.bf16 %v4442_v14, %v4441_v29  ;;  %7198 = vmatpush3.bf16.msra.mxu1 %v7818_v30  ;;  %7181 = vmatprep.mubr.msk.bf16.mxu1 %vm7876_vm4, %v7875_v46  ;;  %v9215_v23 = vld [vmem:[#allocation3 + $0x18] sm:$0xff] }
 0x399   : > { %4457 = vst.msk [vmem:[#allocation3 + $0x28] sm:$0xff] %vm4451_vm5, %v4450_v5  ;;  %v9222_v27 = vld [vmem:[#allocation3 + $0x10] sm:$0xff]  ;;  %7199 = vmatprep.subr.bf16.mxu1 %v7875_v46  ;;  %v9226_v12 = vshll.u32 %v9215_v23, 16  ;;  %v9229_v43 = vshrl.u32 %v9215_v23, 16  ;;  %v4759_v36 = vrot.slane %v9215_v23, 1  ;;  %v4909_v0 = vrot.slane %v9215_v23, 5 }
 0x39a   : > { %4456 = vst.msk [vmem:[#allocation3 + $0x20] sm:$0xff] %vm4451_vm5, %v4449_v63  ;;  %v4497_v41 = vshll.u32 %v9222_v27, 16  ;;  %v4501_v39 = vshrl.u32 %v9222_v27, 16  ;;  %v4757_v49 = vrot.slane %v9222_v27, 1  ;;  %v4907_v52 = vrot.slane %v9222_v27, 5 }
 0x39b   : > { %v5074_v44 = vrot.slane %v9229_v43, 5  ;;  %v5077_v4 = vrot.slane %v9226_v12, 6  ;;  %v5234_v40 = vrot.slane %v9222_v27, 6  ;;  %v5236_v11 = vrot.slane %v9215_v23, 6 }
 0x39c   : > { %v4499_v18 = vrot.slane %v4497_v41, 1  ;;  %7200 = vmatpush3.bf16.msra.mxu1 %v7819_v26  ;;  %v9246_v62 = vsel %vm4753_vm6, %v4755_v34, %v4757_v49  ;;  %v9249_v54 = vsel %vm4753_vm6, %v4757_v49, %v4759_v36  ;;  %v9254_v6 = vsel %vm3162_vm1, %v4905_v35, %v4907_v52 }
 0x39d   : > { %7201 = vmatprep.subr.bf16.mxu1 %v7875_v46  ;;  %v9260_v1 = vsel %vm3162_vm1, %v4907_v52, %v4909_v0  ;;  %v5065_v10 = vrot.slane %v4501_v39, 5  ;;  %v5068_v56 = vrot.slane %v4497_v41, 6  ;;  %v5524_v21 = vrot.slane %v4501_v39, 2 }
 0x39e   : > { %v4500_v9 = vsel %vm2143_vm3, %v4495_v31, %v4499_v18  ;;  %v5525_v51 = vrot.slane %v4497_v41, 3  ;;  %v9264_v60 = vor.u32 %v5077_v4, %v5074_v44  ;;  %v9279_v24 = vsel %vm5230_vm7, %v5232_v16, %v5234_v40 }
 0x39f   : > { %7182 = vmatmul.mubr.msk.bf16.gmra.mrb[68].mxu1 %vm4451_vm5, %v4500_v9  ;;  %v5069_v50 = vor.u32 %v5068_v56, %v5065_v10  ;;  %v4503_v2 = vor.u32 %v4501_v39, %v4499_v18  ;;  %v4507_v37 = vrot.slane %v9226_v12, 1  ;;  %v9305_v8 = vsel %vm5230_vm7, %v5234_v40, %v5236_v11  ;;  %v7822_v10 = vld [vmem:[%s9741_s5 + $0x40] sm:$0xff]   ;;  %v7823_v9 = vld [vmem:[%s9741_s5 + $0x48] sm:$0xff]   ;;  %v7824_v56 = vld [vmem:[%s9741_s5 + $0x50] sm:$0xff]  }
 0x3a0   : > { %7185 = vmatprep.mubr.msk.bf16.mxu1 %vm7876_vm4, %v7875_v46  ;;  %7202 = vmatpush3.bf16.msra.mxu1 %v7820_v38  ;;  %v9281_v55 = vor.u32 %v5525_v51, %v5524_v21  ;;  %v5377_v30 = vrot.slane %v9222_v27, 2  ;;  %v5379_v48 = vrot.slane %v9215_v23, 2  ;;  %v5528_v32 = vrot.slane %v9229_v43, 2  ;;  %v4738_v51 = vld [vmem:[#allocation3] sm:$0xfe] }
 0x3a1   : > { %v9273_v59 = vld [vmem:[#allocation3 + $0x20] sm:$0x1f]  ;;  %7203 = vmatprep.subr.bf16.mxu1 %v7875_v46  ;;  %v9289_v33 = vsel %vm3455_vm2, %v9219_v45, %v5069_v50  ;;  %v9293_v57 = vsel %vm3455_vm2, %v5069_v50, %v9264_v60  ;;  %v4508_v25 = vsel %vm2143_vm3, %v4503_v2, %v4507_v37  ;;  %v4511_v13 = vor.u32 %v9229_v43, %v4507_v37  ;;  %v7827_v2 = vld [vmem:[%s9741_s5 + $0x68] sm:$0xff]  }
 0x3a2   : > { %v4761_v47 = vrot.slane %v9273_v59, 1  ;;  %v9285_v15 = vld [vmem:[#allocation3 + $0x20] sm:$0xff]  ;;  %v4513_v58 = vshll.u32 %v9273_v59, 16  ;;  %v9324_v14 = vsel %vm5375_vm8, %v5377_v30, %v5379_v48  ;;  %v5529_v5 = vrot.slane %v9226_v12, 3 }
 0x3a3   : > { %v5238_v19 = vrot.slane %v9285_v15, 6  ;;  %v5081_v7 = vshrl.u32 %v9285_v15, 16  ;;  %v5084_v20 = vshll.u32 %v9285_v15, 16  ;;  %v5381_v29 = vrot.slane %v9285_v15, 2  ;;  %v4462_v21 = vld [vmem:[#allocation3 + $0x20] sm:$0xf] }
 0x3a4   : > { %7204 = vmatpush3.bf16.msra.mxu1 %v7821_v42  ;;  %v9299_v28 = vsel %vm4753_vm6, %v4759_v36, %v4761_v47  ;;  %v4515_v3 = vrot.slane %v4513_v58, 1  ;;  %v5530_v41 = vor.u32 %v5529_v5, %v5528_v32  ;;  %v5679_v49 = vrot.slane %v9222_v27, 3  ;;  %v7826_v42 = vld [vmem:[%s9741_s5 + $0x60] sm:$0xff]  }
 0x3a5   : > { %7225 = vmatprep.subr.bf16.mxu1 %v7875_v46  ;;  %v9316_v17 = vsel %vm5230_vm7, %v5236_v11, %v5238_v19  ;;  %v9329_v22 = vsel %vm5375_vm8, %v5379_v48, %v5381_v29  ;;  %v5532_v63 = vrot.slane %v5081_v7, 2  ;;  %v5533_v26 = vrot.slane %v5084_v20, 3  ;;  %v7828_v11 = vld [vmem:[%s9741_s5 + $0x70] sm:$0xff]  }
 0x3a6   : > { %v4516_v36 = vsel %vm2143_vm3, %v4511_v13, %v4515_v3  ;;  %v5681_v52 = vrot.slane %v9215_v23, 3  ;;  %v5683_v12 = vrot.slane %v9285_v15, 3  ;;  %v9349_v43 = vsel %vm5515_vm9, %v9281_v55, %v5530_v41 }
 0x3a7   : > { %7186 = vmatmul.mubr.msk.bf16.gmra.mrb[72].mxu1 %vm4451_vm5, %v4508_v25  ;;  %v9339_v39 = vor.u32 %v5533_v26, %v5532_v63  ;;  %v4517_v18 = vshrl.u32 %v9273_v59, 16  ;;  %v4754_v40 = vrot.slane %v4738_v51, 1  ;;  %v7831_v59 = vld [vmem:[%s9741_s5 + $0x88] sm:$0xff]  }
 0x3a8   : > { %7189 = vmatprep.mubr.msk.bf16.mxu1 %vm7876_vm4, %v7875_v46  ;;  %v9358_v44 = vsel %vm5677_vm10, %v5679_v49, %v5681_v52  ;;  %v9363_v4 = vsel %vm5677_vm10, %v5681_v52, %v5683_v12  ;;  %v4888_v25 = vld [vmem:[#allocation3 + $0x28] sm:$0x1]  ;;  %v5086_v52 = vrot.slane %v5084_v20, 6  ;;  %v5218_v20 = vld [vmem:[#allocation3] sm:$0xc0] }
 0x3a9   : > { %v9353_v31 = vsel %vm5515_vm9, %v5530_v41, %v9339_v39  ;;  %v4519_v38 = vor.u32 %v4517_v18, %v4515_v3  ;;  %v4756_v50 = vsel %vm4753_vm6, %v4754_v40, %v4755_v34  ;;  %v7829_v34 = vld [vmem:[%s9741_s5 + $0x78] sm:$0xff]   ;;  %v4913_v48 = vrot.slane %v4888_v25, 5  ;;  %v7835_v26 = vld [vmem:[%s9741_s5 + $0xa8] sm:$0xff]  }
 0x3aa   : > { %v5083_v41 = vrot.slane %v5081_v7, 5  ;;  %v7839_v40 = vld [vmem:[%s9741_s5 + $0xc8] sm:$0xff]  }
 0x3ac   : > { %v5087_v18 = vor.u32 %v5086_v52, %v5083_v41 }
 0x3af   : > { %7190 = vmatmul.mubr.msk.bf16.gmra.mrb[76].mxu1 %vm4451_vm5, %v4516_v36  ;;  %v7836_v36 = vld [vmem:[%s9741_s5 + $0xb0] sm:$0xff]  }
 0x3b0   : > { %7193 = vmatprep.mubr.msk.bf16.mxu1 %vm7876_vm4, %v7875_v46 }
 0x3b7   : > { %7194 = vmatmul.mubr.msk.bf16.gmra.mrb[80].mxu1 %vm4451_vm5, %v4519_v38 }
 0x3b8   : > { %7205 = vmatprep.mubr.msk.bf16.mxu1 %vm7876_vm4, %v7875_v46 }
 0x3bf   : > { %7206 = vmatmul.mubr.msk.bf16.vlgmr.msra.gmra.mrb[84].mxu1 %vm4451_vm5, %v9194_v61  ;;  %v7825_v61 = vld [vmem:[%s9741_s5 + $0x58] sm:$0xff]  }
 0x3c0   : > { %7226 = vmatpush3.bf16.msra.mxu1 %v7822_v10  ;;  %7209 = vmatprep.mubr.msk.bf16.mxu1 %vm7876_vm4, %v7875_v46 }
 0x3c1   : > { %7227 = vmatprep.subr.bf16.mxu1 %v7875_v46 }
 0x3c4   : > { %7228 = vmatpush3.bf16.msra.mxu1 %v7823_v9  ;;  %v5088_v9 = vsel %vm3455_vm2, %v9264_v60, %v5087_v18  ;;  %v7838_v60 = vld [vmem:[%s9741_s5 + $0xc0] sm:$0xff]  }
 0x3c5   : > { %7229 = vmatprep.subr.bf16.mxu1 %v7875_v46 }
 0x3c7   : > { %7210 = vmatmul.mubr.msk.bf16.gmra.mrb[88].mxu1 %vm4451_vm5, %v9191_v53  ;;  %v7841_v53 = vld [vmem:[%s9741_s5 + $0xd8] sm:$0xff]  }
 0x3c8   : > { %7213 = vmatprep.mubr.msk.bf16.mxu1 %vm7876_vm4, %v7875_v46  ;;  %7230 = vmatpush3.bf16.msra.mxu1 %v7824_v56 }
 0x3c9   : > { %7231 = vmatprep.subr.bf16.mxu1 %v7875_v46 }
 0x3cc   : > { %7232 = vmatpush3.bf16.msra.mxu1 %v7825_v61 }
 0x3cd   : > { %7253 = vmatprep.subr.bf16.mxu1 %v7875_v46 }
 0x3cf   : > { %7214 = vmatmul.mubr.msk.bf16.gmra.mrb[92].mxu1 %vm4451_vm5, %v9222_v27 }
 0x3d0   : > { %7217 = vmatprep.mubr.msk.bf16.mxu1 %vm7876_vm4, %v7875_v46 }
 0x3d7   : > { %7218 = vmatmul.mubr.msk.bf16.gmra.mrb[96].mxu1 %vm4451_vm5, %v9215_v23 }
 0x3d8   : > { %7221 = vmatprep.mubr.msk.bf16.mxu1 %vm7876_vm4, %v7875_v46 }
 0x3df   : > { %7222 = vmatmul.mubr.msk.bf16.gmra.mrb[100].mxu1 %vm4451_vm5, %v4462_v21  ;;  %v5231_v21 = vrot.slane %v5218_v20, 6 }
 0x3e0   : > { %7233 = vmatprep.mubr.msk.bf16.mxu1 %vm7876_vm4, %v7875_v46 }
 0x3e1   : > { %v5233_v51 = vsel %vm5230_vm7, %v5231_v21, %v5232_v16 }
 0x3e7   : > { %7234 = vmatmul.mubr.msk.bf16.vlgmr.msra.gmra.mrb[104].mxu1 %vm4451_vm5, %v4756_v50 }
 0x3e8   : > { %7254 = vmatpush3.bf16.msra.mxu1 %v7826_v42  ;;  %7237 = vmatprep.mubr.msk.bf16.mxu1 %vm7876_vm4, %v7875_v46  ;;  %v7840_v42 = vld [vmem:[%s9741_s5 + $0xd0] sm:$0xff]  }
 0x3e9   : > { %7255 = vmatprep.subr.bf16.mxu1 %v7875_v46 }
 0x3ec   : > { %7256 = vmatpush3.bf16.msra.mxu1 %v7827_v2 }
 0x3ed   : > { %7257 = vmatprep.subr.bf16.mxu1 %v7875_v46 }
 0x3ef   : > { %7238 = vmatmul.mubr.msk.bf16.gmra.mrb[108].mxu1 %vm4451_vm5, %v9246_v62  ;;  %v4883_v62 = vld [vmem:[#allocation3] sm:$0xe0] }
 0x3f0   : > { %7241 = vmatprep.mubr.msk.bf16.mxu1 %vm7876_vm4, %v7875_v46  ;;  %7258 = vmatpush3.bf16.msra.mxu1 %v7828_v11  ;;  %v4904_v37 = vrot.slane %v4883_v62, 5  ;;  %v5046_v3 = vshrl.u32 %v4883_v62, 16  ;;  %v5049_v13 = vshll.u32 %v4883_v62, 16 }
 0x3f1   : > { %7259 = vmatprep.subr.bf16.mxu1 %v7875_v46 }
 0x3f2   : > { %v5048_v32 = vrot.slane %v5046_v3, 5  ;;  %v5051_v5 = vrot.slane %v5049_v13, 6  ;;  %v7842_v3 = vld [vmem:[%s9741_s5 + $0xe0] sm:$0xff]  }
 0x3f4   : > { %7260 = vmatpush3.bf16.msra.mxu1 %v7829_v34  ;;  %v5052_v23 = vor.u32 %v5051_v5, %v5048_v32 }
 0x3f5   : > { %7281 = vmatprep.subr.bf16.mxu1 %v7875_v46 }
 0x3f6   : > { %v5061_v63 = vsel %vm3455_vm2, %v5052_v23, %v9219_v45  ;;  %v7837_v45 = vld [vmem:[%s9741_s5 + $0xb8] sm:$0xff]  }
 0x3f7   : > { %7242 = vmatmul.mubr.msk.bf16.gmra.mrb[112].mxu1 %vm4451_vm5, %v9249_v54  ;;  %v7830_v54 = vld [vmem:[%s9741_s5 + $0x80] sm:$0xff]  }
 0x3f8   : > { %7245 = vmatprep.mubr.msk.bf16.mxu1 %vm7876_vm4, %v7875_v46 }
 0x3ff   : > { %7246 = vmatmul.mubr.msk.bf16.gmra.mrb[116].mxu1 %vm4451_vm5, %v9299_v28  ;;  %v4906_v28 = vsel %vm3162_vm1, %v4904_v37, %v4905_v35  ;;  %v7833_v35 = vld [vmem:[%s9741_s5 + $0x98] sm:$0xff]  }
 0x400   : > { %7249 = vmatprep.mubr.msk.bf16.mxu1 %vm7876_vm4, %v7875_v46 }
 0x407   : > { %7250 = vmatmul.mubr.msk.bf16.gmra.mrb[120].mxu1 %vm4451_vm5, %v4761_v47  ;;  %v7832_v47 = vld [vmem:[%s9741_s5 + $0x90] sm:$0xff]  }
 0x408   : > { %7261 = vmatprep.mubr.msk.bf16.mxu1 %vm7876_vm4, %v7875_v46 }
 0x40f   : > { %7262 = vmatmul.mubr.msk.bf16.vlgmr.msra.gmra.mrb[124].mxu1 %vm4451_vm5, %v4906_v28 }
 0x410   : > { %7282 = vmatpush3.bf16.msra.mxu1 %v7830_v54  ;;  %7265 = vmatprep.mubr.msk.bf16.mxu1 %vm7876_vm4, %v7875_v46 }
 0x411   : > { %7283 = vmatprep.subr.bf16.mxu1 %v7875_v46 }
 0x414   : > { %7284 = vmatpush3.bf16.msra.mxu1 %v7831_v59 }
 0x415   : > { %7285 = vmatprep.subr.bf16.mxu1 %v7875_v46 }
 0x417   : > { %7266 = vmatmul.mubr.msk.bf16.gmra.mrb[128].mxu1 %vm4451_vm5, %v9254_v6  ;;  %v4911_v6 = vrot.slane %v9285_v15, 5 }
 0x418   : > { %7269 = vmatprep.mubr.msk.bf16.mxu1 %vm7876_vm4, %v7875_v46  ;;  %7286 = vmatpush3.bf16.msra.mxu1 %v7832_v47 }
 0x419   : > { %7287 = vmatprep.subr.bf16.mxu1 %v7875_v46  ;;  %v4912_v58 = vsel %vm3162_vm1, %v4909_v0, %v4911_v6  ;;  %v7834_v0 = vld [vmem:[%s9741_s5 + $0xa0] sm:$0xff]  }
 0x41c   : > { %7288 = vmatpush3.bf16.msra.mxu1 %v7833_v35 }
 0x41d   : > { %7309 = vmatprep.subr.bf16.mxu1 %v7875_v46 }
 0x41f   : > { %7270 = vmatmul.mubr.msk.bf16.gmra.mrb[132].mxu1 %vm4451_vm5, %v9260_v1  ;;  %v4914_v1 = vsel %vm3162_vm1, %v4911_v6, %v4913_v48  ;;  %v5362_v6 = vld [vmem:[#allocation3 + $0x8] sm:$0xfc] }
 0x420   : > { %7273 = vmatprep.mubr.msk.bf16.mxu1 %vm7876_vm4, %v7875_v46  ;;  %v5376_v48 = vrot.slane %v5362_v6, 2 }
 0x427   : > { %7274 = vmatmul.mubr.msk.bf16.gmra.mrb[136].mxu1 %vm4451_vm5, %v4912_v58 }
 0x428   : > { %7277 = vmatprep.mubr.msk.bf16.mxu1 %vm7876_vm4, %v7875_v46 }
 0x42f   : > { %7278 = vmatmul.mubr.msk.bf16.gmra.mrb[140].mxu1 %vm4451_vm5, %v4914_v1  ;;  %v5378_v1 = vsel %vm5375_vm8, %v5376_v48, %v5377_v30  ;;  %v7844_v30 = vld [vmem:[%s9741_s5 + $0xf0] sm:$0xff]  }
 0x430   : > { %7289 = vmatprep.mubr.msk.bf16.mxu1 %vm7876_vm4, %v7875_v46 }
 0x437   : > { %7290 = vmatmul.mubr.msk.bf16.vlgmr.msra.gmra.mrb[144].mxu1 %vm4451_vm5, %v5061_v63  ;;  %v7845_v63 = vld [vmem:[%s9741_s5 + $0xf8] sm:$0xff]  }
 0x438   : > { %7310 = vmatpush3.bf16.msra.mxu1 %v7834_v0  ;;  %7293 = vmatprep.mubr.msk.bf16.mxu1 %vm7876_vm4, %v7875_v46 }
 0x439   : > { %7311 = vmatprep.subr.bf16.mxu1 %v7875_v46 }
 0x43c   : > { %7312 = vmatpush3.bf16.msra.mxu1 %v7835_v26 }
 0x43d   : > { %7313 = vmatprep.subr.bf16.mxu1 %v7875_v46 }
 0x43f   : > { %7294 = vmatmul.mubr.msk.bf16.gmra.mrb[148].mxu1 %vm4451_vm5, %v9289_v33  ;;  %v5035_v33 = vld [vmem:[#allocation3 + $0x28] sm:$0x3] }
 0x440   : > { %7297 = vmatprep.mubr.msk.bf16.mxu1 %vm7876_vm4, %v7875_v46  ;;  %7314 = vmatpush3.bf16.msra.mxu1 %v7836_v36  ;;  %v5090_v38 = vshrl.u32 %v5035_v33, 16  ;;  %v5093_v10 = vshll.u32 %v5035_v33, 16  ;;  %v5240_v28 = vrot.slane %v5035_v33, 6 }
 0x441   : > { %7315 = vmatprep.subr.bf16.mxu1 %v7875_v46 }
 0x442   : > { %v5092_v56 = vrot.slane %v5090_v38, 5  ;;  %v5095_v61 = vrot.slane %v5093_v10, 6 }
 0x444   : > { %7316 = vmatpush3.bf16.msra.mxu1 %v7837_v45  ;;  %v5096_v7 = vor.u32 %v5095_v61, %v5092_v56 }
 0x445   : > { %7337 = vmatprep.subr.bf16.mxu1 %v7875_v46 }
 0x447   : > { %7298 = vmatmul.mubr.msk.bf16.gmra.mrb[152].mxu1 %vm4451_vm5, %v9293_v57  ;;  %v5097_v57 = vsel %vm3455_vm2, %v5087_v18, %v5096_v7 }
 0x448   : > { %7301 = vmatprep.mubr.msk.bf16.mxu1 %vm7876_vm4, %v7875_v46 }
 0x44f   : > { %7302 = vmatmul.mubr.msk.bf16.gmra.mrb[156].mxu1 %vm4451_vm5, %v5088_v9 }
 0x450   : > { %7305 = vmatprep.mubr.msk.bf16.mxu1 %vm7876_vm4, %v7875_v46 }
 0x457   : > { %7306 = vmatmul.mubr.msk.bf16.gmra.mrb[160].mxu1 %vm4451_vm5, %v5097_v57 }
 0x458   : > { %7317 = vmatprep.mubr.msk.bf16.mxu1 %vm7876_vm4, %v7875_v46 }
 0x45f   : > { %7318 = vmatmul.mubr.msk.bf16.vlgmr.msra.gmra.mrb[164].mxu1 %vm4451_vm5, %v5233_v51  ;;  %v5517_v51 = vshrl.u32 %v5362_v6, 16 }
 0x460   : > { %7338 = vmatpush3.bf16.msra.mxu1 %v7838_v60  ;;  %7321 = vmatprep.mubr.msk.bf16.mxu1 %vm7876_vm4, %v7875_v46 }
 0x461   : > { %7339 = vmatprep.subr.bf16.mxu1 %v7875_v46 }
 0x464   : > { %7340 = vmatpush3.bf16.msra.mxu1 %v7839_v40  ;;  %v5520_v40 = vshll.u32 %v5362_v6, 16 }
 0x465   : > { %7341 = vmatprep.subr.bf16.mxu1 %v7875_v46 }
 0x467   : > { %7322 = vmatmul.mubr.msk.bf16.gmra.mrb[168].mxu1 %vm4451_vm5, %v9279_v24 }
 0x468   : > { %7325 = vmatprep.mubr.msk.bf16.mxu1 %vm7876_vm4, %v7875_v46  ;;  %7342 = vmatpush3.bf16.msra.mxu1 %v7840_v42 }
 0x469   : > { %7343 = vmatprep.subr.bf16.mxu1 %v7875_v46 }
 0x46a   : > { %v4593_v16 = vpop.f32.mrb[64].mxu1 }
 0x46b   : > { %v7179_v50 = vpop.f32.mrb[65].mxu1 }
 0x46c   : > { %v4596_v2 = vpop.f32.mrb[66].mxu1  ;;  %7344 = vmatpush3.bf16.msra.mxu1 %v7841_v53 }
 0x46d   : > { %v7180_v11 = vpop.f32.mrb[67].mxu1  ;;  %7365 = vmatprep.subr.bf16.mxu1 %v7875_v46 }
 0x46f   : > { %7326 = vmatmul.mubr.msk.bf16.gmra.mrb[172].mxu1 %vm4451_vm5, %v9305_v8  ;;  %v5241_v8 = vsel %vm5230_vm7, %v5238_v19, %v5240_v28  ;;  %v7843_v19 = vld [vmem:[%s9741_s5 + $0xe8] sm:$0xff]  }
 0x470   : > { %7329 = vmatprep.mubr.msk.bf16.mxu1 %vm7876_vm4, %v7875_v46 }
 0x472   : > { %v4601_v24 = vpop.f32.mrb[68].mxu1 }
 0x473   : > { %v7183_v34 = vpop.f32.mrb[69].mxu1 }
 0x474   : > { %v4604_v62 = vpop.f32.mrb[70].mxu1 }
 0x475   : > { %v7184_v37 = vpop.f32.mrb[71].mxu1 }
 0x477   : > { %7330 = vmatmul.mubr.msk.bf16.gmra.mrb[176].mxu1 %vm4451_vm5, %v9316_v17 }
 0x478   : > { %7333 = vmatprep.mubr.msk.bf16.mxu1 %vm7876_vm4, %v7875_v46 }
 0x47a   : > { %v4609_v54 = vpop.f32.mrb[72].mxu1 }
 0x47b   : > { %v7187_v59 = vpop.f32.mrb[73].mxu1 }
 0x47c   : > { %v4612_v47 = vpop.f32.mrb[74].mxu1  ;;  %v7847_v59 = vld [vmem:[%s9741_s5 + $0x108] sm:$0xff]  }
 0x47d   : > { %v7188_v35 = vpop.f32.mrb[75].mxu1 }
 0x47f   : > { %7334 = vmatmul.mubr.msk.bf16.gmra.mrb[180].mxu1 %vm4451_vm5, %v5241_v8 }
 0x480   : > { %7345 = vmatprep.mubr.msk.bf16.mxu1 %vm7876_vm4, %v7875_v46 }
 0x482   : > { %v4617_v58 = vpop.f32.mrb[76].mxu1 }
 0x483   : > { %v7191_v17 = vpop.f32.mrb[77].mxu1 }
 0x484   : > { %v4620_v25 = vpop.f32.mrb[78].mxu1  ;;  %v9633_v17 = vld [vmem:[#allocation3 + $0x28] sm:$0x7f] }
 0x485   : > { %v7192_v13 = vpop.f32.mrb[79].mxu1 }
 0x486   : > { %v5540_v13 = vshll.u32 %v9633_v17, 16 }
 0x487   : > { %7346 = vmatmul.mubr.msk.bf16.vlgmr.msra.gmra.mrb[184].mxu1 %vm4451_vm5, %v5378_v1 }
 0x488   : > { %7366 = vmatpush3.bf16.msra.mxu1 %v7842_v3  ;;  %7349 = vmatprep.mubr.msk.bf16.mxu1 %vm7876_vm4, %v7875_v46  ;;  %v5537_v3 = vshrl.u32 %v9633_v17, 16 }
 0x489   : > { %7367 = vmatprep.subr.bf16.mxu1 %v7875_v46 }
 0x48a   : > { %v4625_v32 = vpop.f32.mrb[80].mxu1 }
 0x48b   : > { %v7195_v5 = vpop.f32.mrb[81].mxu1 }
 0x48c   : > { %v4628_v23 = vpop.f32.mrb[82].mxu1  ;;  %7368 = vmatpush3.bf16.msra.mxu1 %v7843_v19 }
 0x48d   : > { %v7196_v0 = vpop.f32.mrb[83].mxu1  ;;  %7369 = vmatprep.subr.bf16.mxu1 %v7875_v46  ;;  %v5539_v23 = vrot.slane %v5537_v3, 2 }
 0x48f   : > { %7350 = vmatmul.mubr.msk.bf16.gmra.mrb[188].mxu1 %vm4451_vm5, %v9324_v14  ;;  %v5363_v14 = vld [vmem:[#allocation3 + $0x28] sm:$0x3f] }
 0x490   : > { %7353 = vmatprep.mubr.msk.bf16.mxu1 %vm7876_vm4, %v7875_v46  ;;  %7370 = vmatpush3.bf16.msra.mxu1 %v7844_v30  ;;  %v5383_v38 = vrot.slane %v5363_v14, 2  ;;  %v5542_v30 = vrot.slane %v5540_v13, 3 }
 0x491   : > { %7371 = vmatprep.subr.bf16.mxu1 %v7875_v46 }
 0x492   : > { %v4700_v26 = vpop.f32.mrb[84].mxu1  ;;  %v5384_v57 = vsel %vm5375_vm8, %v5381_v29, %v5383_v38  ;;  %v5519_v29 = vrot.slane %v5517_v51, 2 }
 0x493   : > { %v9591_v36 = vadd.f32 %v4700_v26, %v4593_v16  ;;  %v7207_v45 = vpop.f32.mrb[85].mxu1  ;;  %v5522_v16 = vrot.slane %v5520_v40, 3 }
 0x494   : > { %v4703_v41 = vpop.f32.mrb[86].mxu1  ;;  %7372 = vmatpush3.bf16.msra.mxu1 %v7845_v63  ;;  %v5543_v63 = vor.u32 %v5542_v30, %v5539_v23 }
 0x495   : > { %v9593_v52 = vadd.f32 %v4703_v41, %v4596_v2  ;;  %v7208_v33 = vpop.f32.mrb[87].mxu1  ;;  %7393 = vmatprep.subr.bf16.mxu1 %v7875_v46  ;;  %v5523_v34 = vor.u32 %v5522_v16, %v5519_v29 }
 0x497   : > { %7354 = vmatmul.mubr.msk.bf16.gmra.mrb[192].mxu1 %vm4451_vm5, %v9329_v22  ;;  %v5527_v28 = vsel %vm5515_vm9, %v5523_v34, %v9281_v55  ;;  %v7848_v55 = vld [vmem:[%s9741_s5 + $0x110] sm:$0xff]   ;;  %v5685_v34 = vrot.slane %v9633_v17, 3 }
 0x498   : > { %7357 = vmatprep.mubr.msk.bf16.mxu1 %vm7876_vm4, %v7875_v46 }
 0x49a   : > { %v4708_v18 = vpop.f32.mrb[88].mxu1 }
 0x49b   : > { %v9600_v10 = vadd.f32 %v4708_v18, %v4601_v24  ;;  %v7211_v9 = vpop.f32.mrb[89].mxu1 }
 0x49c   : > { %v4711_v56 = vpop.f32.mrb[90].mxu1 }
 0x49d   : > { %v9602_v61 = vadd.f32 %v4711_v56, %v4604_v62  ;;  %v7212_v7 = vpop.f32.mrb[91].mxu1  ;;  %v7846_v62 = vld [vmem:[%s9741_s5 + $0x100] sm:$0xff]   ;;  %v5665_v56 = vld [vmem:[#allocation3 + $0x8] sm:$0xf8] }
 0x49f   : > { %7358 = vmatmul.mubr.msk.bf16.gmra.mrb[196].mxu1 %vm4451_vm5, %v5384_v57 }
 0x4a0   : > { %7361 = vmatprep.mubr.msk.bf16.mxu1 %vm7876_vm4, %v7875_v46 }
 0x4a2   : > { %v4716_v22 = vpop.f32.mrb[92].mxu1 }
 0x4a3   : > { %v9610_v20 = vadd.f32 %v4716_v22, %v4609_v54  ;;  %v7215_v21 = vpop.f32.mrb[93].mxu1  ;;  %v5678_v22 = vrot.slane %v5665_v56, 3 }
 0x4a4   : > { %v4719_v60 = vpop.f32.mrb[94].mxu1 }
 0x4a5   : > { %v4720_v42 = vadd.f32 %v4719_v60, %v4612_v47  ;;  %v7216_v53 = vpop.f32.mrb[95].mxu1 }
 0x4a7   : > { %7362 = vmatmul.mubr.msk.bf16.gmra.mrb[200].mxu1 %vm4451_vm5, %v5383_v38 }
 0x4a8   : > { %7373 = vmatprep.mubr.msk.bf16.mxu1 %vm7876_vm4, %v7875_v46 }
 0x4aa   : > { %v4724_v50 = vpop.f32.mrb[96].mxu1 }
 0x4ab   : > { %v4725_v2 = vadd.f32 %v4724_v50, %v4617_v58  ;;  %v7219_v11 = vpop.f32.mrb[97].mxu1 }
 0x4ac   : > { %v4727_v24 = vpop.f32.mrb[98].mxu1 }
 0x4ad   : > { %v4728_v37 = vadd.f32 %v4727_v24, %v4620_v25  ;;  %v7220_v54 = vpop.f32.mrb[99].mxu1  ;;  %v7849_v25 = vld [vmem:[%s9741_s5 + $0x118] sm:$0xff]  }
 0x4af   : > { %7374 = vmatmul.mubr.msk.bf16.vlgmr.msra.gmra.mrb[204].mxu1 %vm4451_vm5, %v5527_v28 }
 0x4b0   : > { %7394 = vmatpush3.bf16.msra.mxu1 %v7846_v62  ;;  %7377 = vmatprep.mubr.msk.bf16.mxu1 %vm7876_vm4, %v7875_v46 }
 0x4b1   : > { %7395 = vmatprep.subr.bf16.mxu1 %v7875_v46 }
 0x4b2   : > { %v4732_v47 = vpop.f32.mrb[100].mxu1 }
 0x4b3   : > { %v4733_v35 = vadd.f32 %v4732_v47, %v4625_v32  ;;  %v7223_v8 = vpop.f32.mrb[101].mxu1 }
 0x4b4   : > { %v4735_v6 = vpop.f32.mrb[102].mxu1  ;;  %7396 = vmatpush3.bf16.msra.mxu1 %v7847_v59  ;;  %v5686_v59 = vsel %vm5677_vm10, %v5683_v12, %v5685_v34 }
 0x4b5   : > { %v7224_v58 = vpop.f32.mrb[103].mxu1  ;;  %7397 = vmatprep.subr.bf16.mxu1 %v7875_v46 }
 0x4b7   : > { %7378 = vmatmul.mubr.msk.bf16.gmra.mrb[208].mxu1 %vm4451_vm5, %v9349_v43 }
 0x4b8   : > { %7381 = vmatprep.mubr.msk.bf16.mxu1 %vm7876_vm4, %v7875_v46  ;;  %7398 = vmatpush3.bf16.msra.mxu1 %v7848_v55 }
 0x4b9   : > { %7399 = vmatprep.subr.bf16.mxu1 %v7875_v46 }
 0x4ba   : > { %v4836_v48 = vpop.f32.mrb[104].mxu1 }
 0x4bb   : > { %v4874_v1 = vadd.f32 %v4836_v48, %v9591_v36  ;;  %v7235_v43 = vpop.f32.mrb[105].mxu1 }
 0x4bc   : > { %v4839_v19 = vpop.f32.mrb[106].mxu1  ;;  %7400 = vmatpush3.bf16.msra.mxu1 %v7849_v25 }
 0x4bd   : > { %v4875_v32 = vadd.f32 %v4839_v19, %v9593_v52  ;;  %v7236_v5 = vpop.f32.mrb[107].mxu1  ;;  %v5544_v52 = vsel %vm5515_vm9, %v9339_v39, %v5543_v63 }
 0x4bf   : > { %7382 = vmatmul.mubr.msk.bf16.gmra.mrb[212].mxu1 %vm4451_vm5, %v9353_v31 }
 0x4c0   : > { %7385 = vmatprep.mubr.msk.bf16.mxu1 %vm7876_vm4, %v7875_v46 }
 0x4c2   : > { %v4844_v0 = vpop.f32.mrb[108].mxu1 }
 0x4c3   : > { %v4876_v26 = vadd.f32 %v4844_v0, %v9600_v10  ;;  %v7239_v45 = vpop.f32.mrb[109].mxu1 }
 0x4c4   : > { %v4847_v36 = vpop.f32.mrb[110].mxu1 }
 0x4c5   : > { %v4877_v41 = vadd.f32 %v4847_v36, %v9602_v61  ;;  %v7240_v33 = vpop.f32.mrb[111].mxu1 }
 0x4c7   : > { %7386 = vmatmul.mubr.msk.bf16.gmra.mrb[216].mxu1 %vm4451_vm5, %v5544_v52 }
 0x4c8   : > { %7389 = vmatprep.mubr.msk.bf16.mxu1 %vm7876_vm4, %v7875_v46 }
 0x4ca   : > { %v4852_v31 = vpop.f32.mrb[112].mxu1 }
 0x4cb   : > { %v4878_v14 = vadd.f32 %v4852_v31, %v9610_v20  ;;  %v7243_v18 = vpop.f32.mrb[113].mxu1  ;;  %v5680_v20 = vsel %vm5677_vm10, %v5678_v22, %v5679_v49 }
 0x4cc   : > { %v4855_v38 = vpop.f32.mrb[114].mxu1 }
 0x4cd   : > { %v4879_v9 = vadd.f32 %v4855_v38, %v4720_v42  ;;  %v7244_v10 = vpop.f32.mrb[115].mxu1 }
 0x4cf   : > { %7390 = vmatmul.mubr.msk.bf16.gmra.mrb[220].mxu1 %vm4451_vm5, %v5543_v63 }
 0x4d0   : > { %7401 = vmatprep.mubr.msk.bf16.mxu1 %vm7876_vm4, %v7875_v46 }
 0x4d2   : > { %v4860_v61 = vpop.f32.mrb[116].mxu1 }
 0x4d3   : > { %v4880_v39 = vadd.f32 %v4860_v61, %v4725_v2  ;;  %v7247_v7 = vpop.f32.mrb[117].mxu1 }
 0x4d4   : > { %v4863_v57 = vpop.f32.mrb[118].mxu1 }
 0x4d5   : > { %v4881_v21 = vadd.f32 %v4863_v57, %v4728_v37  ;;  %v7248_v60 = vpop.f32.mrb[119].mxu1 }
 0x4d7   : > { %7402 = vmatmul.mubr.msk.bf16.vlgmr.msra.gmra.mrb[224].mxu1 %vm4451_vm5, %v5680_v20 }
 0x4d8   : > { %7405 = vmatprep.mubr.msk.bf16.mxu1 %vm7876_vm4, %v7875_v46 }
 0x4da   : > { %v4868_v51 = vpop.f32.mrb[120].mxu1 }
 0x4db   : > { %v4882_v40 = vadd.f32 %v4868_v51, %v4733_v35  ;;  %v7251_v42 = vpop.f32.mrb[121].mxu1 }
 0x4dc   : > { %v4871_v53 = vpop.f32.mrb[122].mxu1 }
 0x4dd   : > { %v7252_v29 = vpop.f32.mrb[123].mxu1 }
 0x4df   : > { %7406 = vmatmul.mubr.msk.bf16.gmra.mrb[228].mxu1 %vm4451_vm5, %v9358_v44 }
 0x4e0   : > { %7409 = vmatprep.mubr.msk.bf16.mxu1 %vm7876_vm4, %v7875_v46 }
 0x4e2   : > { %v4988_v16 = vpop.f32.mrb[124].mxu1 }
 0x4e3   : > { %v5026_v27 = vadd.f32 %v4988_v16, %v4874_v1  ;;  %v7263_v50 = vpop.f32.mrb[125].mxu1 }
 0x4e4   : > { %v4991_v49 = vpop.f32.mrb[126].mxu1 }
 0x4e5   : > { %v5027_v2 = vadd.f32 %v4991_v49, %v4875_v32  ;;  %v7264_v11 = vpop.f32.mrb[127].mxu1 }
 0x4e7   : > { %7410 = vmatmul.mubr.msk.bf16.gmra.mrb[232].mxu1 %vm4451_vm5, %v9363_v4 }
 0x4e8   : > { %7413 = vmatprep.mubr.msk.bf16.mxu1 %vm7876_vm4, %v7875_v46 }
 0x4ea   : > { %v4996_v24 = vpop.f32.mrb[128].mxu1 }
 0x4eb   : > { %v5028_v62 = vadd.f32 %v4996_v24, %v4876_v26  ;;  %v7267_v44 = vpop.f32.mrb[129].mxu1 }
 0x4ec   : > { %v4999_v37 = vpop.f32.mrb[130].mxu1 }
 0x4ed   : > { %v5029_v54 = vadd.f32 %v4999_v37, %v4877_v41  ;;  %v7268_v28 = vpop.f32.mrb[131].mxu1 }
 0x4ef   : > { %7414 = vmatmul.mubr.msk.bf16.gmra.mrb[236].mxu1 %vm4451_vm5, %v5686_v59 }
 0x4f0   : > { %7417 = vmatprep.mubr.msk.bf16.mxu1 %vm7876_vm4, %v7875_v46 }
 0x4f2   : > { %v5004_v4 = vpop.f32.mrb[132].mxu1 }
 0x4f3   : > { %v5030_v47 = vadd.f32 %v5004_v4, %v4878_v14  ;;  %v7271_v35 = vpop.f32.mrb[133].mxu1 }
 0x4f4   : > { %v5007_v8 = vpop.f32.mrb[134].mxu1 }
 0x4f5   : > { %v5031_v6 = vadd.f32 %v5007_v8, %v4879_v9  ;;  %v7272_v55 = vpop.f32.mrb[135].mxu1 }
 0x4f7   : > { %7418 = vmatmul.mubr.msk.bf16.gmra.mrb[240].mxu1 %vm4451_vm5, %v5685_v34 }
 0x4fa   : > { %v5012_v58 = vpop.f32.mrb[136].mxu1 }
 0x4fb   : > { %v5032_v17 = vadd.f32 %v5012_v58, %v4880_v39  ;;  %v7275_v25 = vpop.f32.mrb[137].mxu1 }
 0x4fc   : > { %v5015_v48 = vpop.f32.mrb[138].mxu1 }
 0x4fd   : > { %v5033_v15 = vadd.f32 %v5015_v48, %v4881_v21  ;;  %v7276_v3 = vpop.f32.mrb[139].mxu1 }
 0x502   : > { %v5020_v12 = vpop.f32.mrb[140].mxu1 }
 0x503   : > { %v5034_v13 = vadd.f32 %v5020_v12, %v4882_v40  ;;  %v7279_v1 = vpop.f32.mrb[141].mxu1 }
 0x504   : > { %v5023_v43 = vpop.f32.mrb[142].mxu1 }
 0x505   : > { %v7280_v19 = vpop.f32.mrb[143].mxu1 }
 0x50a   : > { %v5171_v46 = vpop.f32.mrb[144].mxu1 }
 0x50b   : > { %v5209_v32 = vadd.f32 %v5171_v46, %v5026_v27  ;;  %v7291_v5 = vpop.f32.mrb[145].mxu1 }
 0x50c   : > { %v5174_v23 = vpop.f32.mrb[146].mxu1 }
 0x50d   : > { %v5210_v30 = vadd.f32 %v5174_v23, %v5027_v2  ;;  %v7292_v0 = vpop.f32.mrb[147].mxu1 }
 0x512   : > { %v5179_v63 = vpop.f32.mrb[148].mxu1 }
 0x513   : > { %v5211_v26 = vadd.f32 %v5179_v63, %v5028_v62  ;;  %v7295_v45 = vpop.f32.mrb[149].mxu1 }
 0x514   : > { %v5182_v36 = vpop.f32.mrb[150].mxu1 }
 0x515   : > { %v5212_v41 = vadd.f32 %v5182_v36, %v5029_v54  ;;  %v7296_v33 = vpop.f32.mrb[151].mxu1 }
 0x51a   : > { %v5187_v52 = vpop.f32.mrb[152].mxu1 }
 0x51b   : > { %v5213_v31 = vadd.f32 %v5187_v52, %v5030_v47  ;;  %v7299_v14 = vpop.f32.mrb[153].mxu1 }
 0x51c   : > { %v5190_v18 = vpop.f32.mrb[154].mxu1 }
 0x51d   : > { %v5214_v38 = vadd.f32 %v5190_v18, %v5031_v6  ;;  %v7300_v9 = vpop.f32.mrb[155].mxu1 }
 0x522   : > { %v5195_v10 = vpop.f32.mrb[156].mxu1 }
 0x523   : > { %v5215_v56 = vadd.f32 %v5195_v10, %v5032_v17  ;;  %v7303_v61 = vpop.f32.mrb[157].mxu1 }
 0x524   : > { %v5198_v39 = vpop.f32.mrb[158].mxu1 }
 0x525   : > { %v5216_v7 = vadd.f32 %v5198_v39, %v5033_v15  ;;  %v7304_v57 = vpop.f32.mrb[159].mxu1 }
 0x52a   : > { %v5203_v22 = vpop.f32.mrb[160].mxu1 }
 0x52b   : > { %v5217_v21 = vadd.f32 %v5203_v22, %v5034_v13  ;;  %v7307_v60 = vpop.f32.mrb[161].mxu1 }
 0x52c   : > { %v5206_v20 = vpop.f32.mrb[162].mxu1 }
 0x52d   : > { %v7308_v51 = vpop.f32.mrb[163].mxu1 }
 0x532   : > { %v5315_v40 = vpop.f32.mrb[164].mxu1 }
 0x533   : > { %v5353_v42 = vadd.f32 %v5315_v40, %v5209_v32  ;;  %v7319_v53 = vpop.f32.mrb[165].mxu1 }
 0x534   : > { %v5318_v29 = vpop.f32.mrb[166].mxu1 }
 0x535   : > { %v5354_v16 = vadd.f32 %v5318_v29, %v5210_v30  ;;  %v7320_v27 = vpop.f32.mrb[167].mxu1 }
 0x53a   : > { %v5323_v50 = vpop.f32.mrb[168].mxu1 }
 0x53b   : > { %v5355_v49 = vadd.f32 %v5323_v50, %v5211_v26  ;;  %v7323_v2 = vpop.f32.mrb[169].mxu1 }
 0x53c   : > { %v5326_v11 = vpop.f32.mrb[170].mxu1 }
 0x53d   : > { %v5356_v24 = vadd.f32 %v5326_v11, %v5212_v41  ;;  %v7324_v34 = vpop.f32.mrb[171].mxu1 }
 0x542   : > { %v5331_v62 = vpop.f32.mrb[172].mxu1 }
 0x543   : > { %v5357_v44 = vadd.f32 %v5331_v62, %v5213_v31  ;;  %v7327_v37 = vpop.f32.mrb[173].mxu1 }
 0x544   : > { %v5334_v54 = vpop.f32.mrb[174].mxu1 }
 0x545   : > { %v5358_v28 = vadd.f32 %v5334_v54, %v5214_v38  ;;  %v7328_v59 = vpop.f32.mrb[175].mxu1 }
 0x54a   : > { %v5339_v4 = vpop.f32.mrb[176].mxu1 }
 0x54b   : > { %v5359_v47 = vadd.f32 %v5339_v4, %v5215_v56  ;;  %v7331_v35 = vpop.f32.mrb[177].mxu1 }
 0x54c   : > { %v5342_v8 = vpop.f32.mrb[178].mxu1 }
 0x54d   : > { %v5360_v6 = vadd.f32 %v5342_v8, %v5216_v7  ;;  %v7332_v55 = vpop.f32.mrb[179].mxu1 }
 0x552   : > { %v5347_v58 = vpop.f32.mrb[180].mxu1 }
 0x553   : > { %v5361_v17 = vadd.f32 %v5347_v58, %v5217_v21  ;;  %v7335_v25 = vpop.f32.mrb[181].mxu1  ;;  %v9691_v58 = vld [vmem:[%s9742_s6] ss:$0 sm:$0xff] }
 0x554   : > { %v5350_v48 = vpop.f32.mrb[182].mxu1 }
 0x555   : > { %v7336_v15 = vpop.f32.mrb[183].mxu1 }
 0x55a   : > { %v5458_v3 = vpop.f32.mrb[184].mxu1 }
 0x55b   : > { %v5496_v12 = vadd.f32 %v5458_v3, %v5353_v42  ;;  %v7347_v13 = vpop.f32.mrb[185].mxu1 }
 0x55c   : > { %v5461_v1 = vpop.f32.mrb[186].mxu1 }
 0x55d   : > { %v5497_v43 = vadd.f32 %v5461_v1, %v5354_v16  ;;  %v7348_v19 = vpop.f32.mrb[187].mxu1 }
 0x562   : > { %v5466_v46 = vpop.f32.mrb[188].mxu1 }
 0x563   : > { %v5498_v32 = vadd.f32 %v5466_v46, %v5355_v49  ;;  %v7351_v5 = vpop.f32.mrb[189].mxu1 }
 0x564   : > { %v5469_v23 = vpop.f32.mrb[190].mxu1 }
 0x565   : > { %v5499_v30 = vadd.f32 %v5469_v23, %v5356_v24  ;;  %v7352_v0 = vpop.f32.mrb[191].mxu1 }
 0x56a   : > { %v5474_v63 = vpop.f32.mrb[192].mxu1 }
 0x56b   : > { %v5500_v26 = vadd.f32 %v5474_v63, %v5357_v44  ;;  %v7355_v45 = vpop.f32.mrb[193].mxu1 }
 0x56c   : > { %v5477_v36 = vpop.f32.mrb[194].mxu1 }
 0x56d   : > { %v5501_v41 = vadd.f32 %v5477_v36, %v5358_v28  ;;  %v7356_v33 = vpop.f32.mrb[195].mxu1 }
 0x572   : > { %v5482_v52 = vpop.f32.mrb[196].mxu1 }
 0x573   : > { %v5502_v31 = vadd.f32 %v5482_v52, %v5359_v47  ;;  %v7359_v14 = vpop.f32.mrb[197].mxu1 }
 0x574   : > { %v5485_v18 = vpop.f32.mrb[198].mxu1 }
 0x575   : > { %v5503_v38 = vadd.f32 %v5485_v18, %v5360_v6  ;;  %v7360_v9 = vpop.f32.mrb[199].mxu1 }
 0x57a   : > { %v5490_v10 = vpop.f32.mrb[200].mxu1 }
 0x57b   : > { %v5504_v56 = vadd.f32 %v5490_v10, %v5361_v17  ;;  %v7363_v61 = vpop.f32.mrb[201].mxu1 }
 0x57c   : > { %v5493_v39 = vpop.f32.mrb[202].mxu1 }
 0x57d   : > { %v7364_v7 = vpop.f32.mrb[203].mxu1 }
 0x582   : > { %v5618_v57 = vpop.f32.mrb[204].mxu1 }
 0x583   : > { %v5656_v22 = vadd.f32 %v5618_v57, %v5496_v12  ;;  %v7375_v21 = vpop.f32.mrb[205].mxu1 }
 0x584   : > { %v5621_v60 = vpop.f32.mrb[206].mxu1 }
 0x585   : > { %v5657_v20 = vadd.f32 %v5621_v60, %v5497_v43  ;;  %v7376_v51 = vpop.f32.mrb[207].mxu1 }
 0x58a   : > { %v5626_v40 = vpop.f32.mrb[208].mxu1 }
 0x58b   : > { %v5658_v42 = vadd.f32 %v5626_v40, %v5498_v32  ;;  %v7379_v53 = vpop.f32.mrb[209].mxu1 }
 0x58c   : > { %v5629_v29 = vpop.f32.mrb[210].mxu1 }
 0x58d   : > { %v5659_v16 = vadd.f32 %v5629_v29, %v5499_v30  ;;  %v7380_v27 = vpop.f32.mrb[211].mxu1 }
 0x592   : > { %v5634_v50 = vpop.f32.mrb[212].mxu1 }
 0x593   : > { %v5660_v49 = vadd.f32 %v5634_v50, %v5500_v26  ;;  %v7383_v2 = vpop.f32.mrb[213].mxu1 }
 0x594   : > { %v5637_v11 = vpop.f32.mrb[214].mxu1 }
 0x595   : > { %v5661_v24 = vadd.f32 %v5637_v11, %v5501_v41  ;;  %v7384_v34 = vpop.f32.mrb[215].mxu1 }
 0x59a   : > { %v5642_v62 = vpop.f32.mrb[216].mxu1 }
 0x59b   : > { %v5662_v44 = vadd.f32 %v5642_v62, %v5502_v31  ;;  %v7387_v37 = vpop.f32.mrb[217].mxu1 }
 0x59c   : > { %v5645_v54 = vpop.f32.mrb[218].mxu1 }
 0x59d   : > { %v5663_v28 = vadd.f32 %v5645_v54, %v5503_v38  ;;  %v7388_v59 = vpop.f32.mrb[219].mxu1 }
 0x5a2   : > { %v5650_v4 = vpop.f32.mrb[220].mxu1 }
 0x5a3   : > { %v9682_v47 = vadd.f32 %v5650_v4, %v5504_v56  ;;  %v7391_v35 = vpop.f32.mrb[221].mxu1 }
 0x5a4   : > { %v5653_v8 = vpop.f32.mrb[222].mxu1 }
 0x5a5   : > { %v7392_v6 = vpop.f32.mrb[223].mxu1 }
 0x5aa   : > { %v5760_v55 = vpop.f32.mrb[224].mxu1 }
 0x5ab   : > { %v5798_v17 = vadd.f32 %v5760_v55, %v5656_v22  ;;  %v7403_v25 = vpop.f32.mrb[225].mxu1 }
 0x5ac   : > { %v5763_v48 = vpop.f32.mrb[226].mxu1 }
 0x5ad   : > { %v5814_v15 = vadd.f32 %v9691_v58, %v5798_v17  ;;  %v5799_v3 = vadd.f32 %v5763_v48, %v5657_v20  ;;  %v7404_v12 = vpop.f32.mrb[227].mxu1 }
 0x5af   : > { %v5823_v13 = vmax.f32 %v5814_v15, 0.0  ;;  %v5815_v1 = vadd.f32 %v9691_v58, %v5799_v3 }
 0x5b1   : > { %v6462_v43 = vpack.c.bf16 %v5823_v13, %v5823_v13  ;;  %v5824_v19 = vmax.f32 %v5815_v1, 0.0 }
 0x5b2   : > { %v5768_v46 = vpop.f32.mrb[228].mxu1 }
 0x5b3   : > { %5870 = vst.msk [vmem:[%s9698_s11] sm:$0xf] %vm5869_vm11, %v6462_v43  ;;  %v6463_v32 = vpack.c.bf16 %v5824_v19, %v5824_v19  ;;  %v5800_v5 = vadd.f32 %v5768_v46, %v5658_v42  ;;  %v7407_v23 = vpop.f32.mrb[229].mxu1 }
 0x5b4   : > { %v5771_v30 = vpop.f32.mrb[230].mxu1 }
 0x5b5   : > { %5871 = vst.msk [vmem:[%s9698_s11 + $0x4] sm:$0xf] %vm5869_vm11, %v6463_v32  ;;  %v5816_v0 = vadd.f32 %v9691_v58, %v5800_v5  ;;  %v5801_v63 = vadd.f32 %v5771_v30, %v5659_v16  ;;  %v7408_v26 = vpop.f32.mrb[231].mxu1 }
 0x5b7   : > { %v5825_v45 = vmax.f32 %v5816_v0, 0.0  ;;  %v5817_v36 = vadd.f32 %v9691_v58, %v5801_v63 }
 0x5b9   : > { %v6464_v41 = vpack.c.bf16 %v5825_v45, %v5825_v45  ;;  %v5826_v33 = vmax.f32 %v5817_v36, 0.0 }
 0x5ba   : > { %v5776_v52 = vpop.f32.mrb[232].mxu1 }
 0x5bb   : > { %5872 = vst.msk [vmem:[%s9698_s11 + $0x8] sm:$0xf] %vm5869_vm11, %v6464_v41  ;;  %v6465_v31 = vpack.c.bf16 %v5826_v33, %v5826_v33  ;;  %v5802_v14 = vadd.f32 %v5776_v52, %v5660_v49  ;;  %v7411_v18 = vpop.f32.mrb[233].mxu1 }
 0x5bc   : > { %v5779_v38 = vpop.f32.mrb[234].mxu1 }
 0x5bd   : > { %5873 = vst.msk [vmem:[%s9698_s11 + $0xc] sm:$0xf] %vm5869_vm11, %v6465_v31  ;;  %v5818_v9 = vadd.f32 %v9691_v58, %v5802_v14  ;;  %v5803_v10 = vadd.f32 %v5779_v38, %v5661_v24  ;;  %v7412_v56 = vpop.f32.mrb[235].mxu1 }
 0x5bf   : > { %v5827_v61 = vmax.f32 %v5818_v9, 0.0  ;;  %v5819_v39 = vadd.f32 %v9691_v58, %v5803_v10 }
 0x5c1   : > { %v6466_v7 = vpack.c.bf16 %v5827_v61, %v5827_v61  ;;  %v5828_v57 = vmax.f32 %v5819_v39, 0.0 }
 0x5c2   : > { %v5784_v22 = vpop.f32.mrb[236].mxu1 }
 0x5c3   : > { %5874 = vst.msk [vmem:[%s9698_s11 + $0x10] sm:$0xf] %vm5869_vm11, %v6466_v7  ;;  %v6467_v21 = vpack.c.bf16 %v5828_v57, %v5828_v57  ;;  %v5804_v60 = vadd.f32 %v5784_v22, %v5662_v44  ;;  %v7415_v20 = vpop.f32.mrb[237].mxu1 }
 0x5c4   : > { %v5787_v51 = vpop.f32.mrb[238].mxu1 }
 0x5c5   : > { %5875 = vst.msk [vmem:[%s9698_s11 + $0x14] sm:$0xf] %vm5869_vm11, %v6467_v21  ;;  %v5820_v40 = vadd.f32 %v9691_v58, %v5804_v60  ;;  %v5805_v42 = vadd.f32 %v5787_v51, %v5663_v28  ;;  %v7416_v53 = vpop.f32.mrb[239].mxu1 }
 0x5c7   : > { %v5829_v29 = vmax.f32 %v5820_v40, 0.0  ;;  %v5821_v16 = vadd.f32 %v9691_v58, %v5805_v42 }
 0x5c9   : > { %v6468_v27 = vpack.c.bf16 %v5829_v29, %v5829_v29  ;;  %v5830_v50 = vmax.f32 %v5821_v16, 0.0 }
 0x5ca   : > { %v5792_v49 = vpop.f32.mrb[240].mxu1 }
 0x5cb   : > { %5876 = vst.msk [vmem:[%s9698_s11 + $0x18] sm:$0xf] %vm5869_vm11, %v6468_v27  ;;  %v6469_v2 = vpack.c.bf16 %v5830_v50, %v5830_v50  ;;  %v5806_v11 = vadd.f32 %v5792_v49, %v9682_v47  ;;  %v7419_v24 = vpop.f32.mrb[241].mxu1 }
 0x5cc   : > { %v5795_v34 = vpop.f32.mrb[242].mxu1 }
 0x5cd   : > { %5877 = vst.msk [vmem:[%s9698_s11 + $0x1c] sm:$0xf] %vm5869_vm11, %v6469_v2  ;;  %v5822_v62 = vadd.f32 %v9691_v58, %v5806_v11  ;;  %v7420_v44 = vpop.f32.mrb[243].mxu1 }
 0x5cf   : > { %v5831_v37 = vmax.f32 %v5822_v62, 0.0 }
 0x5d1   : > { %v6470_v54 = vpack.c.bf16 %v5831_v37, %v5831_v37 }
 0x5d3   : > { %5878 = vst.msk [vmem:[%s9698_s11 + $0x20] sm:$0xf] %vm5869_vm11, %v6470_v54 }
 0x5d4 PF: > { %p14_p9 = scmp.ge.s32.totalorder %s7934_s28, 4   ;;  %s9814_s24 = smov %s7869_s25 }
 0x5d5   : > { %s9815_s25 = smov %s7943_s8  ;;  %s9816_s26 = smov %s7934_s28 }
 0x5d6   :  { %16 = sbr.rel (!%p14_p9) target bundleno = 2 (0x2), region = 150 }

</bundles_post_ra>
